<compile_context>
chip_gen: v6e
topology: v6e:2x2x1
jax: 0.10.0
libtpu: 0.0.40
codegen_flags: <defaults>
</compile_context>

<pallas_src>
import jax
import jax.numpy as jnp
from jax import lax
from jax.experimental import pallas as pl
from jax.experimental.pallas import tpu as pltpu

EPS = 1e-5
_LANE = 128


def _round_up(x, m):
    return (x + m - 1) // m * m


def _vmem_limit_bytes():
    """Per-generation scoped-VMEM limit (leave compiler-scratch headroom)."""
    try:
        cap = pltpu.get_tpu_info().vmem_capacity_bytes
    except Exception:
        cap = 64 * 1024 * 1024  # conservative (v7x-sized) fallback
    return int(min(cap * 3 // 4, 100 * 1024 * 1024))


# ----------------------------- Pallas kernels ------------------------------

def _conv3x3_im2col(xpad_ref, w_ref, H, W, Ci, Co):
    """3x3 'SAME' conv from a zero-padded VMEM scratch.

    Builds an in-VMEM im2col slab [H*W, 9*Ci] (tap-major columns, matching the
    [9*Ci, Co] weight layout) and issues a single large-K matmul.
    """
    taps = []
    for t in range(9):
        dh, dw = t // 3, t % 3
        taps.append(xpad_ref[dh:dh + H, dw:dw + W, :].reshape(H * W, Ci))
    slab = jnp.concatenate(taps, axis=1)                       # [H*W, 9*Ci]
    return jnp.dot(slab, w_ref[...], preferred_element_type=jnp.float32)


def _stats(acc, count):
    """Per-tile channel sum and *centered* sum-of-squares (f32)."""
    s = jnp.sum(acc, axis=0, keepdims=True)                    # [1, C]
    d = acc - s * (1.0 / count)
    q = jnp.sum(d * d, axis=0, keepdims=True)                  # [1, C]
    return s, q


def _make_conv1_kernel(has_shortcut: bool):
    """Pass A: conv1 raw output (+ optional 1x1 shortcut conv raw output),
    plus per-tile per-channel (sum, centered sumsq) for the BN statistics."""

    def main(x_ref, w1_ref, b1_ref, y1_ref, s1_ref, q1_ref, xpad_ref):
        H, W, Co = y1_ref.shape[1], y1_ref.shape[2], y1_ref.shape[3]
        Ci = x_ref.shape[3]
        # Spatial zero pad (conv padding=1) done in VMEM: exact zeros.
        xpad_ref[...] = jnp.zeros_like(xpad_ref)
        xpad_ref[1:1 + H, 1:1 + W, :] = x_ref[0]
        acc = _conv3x3_im2col(xpad_ref, w1_ref, H, W, Ci, Co) + b1_ref[...]
        y1_ref[...] = acc.astype(y1_ref.dtype).reshape(1, H, W, Co)
        s, q = _stats(acc, H * W)
        s1_ref[...] = s[None]
        q1_ref[...] = q[None]

    if not has_shortcut:
        return main

    def kernel(x_ref, w1_ref, b1_ref, ws_ref, bs_ref,
               y1_ref, r_ref, s1_ref, q1_ref, sr_ref, qr_ref, xpad_ref):
        main(x_ref, w1_ref, b1_ref, y1_ref, s1_ref, q1_ref, xpad_ref)
        H, W, Co = r_ref.shape[1], r_ref.shape[2], r_ref.shape[3]
        Ci = x_ref.shape[3]
        xf = x_ref[0].reshape(H * W, Ci)
        r = jnp.dot(xf, ws_ref[...],
                    preferred_element_type=jnp.float32) + bs_ref[...]
        r_ref[...] = r.astype(r_ref.dtype).reshape(1, H, W, Co)
        s, q = _stats(r, H * W)
        sr_ref[...] = s[None]
        qr_ref[...] = q[None]

    return kernel


def _conv2_kernel(y1_ref, sc1_ref, sh1_ref, w2_ref, b2_ref,
                  y2_ref, s2_ref, q2_ref, apad_ref):
    """Pass B: BN1-affine + ReLU applied in-kernel, zero-pad in VMEM, conv2."""
    H, W, C = y2_ref.shape[1], y2_ref.shape[2], y2_ref.shape[3]
    sc = sc1_ref[...].reshape(1, 1, C)
    sh = sh1_ref[...].reshape(1, 1, C)
    a = jnp.maximum(y1_ref[0].astype(jnp.float32) * sc + sh, 0.0)
    # conv2's padding=1 is exact zeros on the *activation* (post-ReLU).
    apad_ref[...] = jnp.zeros_like(apad_ref)
    apad_ref[1:1 + H, 1:1 + W, :] = a.astype(apad_ref.dtype)
    acc = _conv3x3_im2col(apad_ref, w2_ref, H, W, C, C) + b2_ref[...]
    y2_ref[...] = acc.astype(y2_ref.dtype).reshape(1, H, W, C)
    s, q = _stats(acc, H * W)
    s2_ref[...] = s[None]
    q2_ref[...] = q[None]


def _finalize_shortcut_kernel(y2_ref, sc2_ref, sh2_ref,
                              r_ref, scs_ref, shs_ref, o_ref):
    y = y2_ref[...].astype(jnp.float32) * sc2_ref[...] + sh2_ref[...]
    r = r_ref[...].astype(jnp.float32) * scs_ref[...] + shs_ref[...]
    o_ref[...] = jnp.maximum(y + r, 0.0)


def _finalize_identity_kernel(y2_ref, sc2_ref, sh2_ref, x_ref, o_ref):
    y = y2_ref[...].astype(jnp.float32) * sc2_ref[...] + sh2_ref[...]
    o_ref[...] = jnp.maximum(y + x_ref[...], 0.0)


# ------------------------------ pallas wrappers -----------------------------

def _conv1_call(xb, w1, b1, ws, bs, has_shortcut, vmem_limit):
    N, H, W, Ci = xb.shape
    Co = w1.shape[1]
    spec_x = pl.BlockSpec((1, H, W, Ci), lambda n: (n, 0, 0, 0))
    spec_w3 = pl.BlockSpec((9 * Ci, Co), lambda n: (0, 0))
    spec_row = pl.BlockSpec((1, Co), lambda n: (0, 0))
    spec_y = pl.BlockSpec((1, H, W, Co), lambda n: (n, 0, 0, 0))
    spec_sum = pl.BlockSpec((1, 1, Co), lambda n: (n, 0, 0))
    y_sds = jax.ShapeDtypeStruct((N, H, W, Co), jnp.bfloat16)
    sum_sds = jax.ShapeDtypeStruct((N, 1, Co), jnp.float32)
    scratch = [pltpu.VMEM((H + 2, W + 2, Ci), jnp.bfloat16)]
    cp = pltpu.CompilerParams(dimension_semantics=("parallel",),
                              vmem_limit_bytes=vmem_limit)
    if has_shortcut:
        spec_w1x1 = pl.BlockSpec((Ci, Co), lambda n: (0, 0))
        return pl.pallas_call(
            _make_conv1_kernel(True),
            out_shape=(y_sds, y_sds, sum_sds, sum_sds, sum_sds, sum_sds),
            grid=(N,),
            in_specs=[spec_x, spec_w3, spec_row, spec_w1x1, spec_row],
            out_specs=(spec_y, spec_y, spec_sum, spec_sum, spec_sum, spec_sum),
            scratch_shapes=scratch,
            compiler_params=cp,
        )(xb, w1, b1, ws, bs)
    return pl.pallas_call(
        _make_conv1_kernel(False),
        out_shape=(y_sds, sum_sds, sum_sds),
        grid=(N,),
        in_specs=[spec_x, spec_w3, spec_row],
        out_specs=(spec_y, spec_sum, spec_sum),
        scratch_shapes=scratch,
        compiler_params=cp,
    )(xb, w1, b1)


def _conv2_call(y1, sc1, sh1, w2, b2, vmem_limit):
    N, H, W, C = y1.shape
    spec_x = pl.BlockSpec((1, H, W, C), lambda n: (n, 0, 0, 0))
    spec_w3 = pl.BlockSpec((9 * C, C), lambda n: (0, 0))
    spec_row = pl.BlockSpec((1, C), lambda n: (0, 0))
    spec_y = pl.BlockSpec((1, H, W, C), lambda n: (n, 0, 0, 0))
    spec_sum = pl.BlockSpec((1, 1, C), lambda n: (n, 0, 0))
    return pl.pallas_call(
        _conv2_kernel,
        out_shape=(jax.ShapeDtypeStruct((N, H, W, C), jnp.bfloat16),
                   jax.ShapeDtypeStruct((N, 1, C), jnp.float32),
                   jax.ShapeDtypeStruct((N, 1, C), jnp.float32)),
        grid=(N,),
        in_specs=[spec_x, spec_row, spec_row, spec_w3, spec_row],
        out_specs=(spec_y, spec_sum, spec_sum),
        scratch_shapes=[pltpu.VMEM((H + 2, W + 2, C), jnp.bfloat16)],
        compiler_params=pltpu.CompilerParams(
            dimension_semantics=("parallel",), vmem_limit_bytes=vmem_limit),
    )(y1, sc1, sh1, w2, b2)


def _pick_row_tile(M):
    for cand in (4096, 2048, 1024, 512, 256, 128, 64, 32, 16, 8):
        if M >= cand and M % cand == 0:
            return cand
    return M


def _finalize_call(y2f, sc2, sh2, res, scs, shs, has_shortcut, vmem_limit):
    M, C = y2f.shape
    tile = _pick_row_tile(M)
    grid = (pl.cdiv(M, tile),)
    spec_t = pl.BlockSpec((tile, C), lambda i: (i, 0))
    spec_row = pl.BlockSpec((1, C), lambda i: (0, 0))
    cp = pltpu.CompilerParams(dimension_semantics=("parallel",),
                              vmem_limit_bytes=vmem_limit)
    out_sds = jax.ShapeDtypeStruct((M, C), jnp.float32)
    if has_shortcut:
        return pl.pallas_call(
            _finalize_shortcut_kernel,
            out_shape=out_sds, grid=grid,
            in_specs=[spec_t, spec_row, spec_row, spec_t, spec_row, spec_row],
            out_specs=spec_t, compiler_params=cp,
        )(y2f, sc2, sh2, res, scs, shs)
    return pl.pallas_call(
        _finalize_identity_kernel,
        out_shape=out_sds, grid=grid,
        in_specs=[spec_t, spec_row, spec_row, spec_t],
        out_specs=spec_t, compiler_params=cp,
    )(y2f, sc2, sh2, res)


# ------------------------------- JAX glue -----------------------------------

def _pad_row(v, C):
    return jnp.pad(v.astype(jnp.float32), (0, C - v.shape[0]))[None]


def _pad_w3x3(w, Ci, Co):
    """HWIO [3,3,ci,co] -> tap-major [9*Ci, Co] bf16 (zero-padded channels)."""
    _, _, ci, co = w.shape
    wp = jnp.pad(w.astype(jnp.float32),
                 ((0, 0), (0, 0), (0, Ci - ci), (0, Co - co)))
    return wp.reshape(9 * Ci, Co).astype(jnp.bfloat16)


def _pad_w1x1(w, Ci, Co):
    ci, co = w.shape[2], w.shape[3]
    wp = jnp.pad(w.astype(jnp.float32),
                 ((0, 0), (0, 0), (0, Ci - ci), (0, Co - co)))
    return wp.reshape(Ci, Co).astype(jnp.bfloat16)


def _bn_affine(sum_tiles, m2_tiles, count_per_tile, gamma_row, beta_row):
    """Training-mode BN folded to per-channel scale/shift.

    Combines per-tile (sum, centered-sumsq) with a Chan-style merge in f32,
    avoiding the E[x^2]-E[x]^2 cancellation of the previous version.
    """
    s = sum_tiles[:, 0, :]
    m2 = m2_tiles[:, 0, :]
    n_tiles = s.shape[0]
    total = n_tiles * count_per_tile
    mu_i = s / count_per_tile
    mu = jnp.mean(mu_i, axis=0)
    m2_tot = jnp.sum(m2, axis=0) + count_per_tile * jnp.sum((mu_i - mu) ** 2,
                                                            axis=0)
    var = jnp.maximum(m2_tot / total, 0.0)
    scale = gamma_row[0] * lax.rsqrt(var + EPS)
    shift = beta_row[0] - mu * scale
    return scale[None], shift[None]  # [1, C]


def resblock_forward(x_nchw, params, in_feat, out_feat):
    has_shortcut = (in_feat != out_feat)
    vmem_limit = _vmem_limit_bytes()
    # Torch-layout boundary: NCHW in/out.  Compute runs NHWC with lane-dense
    # (128-padded) channels; see TODOs at the top for the thin-channel /
    # NHWC-end-to-end restructuring.
    x = jnp.transpose(x_nchw, (0, 2, 3, 1)).astype(jnp.float32)
    N, H, W, _ = x.shape
    M = N * H * W
    Cip = _round_up(in_feat, _LANE)
    Cop = _round_up(out_feat, _LANE)
    if not has_shortcut:
        assert Cip == Cop, "identity residual requires in_feat == out_feat"

    # Channel pad (lane-dense); spatial padding happens inside the kernels.
    xc = jnp.pad(x, ((0, 0), (0, 0), (0, 0), (0, Cip - in_feat)))
    xb = xc.astype(jnp.bfloat16)

    w1 = _pad_w3x3(params["w1"], Cip, Cop)
    b1 = _pad_row(params["b1"], Cop)
    g1, be1 = _pad_row(params["g1"], Cop), _pad_row(params["be1"], Cop)
    w2 = _pad_w3x3(params["w2"], Cop, Cop)
    b2 = _pad_row(params["b2"], Cop)
    g2, be2 = _pad_row(params["g2"], Cop), _pad_row(params["be2"], Cop)

    # Pass A: conv1 (+ shortcut 1x1) raw bf16 outputs and BN partial stats.
    if has_shortcut:
        ws = _pad_w1x1(params["ws"], Cip, Cop)
        bs = _pad_row(params["bs"], Cop)
        gs, bes = _pad_row(params["gs"], Cop), _pad_row(params["bes"], Cop)
        y1, r_raw, s1, q1, sr, qr = _conv1_call(xb, w1, b1, ws, bs, True,
                                                vmem_limit)
    else:
        y1, s1, q1 = _conv1_call(xb, w1, b1, None, None, False, vmem_limit)

    sc1, sh1 = _bn_affine(s1, q1, H * W, g1, be1)

    # Pass B: BN1+ReLU (in-kernel, VMEM zero pad) -> conv2 raw bf16 output.
    y2, s2, q2 = _conv2_call(y1, sc1, sh1, w2, b2, vmem_limit)
    sc2, sh2 = _bn_affine(s2, q2, H * W, g2, be2)

    # Pass C: elementwise BN2 + residual + ReLU, lane-dense [M, Cop] output.
    if has_shortcut:
        scs, shs = _bn_affine(sr, qr, H * W, gs, bes)
        out = _finalize_call(y2.reshape(M, Cop), sc2, sh2,
                             r_raw.reshape(M, Cop), scs, shs, True, vmem_limit)
    else:
        out = _finalize_call(y2.reshape(M, Cop), sc2, sh2,
                             xc.reshape(M, Cop), None, None, False, vmem_limit)

    out = out.reshape(N, H, W, Cop)[..., :out_feat]
    return jnp.transpose(out, (0, 3, 1, 2))  # back to NCHW


# --------------------------- pure-JAX reference ------------------------------

def _bn_train(x, g, b):
    mu = jnp.mean(x, axis=(0, 1, 2), keepdims=True)
    var = jnp.mean((x - mu) ** 2, axis=(0, 1, 2), keepdims=True)
    return (x - mu) * lax.rsqrt(var + EPS) * g + b


def _conv_ref(x, w, b):
    y = lax.conv_general_dilated(
        x, w, (1, 1), "SAME",
        dimension_numbers=("NHWC", "HWIO", "NHWC"),
        precision=lax.Precision.HIGHEST)
    return y + b


def resblock_ref(x_nchw, params, in_feat, out_feat):
    x = jnp.transpose(x_nchw, (0, 2, 3, 1)).astype(jnp.float32)
    y = _conv_ref(x, params["w1"], params["b1"])
    y = jnp.maximum(_bn_train(y, params["g1"], params["be1"]), 0.0)
    y = _conv_ref(y, params["w2"], params["b2"])
    y = _bn_train(y, params["g2"], params["be2"])
    if in_feat != out_feat:
        s = _conv_ref(x, params["ws"], params["bs"])
        s = _bn_train(s, params["gs"], params["bes"])
    else:
        s = x
    out = jnp.maximum(y + s, 0.0)
    return jnp.transpose(out, (0, 3, 1, 2))


# --------------------------------- main --------------------------------------

def init_params(key, in_feat, out_feat):
    ks = jax.random.split(key, 12)
    f32 = jnp.float32
    return {
        "w1": 0.1 * jax.random.normal(ks[0], (3, 3, in_feat, out_feat), f32),
        "b1": 0.1 * jax.random.normal(ks[1], (out_feat,), f32),
        "g1": 1.0 + 0.1 * jax.random.normal(ks[2], (out_feat,), f32),
        "be1": 0.1 * jax.random.normal(ks[3], (out_feat,), f32),
        "w2": 0.1 * jax.random.normal(ks[4], (3, 3, out_feat, out_feat), f32),
        "b2": 0.1 * jax.random.normal(ks[5], (out_feat,), f32),
        "g2": 1.0 + 0.1 * jax.random.normal(ks[6], (out_feat,), f32),
        "be2": 0.1 * jax.random.normal(ks[7], (out_feat,), f32),
        "ws": 0.1 * jax.random.normal(ks[8], (1, 1, in_feat, out_feat), f32),
        "bs": 0.1 * jax.random.normal(ks[9], (out_feat,), f32),
        "gs": 1.0 + 0.1 * jax.random.normal(ks[10], (out_feat,), f32),
        "bes": 0.1 * jax.random.normal(ks[11], (out_feat,), f32),
    }


if __name__ == "__main__":
    key = jax.random.PRNGKey(0)
    N, H, W = 2, 16, 16
    # (4 -> 8): shortcut branch exercised; (8 -> 8): identity residual.
    for cin, cout in [(4, 8), (8, 8)]:
        kx, kp, key = jax.random.split(key, 3)
        x = jax.random.normal(kx, (N, cin, H, W), jnp.float32)  # NCHW like torch
        params = init_params(kp, cin, cout)

        out = jax.block_until_ready(resblock_forward(x, params, cin, cout))
        ref = jax.block_until_ready(resblock_ref(x, params, cin, cout))

        assert out.shape == (N, cout, H, W)
        # bf16 MXU operands + bf16 inter-pass intermediates vs the f32
        # HIGHEST-precision reference -> slightly looser tolerance than before.
        assert jnp.allclose(out, ref, atol=3e-2, rtol=3e-2), (
            (cin, cout), float(jnp.max(jnp.abs(out - ref))))

    print("KERNEL_OK")
</pallas_src>

<mosaic_0001>
module attributes {stable_mosaic.version = 11 : i64} {
  func.func @kernel(%arg0: i32, %arg1: memref<1x16x16x128xbf16, #tpu.memory_space<vmem>>, %arg2: memref<1152x128xbf16, #tpu.memory_space<vmem>>, %arg3: memref<1x128xf32, #tpu.memory_space<vmem>>, %arg4: memref<128x128xbf16, #tpu.memory_space<vmem>>, %arg5: memref<1x128xf32, #tpu.memory_space<vmem>>, %arg6: memref<1x16x16x128xbf16, #tpu.memory_space<vmem>>, %arg7: memref<1x16x16x128xbf16, #tpu.memory_space<vmem>>, %arg8: memref<1x1x128xf32, #tpu.memory_space<vmem>>, %arg9: memref<1x1x128xf32, #tpu.memory_space<vmem>>, %arg10: memref<1x1x128xf32, #tpu.memory_space<vmem>>, %arg11: memref<1x1x128xf32, #tpu.memory_space<vmem>>, %arg12: memref<18x18x128xbf16, #tpu.memory_space<vmem>>) attributes {dimension_semantics = [#tpu.dimension_semantics<parallel>], iteration_bounds = array<i64: 2>, scalar_prefetch = 0 : i64, scratch_operands = 1 : i64, tpu.core_type = #tpu.core_type<tc>, window_params = [{transform_indices = @transform_0, window_bounds = array<i64: 1, 16, 16, 128>}, {pipeline_mode = #tpu.pipeline_mode<synchronous>, transform_indices = @transform_1, window_bounds = array<i64: 1152, 128>}, {pipeline_mode = #tpu.pipeline_mode<synchronous>, transform_indices = @transform_2, window_bounds = array<i64: 1, 128>}, {pipeline_mode = #tpu.pipeline_mode<synchronous>, transform_indices = @transform_3, window_bounds = array<i64: 128, 128>}, {pipeline_mode = #tpu.pipeline_mode<synchronous>, transform_indices = @transform_4, window_bounds = array<i64: 1, 128>}, {transform_indices = @transform_5, window_bounds = array<i64: 1, 16, 16, 128>}, {transform_indices = @transform_6, window_bounds = array<i64: 1, 16, 16, 128>}, {transform_indices = @transform_7, window_bounds = array<i64: 1, 1, 128>}, {transform_indices = @transform_8, window_bounds = array<i64: 1, 1, 128>}, {transform_indices = @transform_9, window_bounds = array<i64: 1, 1, 128>}, {transform_indices = @transform_10, window_bounds = array<i64: 1, 1, 128>}]} {
    %cst = arith.constant 0.000000e+00 : bf16
    %0 = vector.broadcast %cst : bf16 to vector<18x18x128xbf16>
    %c0 = arith.constant 0 : index
    %c0_0 = arith.constant 0 : index
    %c0_1 = arith.constant 0 : index
    %1 = vector.load %arg12[%c0, %c0_0, %c0_1] : memref<18x18x128xbf16, #tpu.memory_space<vmem>>, vector<18x18x128xbf16>
    tpu.vector_store %arg12[%c0, %c0_0, %c0_1], %0 {strides = array<i32>} : memref<18x18x128xbf16, #tpu.memory_space<vmem>>, vector<18x18x128xbf16>,
    %c0_2 = arith.constant 0 : index
    %c0_3 = arith.constant 0 : index
    %c0_4 = arith.constant 0 : index
    %c0_5 = arith.constant 0 : index
    %2 = vector.load %arg1[%c0_2, %c0_3, %c0_4, %c0_5] : memref<1x16x16x128xbf16, #tpu.memory_space<vmem>>, vector<1x16x16x128xbf16>
    %3 = vector.shape_cast %2 : vector<1x16x16x128xbf16> to vector<16x16x128xbf16>
    %c1 = arith.constant 1 : index
    %c1_6 = arith.constant 1 : index
    %c0_7 = arith.constant 0 : index
    %4 = vector.load %arg12[%c1, %c1_6, %c0_7] : memref<18x18x128xbf16, #tpu.memory_space<vmem>>, vector<16x16x128xbf16>
    tpu.vector_store %arg12[%c1, %c1_6, %c0_7], %3 {strides = array<i32>} : memref<18x18x128xbf16, #tpu.memory_space<vmem>>, vector<16x16x128xbf16>,
    %c0_8 = arith.constant 0 : index
    %c0_9 = arith.constant 0 : index
    %c0_10 = arith.constant 0 : index
    %5 = vector.load %arg12[%c0_8, %c0_9, %c0_10] : memref<18x18x128xbf16, #tpu.memory_space<vmem>>, vector<16x16x128xbf16>
    %6 = vector.shape_cast %5 : vector<16x16x128xbf16> to vector<256x128xbf16>
    %c0_11 = arith.constant 0 : index
    %c1_12 = arith.constant 1 : index
    %c0_13 = arith.constant 0 : index
    %7 = vector.load %arg12[%c0_11, %c1_12, %c0_13] : memref<18x18x128xbf16, #tpu.memory_space<vmem>>, vector<16x16x128xbf16>
    %8 = vector.shape_cast %7 : vector<16x16x128xbf16> to vector<256x128xbf16>
    %c0_14 = arith.constant 0 : index
    %c2 = arith.constant 2 : index
    %c0_15 = arith.constant 0 : index
    %9 = vector.load %arg12[%c0_14, %c2, %c0_15] : memref<18x18x128xbf16, #tpu.memory_space<vmem>>, vector<16x16x128xbf16>
    %10 = vector.shape_cast %9 : vector<16x16x128xbf16> to vector<256x128xbf16>
    %c1_16 = arith.constant 1 : index
    %c0_17 = arith.constant 0 : index
    %c0_18 = arith.constant 0 : index
    %11 = vector.load %arg12[%c1_16, %c0_17, %c0_18] : memref<18x18x128xbf16, #tpu.memory_space<vmem>>, vector<16x16x128xbf16>
    %12 = vector.shape_cast %11 : vector<16x16x128xbf16> to vector<256x128xbf16>
    %c1_19 = arith.constant 1 : index
    %c1_20 = arith.constant 1 : index
    %c0_21 = arith.constant 0 : index
    %13 = vector.load %arg12[%c1_19, %c1_20, %c0_21] : memref<18x18x128xbf16, #tpu.memory_space<vmem>>, vector<16x16x128xbf16>
    %14 = vector.shape_cast %13 : vector<16x16x128xbf16> to vector<256x128xbf16>
    %c1_22 = arith.constant 1 : index
    %c2_23 = arith.constant 2 : index
    %c0_24 = arith.constant 0 : index
    %15 = vector.load %arg12[%c1_22, %c2_23, %c0_24] : memref<18x18x128xbf16, #tpu.memory_space<vmem>>, vector<16x16x128xbf16>
    %16 = vector.shape_cast %15 : vector<16x16x128xbf16> to vector<256x128xbf16>
    %c2_25 = arith.constant 2 : index
    %c0_26 = arith.constant 0 : index
    %c0_27 = arith.constant 0 : index
    %17 = vector.load %arg12[%c2_25, %c0_26, %c0_27] : memref<18x18x128xbf16, #tpu.memory_space<vmem>>, vector<16x16x128xbf16>
    %18 = vector.shape_cast %17 : vector<16x16x128xbf16> to vector<256x128xbf16>
    %c2_28 = arith.constant 2 : index
    %c1_29 = arith.constant 1 : index
    %c0_30 = arith.constant 0 : index
    %19 = vector.load %arg12[%c2_28, %c1_29, %c0_30] : memref<18x18x128xbf16, #tpu.memory_space<vmem>>, vector<16x16x128xbf16>
    %20 = vector.shape_cast %19 : vector<16x16x128xbf16> to vector<256x128xbf16>
    %c2_31 = arith.constant 2 : index
    %c2_32 = arith.constant 2 : index
    %c0_33 = arith.constant 0 : index
    %21 = vector.load %arg12[%c2_31, %c2_32, %c0_33] : memref<18x18x128xbf16, #tpu.memory_space<vmem>>, vector<16x16x128xbf16>
    %22 = vector.shape_cast %21 : vector<16x16x128xbf16> to vector<256x128xbf16>
    %23 = tpu.concatenate %6, %8, %10, %12, %14, %16, %18, %20, %22 in 1 : vector<256x128xbf16>, vector<256x128xbf16>, vector<256x128xbf16>, vector<256x128xbf16>, vector<256x128xbf16>, vector<256x128xbf16>, vector<256x128xbf16>, vector<256x128xbf16>, vector<256x128xbf16> -> vector<256x1152xbf16>
    %c0_34 = arith.constant 0 : index
    %c0_35 = arith.constant 0 : index
    %24 = vector.load %arg2[%c0_34, %c0_35] : memref<1152x128xbf16, #tpu.memory_space<vmem>>, vector<1152x128xbf16>
    %cst_36 = arith.constant dense<0.000000e+00> : vector<256x128xf32>
    %25 = tpu.matmul %23, %24, %cst_36 {dimension_numbers = #tpu.dot_dimension_numbers<[1], [0], [0], [1], [0, 0, 1, 1], [], []>} : vector<256x1152xbf16>, vector<1152x128xbf16>, vector<256x128xf32> -> vector<256x128xf32>
    %c0_37 = arith.constant 0 : index
    %c0_38 = arith.constant 0 : index
    %26 = vector.load %arg3[%c0_37, %c0_38] : memref<1x128xf32, #tpu.memory_space<vmem>>, vector<1x128xf32>
    %27 = vector.broadcast %26 : vector<1x128xf32> to vector<256x128xf32>
    %28 = arith.addf %25, %27 : vector<256x128xf32>
    %29 = arith.truncf %28 : vector<256x128xf32> to vector<256x128xbf16>
    %30 = vector.shape_cast %29 : vector<256x128xbf16> to vector<1x16x16x128xbf16>
    %c0_39 = arith.constant 0 : index
    %c0_40 = arith.constant 0 : index
    %c0_41 = arith.constant 0 : index
    %c0_42 = arith.constant 0 : index
    %31 = vector.load %arg6[%c0_39, %c0_40, %c0_41, %c0_42] : memref<1x16x16x128xbf16, #tpu.memory_space<vmem>>, vector<1x16x16x128xbf16>
    tpu.vector_store %arg6[%c0_39, %c0_40, %c0_41, %c0_42], %30 {strides = array<i32>} : memref<1x16x16x128xbf16, #tpu.memory_space<vmem>>, vector<1x16x16x128xbf16>,
    %cst_43 = arith.constant dense<0.000000e+00> : vector<128xf32>
    %32 = vector.multi_reduction <add>, %28, %cst_43 [0] : vector<256x128xf32> to vector<128xf32>
    %33 = vector.shape_cast %32 : vector<128xf32> to vector<1x128xf32>
    %cst_44 = arith.constant 3.906250e-03 : f32
    %34 = vector.broadcast %cst_44 : f32 to vector<1x128xf32>
    %35 = arith.mulf %33, %34 : vector<1x128xf32>
    %36 = vector.broadcast %35 : vector<1x128xf32> to vector<256x128xf32>
    %37 = arith.subf %28, %36 : vector<256x128xf32>
    %38 = arith.mulf %37, %37 : vector<256x128xf32>
    %cst_45 = arith.constant dense<0.000000e+00> : vector<128xf32>
    %39 = vector.multi_reduction <add>, %38, %cst_45 [0] : vector<256x128xf32> to vector<128xf32>
    %40 = vector.shape_cast %39 : vector<128xf32> to vector<1x128xf32>
    %41 = vector.shape_cast %33 : vector<1x128xf32> to vector<1x1x128xf32>
    %c0_46 = arith.constant 0 : index
    %c0_47 = arith.constant 0 : index
    %c0_48 = arith.constant 0 : index
    %42 = vector.load %arg8[%c0_46, %c0_47, %c0_48] : memref<1x1x128xf32, #tpu.memory_space<vmem>>, vector<1x1x128xf32>
    tpu.vector_store %arg8[%c0_46, %c0_47, %c0_48], %41 {strides = array<i32>} : memref<1x1x128xf32, #tpu.memory_space<vmem>>, vector<1x1x128xf32>,
    %43 = vector.shape_cast %40 : vector<1x128xf32> to vector<1x1x128xf32>
    %c0_49 = arith.constant 0 : index
    %c0_50 = arith.constant 0 : index
    %c0_51 = arith.constant 0 : index
    %44 = vector.load %arg9[%c0_49, %c0_50, %c0_51] : memref<1x1x128xf32, #tpu.memory_space<vmem>>, vector<1x1x128xf32>
    tpu.vector_store %arg9[%c0_49, %c0_50, %c0_51], %43 {strides = array<i32>} : memref<1x1x128xf32, #tpu.memory_space<vmem>>, vector<1x1x128xf32>,
    %c0_52 = arith.constant 0 : index
    %c0_53 = arith.constant 0 : index
    %c0_54 = arith.constant 0 : index
    %c0_55 = arith.constant 0 : index
    %45 = vector.load %arg1[%c0_52, %c0_53, %c0_54, %c0_55] : memref<1x16x16x128xbf16, #tpu.memory_space<vmem>>, vector<1x16x16x128xbf16>
    %46 = vector.shape_cast %45 : vector<1x16x16x128xbf16> to vector<16x16x128xbf16>
    %47 = vector.shape_cast %46 : vector<16x16x128xbf16> to vector<256x128xbf16>
    %c0_56 = arith.constant 0 : index
    %c0_57 = arith.constant 0 : index
    %48 = vector.load %arg4[%c0_56, %c0_57] : memref<128x128xbf16, #tpu.memory_space<vmem>>, vector<128x128xbf16>
    %cst_58 = arith.constant dense<0.000000e+00> : vector<256x128xf32>
    %49 = tpu.matmul %47, %48, %cst_58 {dimension_numbers = #tpu.dot_dimension_numbers<[1], [0], [0], [1], [0, 0, 1, 1], [], []>} : vector<256x128xbf16>, vector<128x128xbf16>, vector<256x128xf32> -> vector<256x128xf32>
    %c0_59 = arith.constant 0 : index
    %c0_60 = arith.constant 0 : index
    %50 = vector.load %arg5[%c0_59, %c0_60] : memref<1x128xf32, #tpu.memory_space<vmem>>, vector<1x128xf32>
    %51 = vector.broadcast %50 : vector<1x128xf32> to vector<256x128xf32>
    %52 = arith.addf %49, %51 : vector<256x128xf32>
    %53 = arith.truncf %52 : vector<256x128xf32> to vector<256x128xbf16>
    %54 = vector.shape_cast %53 : vector<256x128xbf16> to vector<1x16x16x128xbf16>
    %c0_61 = arith.constant 0 : index
    %c0_62 = arith.constant 0 : index
    %c0_63 = arith.constant 0 : index
    %c0_64 = arith.constant 0 : index
    %55 = vector.load %arg7[%c0_61, %c0_62, %c0_63, %c0_64] : memref<1x16x16x128xbf16, #tpu.memory_space<vmem>>, vector<1x16x16x128xbf16>
    tpu.vector_store %arg7[%c0_61, %c0_62, %c0_63, %c0_64], %54 {strides = array<i32>} : memref<1x16x16x128xbf16, #tpu.memory_space<vmem>>, vector<1x16x16x128xbf16>,
    %cst_65 = arith.constant dense<0.000000e+00> : vector<128xf32>
    %56 = vector.multi_reduction <add>, %52, %cst_65 [0] : vector<256x128xf32> to vector<128xf32>
    %57 = vector.shape_cast %56 : vector<128xf32> to vector<1x128xf32>
    %cst_66 = arith.constant 3.906250e-03 : f32
    %58 = vector.broadcast %cst_66 : f32 to vector<1x128xf32>
    %59 = arith.mulf %57, %58 : vector<1x128xf32>
    %60 = vector.broadcast %59 : vector<1x128xf32> to vector<256x128xf32>
    %61 = arith.subf %52, %60 : vector<256x128xf32>
    %62 = arith.mulf %61, %61 : vector<256x128xf32>
    %cst_67 = arith.constant dense<0.000000e+00> : vector<128xf32>
    %63 = vector.multi_reduction <add>, %62, %cst_67 [0] : vector<256x128xf32> to vector<128xf32>
    %64 = vector.shape_cast %63 : vector<128xf32> to vector<1x128xf32>
    %65 = vector.shape_cast %57 : vector<1x128xf32> to vector<1x1x128xf32>
    %c0_68 = arith.constant 0 : index
    %c0_69 = arith.constant 0 : index
    %c0_70 = arith.constant 0 : index
    %66 = vector.load %arg10[%c0_68, %c0_69, %c0_70] : memref<1x1x128xf32, #tpu.memory_space<vmem>>, vector<1x1x128xf32>
    tpu.vector_store %arg10[%c0_68, %c0_69, %c0_70], %65 {strides = array<i32>} : memref<1x1x128xf32, #tpu.memory_space<vmem>>, vector<1x1x128xf32>,
    %67 = vector.shape_cast %64 : vector<1x128xf32> to vector<1x1x128xf32>
    %c0_71 = arith.constant 0 : index
    %c0_72 = arith.constant 0 : index
    %c0_73 = arith.constant 0 : index
    %68 = vector.load %arg11[%c0_71, %c0_72, %c0_73] : memref<1x1x128xf32, #tpu.memory_space<vmem>>, vector<1x1x128xf32>
    tpu.vector_store %arg11[%c0_71, %c0_72, %c0_73], %67 {strides = array<i32>} : memref<1x1x128xf32, #tpu.memory_space<vmem>>, vector<1x1x128xf32>,
    return
  }
  func.func @transform_0(%arg0: i32) -> (i32, i32, i32, i32) {
    %c0_i32 = arith.constant 0 : i32
    %c0_i32_0 = arith.constant 0 : i32
    %c0_i32_1 = arith.constant 0 : i32
    %c0_i32_2 = arith.constant 0 : i32
    return %arg0, %c0_i32, %c0_i32_0, %c0_i32_1 : i32, i32, i32, i32
  }
  func.func @transform_1(%arg0: i32) -> (i32, i32) {
    %c0_i32 = arith.constant 0 : i32
    %c0_i32_0 = arith.constant 0 : i32
    %c0_i32_1 = arith.constant 0 : i32
    return %c0_i32, %c0_i32_0 : i32, i32
  }
  func.func @transform_2(%arg0: i32) -> (i32, i32) {
    %c0_i32 = arith.constant 0 : i32
    %c0_i32_0 = arith.constant 0 : i32
    %c0_i32_1 = arith.constant 0 : i32
    return %c0_i32, %c0_i32_0 : i32, i32
  }
  func.func @transform_3(%arg0: i32) -> (i32, i32) {
    %c0_i32 = arith.constant 0 : i32
    %c0_i32_0 = arith.constant 0 : i32
    %c0_i32_1 = arith.constant 0 : i32
    return %c0_i32, %c0_i32_0 : i32, i32
  }
  func.func @transform_4(%arg0: i32) -> (i32, i32) {
    %c0_i32 = arith.constant 0 : i32
    %c0_i32_0 = arith.constant 0 : i32
    %c0_i32_1 = arith.constant 0 : i32
    return %c0_i32, %c0_i32_0 : i32, i32
  }
  func.func @transform_5(%arg0: i32) -> (i32, i32, i32, i32) {
    %c0_i32 = arith.constant 0 : i32
    %c0_i32_0 = arith.constant 0 : i32
    %c0_i32_1 = arith.constant 0 : i32
    %c0_i32_2 = arith.constant 0 : i32
    return %arg0, %c0_i32, %c0_i32_0, %c0_i32_1 : i32, i32, i32, i32
  }
  func.func @transform_6(%arg0: i32) -> (i32, i32, i32, i32) {
    %c0_i32 = arith.constant 0 : i32
    %c0_i32_0 = arith.constant 0 : i32
    %c0_i32_1 = arith.constant 0 : i32
    %c0_i32_2 = arith.constant 0 : i32
    return %arg0, %c0_i32, %c0_i32_0, %c0_i32_1 : i32, i32, i32, i32
  }
  func.func @transform_7(%arg0: i32) -> (i32, i32, i32) {
    %c0_i32 = arith.constant 0 : i32
    %c0_i32_0 = arith.constant 0 : i32
    %c0_i32_1 = arith.constant 0 : i32
    return %arg0, %c0_i32, %c0_i32_0 : i32, i32, i32
  }
  func.func @transform_8(%arg0: i32) -> (i32, i32, i32) {
    %c0_i32 = arith.constant 0 : i32
    %c0_i32_0 = arith.constant 0 : i32
    %c0_i32_1 = arith.constant 0 : i32
    return %arg0, %c0_i32, %c0_i32_0 : i32, i32, i32
  }
  func.func @transform_9(%arg0: i32) -> (i32, i32, i32) {
    %c0_i32 = arith.constant 0 : i32
    %c0_i32_0 = arith.constant 0 : i32
    %c0_i32_1 = arith.constant 0 : i32
    return %arg0, %c0_i32, %c0_i32_0 : i32, i32, i32
  }
  func.func @transform_10(%arg0: i32) -> (i32, i32, i32) {
    %c0_i32 = arith.constant 0 : i32
    %c0_i32_0 = arith.constant 0 : i32
    %c0_i32_1 = arith.constant 0 : i32
    return %arg0, %c0_i32, %c0_i32_0 : i32, i32, i32
  }
}

</mosaic_0001>

<bundles_post_ra>
// kernel: tpu_custom_call.1
= control target key start
LH: loop header
LB: loop body
LE: loop exit
PB: predicated region body
PF: predicated region fallthrough
CT: control target
= control target key end

     0   :  { %s10877_s0 = inlined_call_operand.hbm [shape: bf16[2,16,16,128], index: 0, kind: input, shape index: {}]   ;;  %s10878_s1 = inlined_call_operand.hbm [shape: bf16[1152,128], index: 1, kind: input, shape index: {}]   ;;  %s10879_s2 = inlined_call_operand.vmem [shape: f32[1,128], index: 2, kind: input, shape index: {}]   ;;  %s10880_s3 = inlined_call_operand.hbm [shape: bf16[128,128], index: 3, kind: input, shape index: {}]   ;;  %s10881_s4 = inlined_call_operand.vmem [shape: f32[1,128], index: 4, kind: input, shape index: {}]   ;;  %s10882_s5 = inlined_call_operand.hbm [shape: bf16[2,16,16,128], index: 5, kind: output, shape index: {0}]   ;;  %s10883_s6 = inlined_call_operand.hbm [shape: bf16[2,16,16,128], index: 6, kind: output, shape index: {1}]   ;;  %s10884_s7 = inlined_call_operand.hbm [shape: f32[2,1,128], index: 7, kind: output, shape index: {2}]   ;;  %s10885_s8 = inlined_call_operand.hbm [shape: f32[2,1,128], index: 8, kind: output, shape index: {3}]   ;;  %s10886_s9 = inlined_call_operand.hbm [shape: f32[2,1,128], index: 9, kind: output, shape index: {4}]   ;;  %s10887_s10 = inlined_call_operand.hbm [shape: f32[2,1,128], index: 10, kind: output, shape index: {5}]  }
   0x1   :  { %10941 = sst [smem:[#allocation62_spill]] %s10878_s1 }
   0x2   :  { %10942 = sst [smem:[#allocation63_spill]] %s10880_s3 }
   0x3   :  { %16 = vsyncpa [#allocation4], 0 }
   0x4   :  { %18 = vsyncpa [#allocation4 + $0x1], 0 }
   0x5   :  { %19 = vsyncpa [#allocation7], 0 }
   0x6   :  { %20 = vsyncpa [#allocation5], 0 }
   0x7   :  { %22 = vsyncpa [#allocation5 + $0x1], 0 }
   0x8   :  { %23 = vsyncpa [#allocation11], 0 }
   0x9   :  { %25 = vsyncpa [#allocation11 + $0x1], 0 }
   0xa   :  { %26 = vsyncpa [#allocation14], 0 }
   0xb   :  { %28 = vsyncpa [#allocation14 + $0x1], 0 }
   0xc   :  { %29 = vsyncpa [#allocation17], 0 }
   0xd   :  { %31 = vsyncpa [#allocation17 + $0x1], 0  ;;  %s7982_s13 = smov 0   ;;  %s7984_s14 = smov 0  }
   0xe   :  { %s7986_s15 = smov 0   ;;  %s7988_s16 = smov 0  }
   0xf LB: > { %10943 = sst [smem:[#allocation24_spill]] %s7907_s15  ;;  %s8003_s17 = sadd.s32 4294967295, %s7911_s16   ;;  %s7911_s16 = sphi %s7988_s16, %s11190_s16   ;;  %s7907_s15 = sphi %s7986_s15, %s11187_s15   ;;  %s7903_s14 = sphi %s7984_s14, %s11189_s14   ;;  %s7899_s13 = sphi %s7982_s13, %s11188_s13  }
  0x10   : > { %s10888_s18 = sadd.s32 4294967294, %s7911_s16   ;;  %p57_p0 = scmp.ne.s32.totalorder %s7903_s14, %s7899_s13 }
  0x11   : > { %p10891_p1 = scmp.eq.s32.totalorder %s8003_s17, 0  ;;  %p165_p2 = scmp.eq.s32.totalorder %s8003_s17, 1 }
  0x12   : > { %p171_p3 = scmp.eq.s32.totalorder %s10888_s18, 1  ;;  %p6115_p5 = scmp.ge.s32.totalorder %s7911_s16, 1 }
  0x13   : > { %p8014_p4 = por %p10891_p1, %p57_p0  ;;  %p308_p7 = scmp.lt.s32.totalorder %s7911_s16, 3 }
  0x14   : > { %p8019_p6 = por %p171_p3, %p57_p0  ;;  %s7913_s22 = smov [#allocation6]  }
  0x15   : > { %s10944_s19 = scalar_select %p8014_p4, 1, 0 }
  0x16   : > { %s10945_s20 = scalar_select %p8019_p6, 1, 0 }
  0x17   : > { %p8024_p8 = pnand %p6115_p5, %p308_p7  ;;  %s320_s23 = sshll.u32 %s7913_s22, 4  ;;  %s321_s23 = int_to_ptr.vmem [resolvable:$true] %s320_s23 }
  0x18   : > { %s7914_s25 = smov [#allocation8]   ;;  %s7632_s27 = scalar_lea.vmem %s321_s23, 9216 }
  0x19   : > { %s10946_s21 = scalar_select %p8024_p8, 1, 0 }
  0x1a   : > { %p7365_p9 = pneg %p8024_p8  ;;  %s336_s26 = sshll.u32 %s7914_s25, 4  ;;  %s337_s26 = int_to_ptr.vmem [resolvable:$true] %s336_s26 }
  0x1b   : > { %p7633_p13 = scmp.ne.s32.totalorder %s321_s23, %s7632_s27  ;;  %p7640_p5 = scmp.lt.s32.totalorder %s321_s23, %s321_s23 }
  0x1c   : > { %p8033_p11 = pnand %p7365_p9, %p10891_p1  ;;  %p7641_p7 = scmp.lt.s32.totalorder %s7632_s27, %s7632_s27 }
  0x1e   : > { %p7623_p12 = pneg %p8033_p11  ;;  %p7642_p10 = por %p7641_p7, %p7640_p5 }
  0x20   : > { %p7635_p0 = pnand %p7633_p13, %p7623_p12 }
  0x22   : > { %p7636_p3 = pneg %p7635_p0 }
  0x24   : > { %p7643_p9 = pnand %p7642_p10, %p7636_p3 }
  0x26   : > { %7646 = shalt.err (!%p7643_p9)
}
  0x27   : > { %s10889_s28 = smov 64   ;;  %s10890_s29 = smov 4  }
  0x28   : > { %s10948_s1 = sld [smem:[#allocation62_spill]]  ;;  %s7658_s12 = scalar_lea.vmem %s337_s26, 1024 }
  0x29   : > { %p7659_p13 = scmp.ne.s32.totalorder %s337_s26, %s7658_s12  ;;  %p7666_p10 = scmp.lt.s32.totalorder %s337_s26, %s337_s26 }
  0x2a   : > { %p7667_p3 = scmp.lt.s32.totalorder %s7658_s12, %s7658_s12 }
  0x2b   : > { %p7661_p0 = pnand %p7659_p13, %p7623_p12 }
  0x2c   : > { %p7668_p7 = por %p7667_p3, %p7666_p10 }
  0x2d   : > { %p7662_p5 = pneg %p7661_p0 }
  0x2e   : > { %7368 = dma.hbm_to_vmem [thread:$0]  (!%p8033_p11), %s10948_s1, 9216, %s321_s23, [#allocation7], %s10889_s28, %s10889_s28, %s10890_s29  }
  0x2f   : > { %p7669_p9 = pnand %p7668_p7, %p7662_p5 }
  0x31   : > { %7672 = shalt.err (!%p7669_p9)
}
  0x32   : > { %s10949_s3 = sld [smem:[#allocation63_spill]]  ;;  %s8062_s23 = sadd.s32 1, %s7911_s16  }
  0x33   : > { %s44_s24 = sadd.s32 1, %s7907_s15  ;;  %s41_s27 = ssub.s32 %s7911_s16, %s8062_s23 }
  0x34   : > { %p51_p12 = scmp.ne.s32.totalorder %s7907_s15, %s7903_s14  ;;  %p42_p13 = scmp.eq.s32.totalorder %s41_s27, 0 }
  0x35   : > { %p52_p0 = scmp.eq.s32.totalorder %s7911_s16, 0  ;;  %p7397_p10 = scmp.lt.s32.totalorder %s7911_s16, 2 }
  0x36   : > { %p8072_p5 = por %p165_p2, %p51_p12  ;;  %s353_s12 = sand.u32 1, %s7907_s15  }
  0x37   : > { %s8078_s11 = scalar_select %p42_p13, %s7907_s15, %s44_s24  }
  0x38   : > { %7371 = dma.hbm_to_vmem [thread:$0]  (!%p8033_p11), %s10949_s3, 1024, %s337_s26, [#allocation7], %s10889_s28, %s10889_s28, %s10890_s29  }
  0x39   : > { %s10950_s30 = scalar_select %p8072_p5, 1, 0 }
  0x3a   : > { %10951 = sst [smem:[#allocation25_spill]] %s8078_s11  ;;  %p53_p3 = por %p52_p0, %p51_p12 }
  0x3b   : > { %s6119_s22 = sshll.u32 %s353_s12, 7  ;;  %s6494_s26 = sshll.u32 %s7911_s16, 11 }
  0x3c   : > { %s8085_s28 = scalar_lea.hbm %s10877_s0, %s6494_s26  ;;  %s357_s27 = scalar_lea.vmem [#allocation3], %s6119_s22 }
  0x3d   : > { %s364_s29 = sshll.u32 %s357_s27, 4  ;;  %p8089_p2 = pnand %p7397_p10, %p53_p3  ;;  %s8087_s29 = int_to_ptr.vmem [resolvable:$true] %s364_s29 }
  0x3e   : > { %s8093_s24 = scalar_lea.sflag [#allocation4], %s353_s12  ;;  %s7673_s3 = scalar_lea.hbm %s8085_s28, 2048 }
  0x3f   : > { %p7674_p11 = scmp.ne.s32.totalorder %s8085_s28, %s7673_s3  ;;  %p7675_p7 = pneg %p8089_p2 }
  0x40   : > { %s7678_s22 = scalar_lea.hbm %s10877_s0, 4096  ;;  %p7679_p13 = scmp.lt.s32.totalorder %s8085_s28, %s10877_s0 }
  0x41   : > { %p7676_p9 = pnand %p7675_p7, %p7674_p11  ;;  %p7680_p0 = scmp.lt.s32.totalorder %s7678_s22, %s7673_s3 }
  0x43   : > { %p7677_p12 = pneg %p7676_p9  ;;  %p7681_p10 = por %p7680_p0, %p7679_p13 }
  0x45   : > { %p7682_p3 = pnand %p7681_p10, %p7677_p12 }
  0x47   : > { %7685 = shalt.err (!%p7682_p3)
}
  0x48   : > { %s7686_s12 = scalar_lea.vmem %s8087_s29, 2048  ;;  %s7917_s11 = smov [#allocation3]  }
  0x49   : > { %p7687_p1 = scmp.ne.s32.totalorder %s8087_s29, %s7686_s12  ;;  %s7691_s15 = sshll.u32 %s7917_s11, 4  ;;  %s7692_s15 = int_to_ptr.vmem [resolvable:$false] %s7691_s15 }
  0x4a   : > { %s7693_s18 = scalar_lea.vmem %s7692_s15, 4096  ;;  %p7694_p9 = scmp.lt.s32.totalorder %s8087_s29, %s7692_s15 }
  0x4b   : > { %p7689_p6 = pnand %p7687_p1, %p7675_p7  ;;  %p7695_p5 = scmp.lt.s32.totalorder %s7693_s18, %s7686_s12 }
  0x4d   : > { %p7690_p11 = pneg %p7689_p6  ;;  %p7696_p4 = por %p7695_p5, %p7694_p9 }
  0x4f   : > { %p7697_p8 = pnand %p7696_p4, %p7690_p11 }
  0x51   : > { %7700 = shalt.err (!%p7697_p8)
}
  0x52   : > { %s10953_s3 = smov 4   ;;  %s10954_s26 = smov 64  }
  0x53   : > { %7375 = dma.hbm_to_vmem [thread:$0]  (!%p8089_p2), %s8085_s28, 2048, %s8087_s29, %s8093_s24, %s10954_s26, %s10954_s26, %s10953_s3  }
  0x54   : > { %p10955_p1 = scmp.ne.s32.totalorder %s10946_s21, 0 }
  0x56   : > { %376 = sbr.rel (%p10955_p1) target bundleno = 955 (0x3bb), region = 40 }
  0x5b   : > { %s8120_s11 = sand.u32 1, %s7903_s14   ;;  %p10956_p4 = scmp.ne.s32.totalorder %s10944_s19, 0 }
  0x5c   : > { %s8123_s15 = sshll.u32 %s8120_s11, 7  ;;  %s379_s1 = scalar_lea.sflag [#allocation4], %s8120_s11 }
  0x5d   : > { %s8127_s22 = scalar_lea.vmem [#allocation3], %s8123_s15 }
  0x5e   : > { %7874 = dma.done.wait (%p10956_p4), %s379_s1, 2048  }
  0x5f   : > { %7876 = vsyncadd (%p10956_p4), %s379_s1, 4294965248  ;;  %p10957_p6 = scmp.eq.s32.totalorder %s8003_s17, 0 }
  0x61   : > { %7878 = dma.done.wait (%p10957_p6), [#allocation7], 10240   ;;  %p10958_p8 = pmov %p10957_p6 }
  0x62   : > { %v7918_v0 = vmov 0   ;;  %v7440_v1 = vld [vmem:[#allocation6 + $0x78] sm:$0xff]   ;;  %v7444_v5 = vld [vmem:[#allocation6 + $0x70] sm:$0xff]   ;;  %v7448_v9 = vld [vmem:[#allocation6 + $0x68] sm:$0xff]   ;;  %vm1024_vm0 = vsmask.f32 3328 }
  0x63   : > { %7880 = vsyncadd (%p10958_p8), [#allocation7], 4294957056  ;;  %449 = vst [vmem:[#allocation2] sm:$0xf] %v7918_v0  ;;  %v7441_v2 = vld [vmem:[#allocation6 + $0xf8] sm:$0xff]   ;;  %6751 = vmatprep.subr.bf16.mxu0 %v7440_v1  ;;  %v7445_v6 = vld [vmem:[#allocation6 + $0xf0] sm:$0xff]  }
  0x64   : > { %450 = vst [vmem:[#allocation2 + $0x4] sm:$0xf] %v7918_v0  ;;  %451 = vst [vmem:[#allocation2 + $0x8] sm:$0x1] %v7918_v0  ;;  %v7442_v3 = vld [vmem:[#allocation6 + $0x38] sm:$0xff]   ;;  %6863 = vmatprep.subr.bf16.mxu1 %v7441_v2  ;;  %v7446_v7 = vld [vmem:[#allocation6 + $0x30] sm:$0xff]  }
  0x65   : > { %452 = vst [vmem:[#allocation2 + $0xc] sm:$0xf] %v7918_v0  ;;  %453 = vst [vmem:[#allocation2 + $0x10] sm:$0xf] %v7918_v0  ;;  %v7443_v4 = vld [vmem:[#allocation6 + $0xb8] sm:$0xff]   ;;  %6752 = vmatpush3.bf16.msra.mxu0 %v7442_v3  ;;  %v7447_v8 = vld [vmem:[#allocation6 + $0xb0] sm:$0xff]  }
  0x66   : > { %454 = vst [vmem:[#allocation2 + $0x14] sm:$0x1] %v7918_v0  ;;  %455 = vst [vmem:[#allocation2 + $0x18] sm:$0xf] %v7918_v0  ;;  %6864 = vmatpush3.bf16.msra.mxu1 %v7443_v4  ;;  %6753 = vmatprep.subr.bf16.mxu0 %v7444_v5  ;;  %v7449_v10 = vld [vmem:[#allocation6 + $0xe8] sm:$0xff]   ;;  %v7452_v13 = vld [vmem:[#allocation6 + $0x60] sm:$0xff]  }
  0x67   : > { %456 = vst [vmem:[#allocation2 + $0x1c] sm:$0xf] %v7918_v0  ;;  %457 = vst [vmem:[#allocation2 + $0x20] sm:$0x1] %v7918_v0  ;;  %6865 = vmatprep.subr.bf16.mxu1 %v7445_v6  ;;  %v7450_v11 = vld [vmem:[#allocation6 + $0x28] sm:$0xff]   ;;  %v7453_v14 = vld [vmem:[#allocation6 + $0xe0] sm:$0xff]  }
  0x68   : > { %458 = vst [vmem:[#allocation2 + $0x24] sm:$0xf] %v7918_v0  ;;  %459 = vst [vmem:[#allocation2 + $0x28] sm:$0xf] %v7918_v0  ;;  %v7451_v12 = vld [vmem:[#allocation6 + $0xa8] sm:$0xff]   ;;  %v7454_v15 = vld [vmem:[#allocation6 + $0x20] sm:$0xff]  }
  0x69   : > { %460 = vst [vmem:[#allocation2 + $0x2c] sm:$0x1] %v7918_v0  ;;  %461 = vst [vmem:[#allocation2 + $0x30] sm:$0xf] %v7918_v0  ;;  %6754 = vmatpush3.bf16.msra.mxu0 %v7446_v7  ;;  %v7455_v16 = vld [vmem:[#allocation6 + $0xa0] sm:$0xff]   ;;  %v7456_v17 = vld [vmem:[#allocation6 + $0x58] sm:$0xff]  }
  0x6a   : > { %462 = vst [vmem:[#allocation2 + $0x34] sm:$0xf] %v7918_v0  ;;  %463 = vst [vmem:[#allocation2 + $0x38] sm:$0x1] %v7918_v0  ;;  %6866 = vmatpush3.bf16.msra.mxu1 %v7447_v8  ;;  %6755 = vmatprep.subr.bf16.mxu0 %v7448_v9  ;;  %v7457_v18 = vld [vmem:[#allocation6 + $0xd8] sm:$0xff]   ;;  %v7460_v21 = vld [vmem:[#allocation6 + $0x50] sm:$0xff]  }
  0x6b   : > { %464 = vst [vmem:[#allocation2 + $0x3c] sm:$0xf] %v7918_v0  ;;  %465 = vst [vmem:[#allocation2 + $0x40] sm:$0xf] %v7918_v0  ;;  %6867 = vmatprep.subr.bf16.mxu1 %v7449_v10  ;;  %v7458_v19 = vld [vmem:[#allocation6 + $0x18] sm:$0xff]   ;;  %v7461_v22 = vld [vmem:[#allocation6 + $0xd0] sm:$0xff]  }
  0x6c   : > { %466 = vst [vmem:[#allocation2 + $0x44] sm:$0x1] %v7918_v0  ;;  %467 = vst [vmem:[#allocation2 + $0x48] sm:$0xf] %v7918_v0  ;;  %v7459_v20 = vld [vmem:[#allocation6 + $0x98] sm:$0xff]   ;;  %v7462_v23 = vld [vmem:[#allocation6 + $0x10] sm:$0xff]  }
  0x6d   : > { %468 = vst [vmem:[#allocation2 + $0x4c] sm:$0xf] %v7918_v0  ;;  %469 = vst [vmem:[#allocation2 + $0x50] sm:$0x1] %v7918_v0  ;;  %6756 = vmatpush3.bf16.msra.mxu0 %v7450_v11  ;;  %v7463_v24 = vld [vmem:[#allocation6 + $0x90] sm:$0xff]   ;;  %v7464_v25 = vld [vmem:[#allocation6 + $0x48] sm:$0xff]  }
  0x6e   : > { %470 = vst [vmem:[#allocation2 + $0x54] sm:$0xf] %v7918_v0  ;;  %471 = vst [vmem:[#allocation2 + $0x58] sm:$0xf] %v7918_v0  ;;  %6868 = vmatpush3.bf16.msra.mxu1 %v7451_v12  ;;  %6757 = vmatprep.subr.bf16.mxu0 %v7452_v13  ;;  %vm1025_vm1 = vsmask.f32 7440 }
  0x6f   : > { %472 = vst [vmem:[#allocation2 + $0x5c] sm:$0x1] %v7918_v0  ;;  %473 = vst [vmem:[#allocation2 + $0x60] sm:$0xf] %v7918_v0  ;;  %6869 = vmatprep.subr.bf16.mxu1 %v7453_v14  ;;  %v7465_v26 = vld [vmem:[#allocation6 + $0xc8] sm:$0xff]   ;;  %v7468_v29 = vld [vmem:[#allocation6 + $0x40] sm:$0xff]  }
  0x70   : > { %474 = vst [vmem:[#allocation2 + $0x64] sm:$0xf] %v7918_v0  ;;  %475 = vst [vmem:[#allocation2 + $0x68] sm:$0x1] %v7918_v0  ;;  %vm860_vm2 = vsmask.f32 7938 }
  0x71   : > { %476 = vst [vmem:[#allocation2 + $0x6c] sm:$0xf] %v7918_v0  ;;  %477 = vst [vmem:[#allocation2 + $0x70] sm:$0xf] %v7918_v0  ;;  %6758 = vmatpush3.bf16.msra.mxu0 %v7454_v15  ;;  %v7466_v27 = vld [vmem:[#allocation6 + $0x8] sm:$0xff]   ;;  %v7469_v30 = vld [vmem:[#allocation6 + $0xc0] sm:$0xff]  }
  0x72   : > { %478 = vst [vmem:[#allocation2 + $0x74] sm:$0x1] %v7918_v0  ;;  %479 = vst [vmem:[#allocation2 + $0x78] sm:$0xf] %v7918_v0  ;;  %6870 = vmatpush3.bf16.msra.mxu1 %v7455_v16  ;;  %6759 = vmatprep.subr.bf16.mxu0 %v7456_v17  ;;  %v7467_v28 = vld [vmem:[#allocation6 + $0x88] sm:$0xff]   ;;  %v7470_v31 = vld [vmem:[#allocation6] sm:$0xff]  }
  0x73   : > { %480 = vst [vmem:[#allocation2 + $0x7c] sm:$0xf] %v7918_v0  ;;  %481 = vst [vmem:[#allocation2 + $0x80] sm:$0x1] %v7918_v0  ;;  %6871 = vmatprep.subr.bf16.mxu1 %v7457_v18  ;;  %vm535_vm3 = vsmask.f32 256 }
  0x74   : > { %482 = vst [vmem:[#allocation2 + $0x84] sm:$0xf] %v7918_v0  ;;  %483 = vst [vmem:[#allocation2 + $0x88] sm:$0xf] %v7918_v0  ;;  %vm536_vm4 = vsmask.f32 4368 }
  0x75   : > { %484 = vst [vmem:[#allocation2 + $0x8c] sm:$0x1] %v7918_v0  ;;  %485 = vst [vmem:[#allocation2 + $0x90] sm:$0xf] %v7918_v0  ;;  %6760 = vmatpush3.bf16.msra.mxu0 %v7458_v19  ;;  %v7471_v32 = vld [vmem:[#allocation6 + $0x80] sm:$0xff]   ;;  %vm859_vm5 = vcmask 1043456  }
  0x76   : > { %486 = vst [vmem:[#allocation2 + $0x94] sm:$0xf] %v7918_v0  ;;  %487 = vst [vmem:[#allocation2 + $0x98] sm:$0x1] %v7918_v0  ;;  %6872 = vmatpush3.bf16.msra.mxu1 %v7459_v20  ;;  %6761 = vmatprep.subr.bf16.mxu0 %v7460_v21  ;;  %v8137_v33 = vld [vmem:[#allocation2] sm:$0xf] }
  0x77   : > { %488 = vst [vmem:[#allocation2 + $0x9c] sm:$0xf] %v7918_v0  ;;  %489 = vst [vmem:[#allocation2 + $0xa0] sm:$0xf] %v7918_v0  ;;  %6873 = vmatprep.subr.bf16.mxu1 %v7461_v22  ;;  %v8139_v34 = vld [vmem:[#allocation2 + $0x4] sm:$0xf] }
  0x78   : > { %490 = vst [vmem:[#allocation2 + $0xa4] sm:$0x1] %v7918_v0  ;;  %491 = vst [vmem:[#allocation2 + $0xa8] sm:$0xf] %v7918_v0  ;;  %v8141_v35 = vld [vmem:[#allocation2 + $0x8] sm:$0x1]  ;;  %v6176_v9 = vcombine.low %v8137_v33, %v8139_v34 }
  0x79   : > { %492 = vst [vmem:[#allocation2 + $0xac] sm:$0xf] %v7918_v0  ;;  %493 = vst [vmem:[#allocation2 + $0xb0] sm:$0x1] %v7918_v0  ;;  %6762 = vmatpush3.bf16.msra.mxu0 %v7462_v23  ;;  %v1028_v36 = vshrl.u32 %v8137_v33, 16  ;;  %v1031_v37 = vshll.u32 %v8137_v33, 16 }
  0x7a   : > { %494 = vst [vmem:[#allocation2 + $0xb4] sm:$0xf] %v7918_v0  ;;  %495 = vst [vmem:[#allocation2 + $0xb8] sm:$0xf] %v7918_v0  ;;  %6874 = vmatpush3.bf16.msra.mxu1 %v7463_v24  ;;  %6763 = vmatprep.subr.bf16.mxu0 %v7464_v25  ;;  %v1037_v38 = vshll.u32 %v8139_v34, 16  ;;  %v1041_v39 = vshrl.u32 %v8139_v34, 16 }
  0x7b   : > { %496 = vst [vmem:[#allocation2 + $0xbc] sm:$0x1] %v7918_v0  ;;  %497 = vst [vmem:[#allocation2 + $0xc0] sm:$0xf] %v7918_v0  ;;  %6875 = vmatprep.subr.bf16.mxu1 %v7465_v26  ;;  %v503_v40 = vld [vmem:[%s8127_s22] sm:$0xf] }
  0x7c   : > { %498 = vst [vmem:[#allocation2 + $0xc4] sm:$0xf] %v7918_v0  ;;  %499 = vst [vmem:[#allocation2 + $0xc8] sm:$0x1] %v7918_v0  ;;  %v1047_v41 = vshll.u32 %v8141_v35, 16  ;;  %v539_v43 = vshrl.u32 %v503_v40, 16 }
  0x7d   : > { %500 = vst [vmem:[#allocation2 + $0xcc] sm:$0xf] %v7918_v0  ;;  %501 = vst [vmem:[#allocation2 + $0xd0] sm:$0xf] %v7918_v0  ;;  %6764 = vmatpush3.bf16.msra.mxu0 %v7466_v27  ;;  %v504_v42 = vld [vmem:[%s8127_s22 + $0x4] sm:$0xf] }
  0x7e   : > { %502 = vst [vmem:[#allocation2 + $0xd4] sm:$0x1] %v7918_v0  ;;  %6876 = vmatpush3.bf16.msra.mxu1 %v7467_v28  ;;  %6765 = vmatprep.subr.bf16.mxu0 %v7468_v29  ;;  %v542_v44 = vshll.u32 %v503_v40, 16  ;;  %vm866_vm6 = vcmask 1040384   ;;  %vm8152_vm7 = vmor %vm1024_vm0, %vm1025_vm1  ;;  %v1030_v46 = vrot.slane %v1028_v36, 4  ;;  %v1033_v47 = vrot.slane %v1031_v37, 5 }
  0x7f   : > { %6877 = vmatprep.subr.bf16.mxu1 %v7469_v30  ;;  %v1039_v48 = vrot.slane %v1037_v38, 5  ;;  %v1043_v49 = vrot.slane %v1041_v39, 4  ;;  %v541_v50 = vrot.slane %v539_v43, 7  ;;  %v547_v51 = vshrl.u32 %v504_v42, 16  ;;  %vm8158_vm8 = vmand %vm859_vm5, %vm860_vm2  ;;  %v862_v54 = vld [vmem:[#allocation2 + $0xc] sm:$0xf] }
  0x80   : > { %v550_v52 = vshll.u32 %v504_v42, 16  ;;  %vm1475_vm9 = vcmask 1042432   ;;  %v1034_v55 = vor.u32 %v1033_v47, %v1030_v46  ;;  %v1049_v57 = vrot.slane %v1047_v41, 5  ;;  %v7474_v58 = vld [vmem:[#allocation6 + $0x178] sm:$0xff]   ;;  %vm8164_vm10 = vmor %vm535_vm3, %vm536_vm4  ;;  %v1411_v10 = vld [vmem:[#allocation2] sm:$0xe] }
  0x81   : > { %6766 = vmatpush3.bf16.msra.mxu0 %v7470_v31  ;;  %v1044_v56 = vor.u32 %v1043_v49, %v1039_v48  ;;  %v544_v60 = vor.u32 %v542_v44, %v541_v50  ;;  %v545_v61 = vrot.slane %v541_v50, 4  ;;  %v549_v62 = vrot.slane %v547_v51, 7  ;;  %vm8171_vm11 = vmand %vm866_vm6, %vm535_vm3  ;;  %v7476_v6 = vld [vmem:[#allocation6 + $0x1f8] sm:$0xff]   ;;  %v505_v16 = vld [vmem:[%s8127_s22 + $0x8] sm:$0xf]  ;;  %s10105_s27 = scalar_lea.vmem [#allocation9], %s8123_s15 }
  0x82   : > { %6878 = vmatpush3.bf16.msra.mxu1 %v7471_v32  ;;  %v1480_v63 = vrot.slane %v8139_v34, 5  ;;  %v1035_v0 = vrot.slane %v1034_v55, 4  ;;  %v10965_v2 = vmov 0  ;;  %6975 = vmatprep.subr.bf16.mxu0 %v7474_v58  ;;  %v868_v11 = vld [vmem:[#allocation2 + $0x14] sm:$0x1]  ;;  %vm1476_vm12 = vcmask 1046532  }
  0x83   : > { %v1045_v1 = vrot.slane %v1044_v56, 4  ;;  %v10966_v2 = vsel %vm8171_vm11, 4294967295, %v10965_v2  ;;  %v552_v3 = vor.u32 %v550_v52, %v549_v62  ;;  %v554_v4 = vrot.slane %v549_v62, 4  ;;  %v7475_v14 = vld [vmem:[#allocation6 + $0x138] sm:$0xff]   ;;  %7087 = vmatprep.subr.bf16.mxu1 %v7476_v6  ;;  %v506_v17 = vld [vmem:[%s8127_s22 + $0xc] sm:$0xf]  ;;  %vm8192_vm13 = vmor %vm1475_vm9, %vm1476_vm12 }
  0x84   : > { %10967 = vst [vmem:[#allocation26_spill] sm:$0xff] %v10966_v2  ;;  %v863_v5 = vsel %vm8158_vm8, %v544_v60, %v862_v54  ;;  %v1040_v7 = vsel %vm8152_vm7, %v1035_v0, %v1039_v48  ;;  %v556_v18 = vshrl.u32 %v505_v16, 16  ;;  %v559_v19 = vshll.u32 %v505_v16, 16  ;;  %v7482_v21 = vld [vmem:[#allocation6 + $0x170] sm:$0xff]   ;;  %v871_v29 = vld [vmem:[#allocation2 + $0x18] sm:$0xf] }
  0x85   : > { %v1050_v8 = vsel %vm8152_vm7, %v1045_v1, %v1049_v57  ;;  %864 = vst [vmem:[#allocation2 + $0xc] sm:$0xf] %v863_v5  ;;  %v553_v13 = vsel %vm8164_vm10, %v545_v61, %v552_v3  ;;  %v869_v15 = vsel %vm8171_vm11, %v554_v4, %v868_v11  ;;  %v564_v20 = vshrl.u32 %v506_v17, 16  ;;  %v875_v30 = vld [vmem:[#allocation2 + $0x20] sm:$0x1]  ;;  %v7483_v31 = vld [vmem:[#allocation6 + $0x130] sm:$0xff]  }
  0x86   : > { %v6192_v12 = vcombine.low %v1040_v7, %v1050_v8  ;;  %865 = vst [vmem:[#allocation2 + $0x10] sm:$0xf] %v553_v13  ;;  %870 = vst [vmem:[#allocation2 + $0x14] sm:$0x1] %v869_v15  ;;  %v1483_v22 = vrot.slane %v8141_v35, 5  ;;  %v6128_v23 = vrot.slane %v1411_v10, 9 }
  0x87   : > { %v1482_v24 = vrot.slane %v1480_v63, 4  ;;  %v567_v25 = vshll.u32 %v506_v17, 16  ;;  %v558_v27 = vrot.slane %v556_v18, 7  ;;  %v566_v28 = vrot.slane %v564_v20, 7  ;;  %v8203_v40 = vld [vmem:[%s8127_s22 + $0x10] sm:$0xf] }
  0x88   : > { %4046 = vmatprep.mubr.bf16.mxu0 %v6192_v12  ;;  %v1481_v37 = vsel %vm8192_vm13, %v6128_v23, %v1480_v63  ;;  %v7477_v57 = vld [vmem:[#allocation6 + $0x1b8] sm:$0xff]   ;;  %v573_v1 = vshrl.u32 %v8203_v40, 16  ;;  %v7484_v3 = vld [vmem:[#allocation6 + $0x1f0] sm:$0xff]   ;;  %v576_v8 = vshll.u32 %v8203_v40, 16  ;;  %v7490_v13 = vld [vmem:[#allocation6 + $0x168] sm:$0xff]   ;;  %s10139_s12 = scalar_lea.vmem [#allocation10], %s8123_s15 }
  0x89   : > { %4047 = vmatmul.mubr.bf16.vlgmr.msra.gmra.mxu0 %v6176_v9  ;;  %v561_v32 = vor.u32 %v559_v19, %v558_v27  ;;  %v562_v33 = vrot.slane %v558_v27, 4  ;;  %v569_v34 = vor.u32 %v567_v25, %v566_v28  ;;  %v571_v35 = vrot.slane %v566_v28, 4  ;;  %v8223_v7 = vld [vmem:[%s8127_s22 + $0x14] sm:$0xf]  ;;  %v7491_v23 = vld [vmem:[#allocation6 + $0x128] sm:$0xff]   ;;  %s6559_s18 = sshll.u32 %s8003_s17, 11 }
  0x8a   : > { %6976 = vmatpush3.bf16.msra.mxu0 %v7475_v14  ;;  %v1484_v38 = vsel %vm8192_vm13, %v1482_v24, %v1483_v22  ;;  %v7485_v18 = vld [vmem:[#allocation6 + $0x1b0] sm:$0xff]   ;;  %v8236_v22 = vrot.slane %v573_v1, 7  ;;  %s10449_s1 = scalar_lea.hbm %s10882_s5, %s6559_s18  ;;  %s5816_s19 = sshll.u32 %s10105_s27, 4  ;;  %s10461_s19 = int_to_ptr.vmem [resolvable:$true] %s5816_s19 }
  0x8b   : > { %6977 = vmatprep.subr.bf16.mxu0 %v7482_v21  ;;  %v570_v49 = vsel %vm8164_vm10, %v562_v33, %v569_v34  ;;  %v872_v50 = vsel %vm8158_vm8, %v561_v32, %v871_v29  ;;  %v876_v51 = vsel %vm8171_vm11, %v571_v35, %v875_v30  ;;  %v6208_v56 = vcombine.low %v1481_v37, %v1484_v38  ;;  %v7492_v30 = vld [vmem:[#allocation6 + $0x1e8] sm:$0xff]   ;;  %s5782_s21 = scalar_lea.sflag [#allocation5], %s8120_s11  ;;  %s7701_s28 = scalar_lea.vmem %s10461_s19, 2048 }
  0x8c   : > { %v1590_v36 = vld [vmem:[#allocation2 + $0xc] sm:$0xf]  ;;  %873 = vst [vmem:[#allocation2 + $0x18] sm:$0xf] %v872_v50  ;;  %874 = vst [vmem:[#allocation2 + $0x1c] sm:$0xf] %v570_v49  ;;  %p7702_p5 = scmp.ne.s32.totalorder %s10461_s19, %s7701_s28 }
  0x8d   : > { %v8200_v39 = vld [vmem:[#allocation2 + $0xc] sm:$0xf]  ;;  %v1639_v41 = vshrl.u32 %v1590_v36, 16  ;;  %v1642_v42 = vshll.u32 %v1590_v36, 16  ;;  %v8207_v46 = vld [vmem:[#allocation2 + $0x10] sm:$0xf] }
  0x8e   : > { %v1052_v43 = vshrl.u32 %v8200_v39, 16  ;;  %v1055_v44 = vshll.u32 %v8200_v39, 16  ;;  %v8209_v47 = vld [vmem:[#allocation2 + $0x10] sm:$0xf]  ;;  %v1009_v48 = vld [vmem:[#allocation2 + $0x14] sm:$0x1]  ;;  %6978 = vmatpush3.bf16.msra.mxu0 %v7483_v31  ;;  %v6224_v58 = vcombine.low %v1590_v36, %v8207_v46 }
  0x8f   : > { %v1641_v52 = vrot.slane %v1639_v41, 4  ;;  %v1644_v54 = vrot.slane %v1642_v42, 5  ;;  %v1648_v55 = vshll.u32 %v8207_v46, 16  ;;  %877 = vst [vmem:[#allocation2 + $0x20] sm:$0x1] %v876_v51  ;;  %v1061_v0 = vshll.u32 %v8209_v47, 16  ;;  %6979 = vmatprep.subr.bf16.mxu0 %v7490_v13 }
  0x90   : > { %v1054_v60 = vrot.slane %v1052_v43, 4  ;;  %v1057_v61 = vrot.slane %v1055_v44, 5  ;;  %v1412_v62 = vld [vmem:[#allocation2 + $0xc] sm:$0xe]  ;;  %4207 = vmatprep.mubr.bf16.mxu1 %v6224_v58  ;;  %v1065_v5 = vshrl.u32 %v8209_v47, 16  ;;  %v1071_v6 = vshll.u32 %v1009_v48, 16 }
  0x91   : > { %v1645_v63 = vor.u32 %v1644_v54, %v1641_v52  ;;  %v8228_v10 = vrot.slane %v1648_v55, 5  ;;  %4208 = vmatmul.mubr.bf16.vlgmr.msra.gmra.mxu1 %v6208_v56  ;;  %v1063_v11 = vrot.slane %v1061_v0, 5  ;;  %v6129_v12 = vrot.slane %v1412_v62, 9  ;;  %v7493_v36 = vld [vmem:[#allocation6 + $0x1a8] sm:$0xff]   ;;  %v7498_v52 = vld [vmem:[#allocation6 + $0x160] sm:$0xff]   ;;  %p11164_p2 = scmp.ne.s32.totalorder %s10950_s30, 0 }
  0x92   : > { %v1058_v4 = vor.u32 %v1057_v61, %v1054_v60  ;;  %v1652_v14 = vshrl.u32 %v8207_v46, 16  ;;  %7088 = vmatpush3.bf16.msra.mxu1 %v7477_v57  ;;  %v1067_v16 = vrot.slane %v1065_v5, 4  ;;  %v1487_v17 = vrot.slane %v8209_v47, 5  ;;  %6980 = vmatpush3.bf16.msra.mxu0 %v7491_v23  ;;  %v878_v51 = vld [vmem:[#allocation2 + $0x24] sm:$0xf]  ;;  %v7499_v60 = vld [vmem:[#allocation6 + $0x120] sm:$0xff]  }
  0x93   : > { %v8226_v9 = vrot.slane %v1645_v63, 4  ;;  %v1073_v20 = vrot.slane %v1071_v6, 5  ;;  %v1490_v21 = vrot.slane %v1009_v48, 5  ;;  %7089 = vmatprep.subr.bf16.mxu1 %v7484_v3  ;;  %v8238_v25 = vld [vmem:[#allocation2 + $0x18] sm:$0xf]  ;;  %v581_v34 = vshrl.u32 %v8223_v7, 16  ;;  %6981 = vmatprep.subr.bf16.mxu0 %v7498_v52  ;;  %p7703_p7 = pnand %p7702_p5, %p11164_p2 }
  0x94   : > { %v1059_v15 = vrot.slane %v1058_v4, 4  ;;  %v1068_v24 = vor.u32 %v1067_v16, %v1063_v11  ;;  %v8240_v27 = vld [vmem:[#allocation2 + $0x1c] sm:$0xf]  ;;  %v1488_v28 = vsel %vm8192_vm13, %v6129_v12, %v1487_v17  ;;  %v1489_v29 = vrot.slane %v1487_v17, 4  ;;  %v8248_v33 = vld [vmem:[#allocation2 + $0x18] sm:$0xf] }
  0x95   : > { %v6225_v32 = vcombine.low %v8238_v25, %v8240_v27  ;;  %v584_v35 = vshll.u32 %v8223_v7, 16  ;;  %v8254_v40 = vld [vmem:[#allocation2 + $0x1c] sm:$0xf]  ;;  %v1076_v42 = vshrl.u32 %v8248_v33, 16  ;;  %v578_v43 = vor.u32 %v576_v8, %v8236_v22  ;;  %v1413_v58 = vld [vmem:[#allocation2 + $0x18] sm:$0xe]  ;;  %p7704_p12 = pneg %p7703_p7 }
  0x96   : > { %v1064_v31 = vsel %vm8152_vm7, %v1059_v15, %v1063_v11  ;;  %v1069_v37 = vrot.slane %v1068_v24, 4  ;;  %v1491_v38 = vsel %vm8192_vm13, %v1489_v29, %v1490_v21  ;;  %v8256_v41 = vld [vmem:[#allocation2 + $0x20] sm:$0x1]  ;;  %7090 = vmatpush3.bf16.msra.mxu1 %v7485_v18  ;;  %v1654_v44 = vrot.slane %v1652_v14, 4  ;;  %v509_v63 = vld [vmem:[%s8127_s22 + $0x18] sm:$0xf]  ;;  %6982 = vmatpush3.bf16.msra.mxu0 %v7499_v60 }
  0x97   : > { %4215 = vmatprep.mubr.bf16.mxu1 %v6225_v32  ;;  %v6177_v48 = vcombine.low %v8200_v39, %v8209_v47  ;;  %v6209_v49 = vcombine.low %v1488_v28, %v1491_v38  ;;  %v1079_v50 = vshll.u32 %v8248_v33, 16  ;;  %7091 = vmatprep.subr.bf16.mxu1 %v7492_v30  ;;  %v1078_v55 = vrot.slane %v1076_v42, 4  ;;  %v7500_v0 = vld [vmem:[#allocation6 + $0x1e0] sm:$0xff]   ;;  %v882_v6 = vld [vmem:[#allocation2 + $0x2c] sm:$0x1]  ;;  %s7919_s29 = smov [#allocation9]  }
  0x98   : > { %v1074_v54 = vsel %vm8152_vm7, %v1069_v37, %v1073_v20  ;;  %v1085_v56 = vshll.u32 %v8254_v40, 16  ;;  %v1089_v57 = vshrl.u32 %v8254_v40, 16  ;;  %v1095_v47 = vshll.u32 %v8256_v41, 16  ;;  %v510_v7 = vld [vmem:[%s8127_s22 + $0x1c] sm:$0xf]  ;;  %v7501_v8 = vld [vmem:[#allocation6 + $0x1a0] sm:$0xff]  }
  0x99   : > { %v6193_v61 = vcombine.low %v1064_v31, %v1074_v54  ;;  %4216 = vmatmul.mubr.bf16.gmra.mxu1 %v6209_v49  ;;  %v1081_v39 = vrot.slane %v1079_v50, 5  ;;  %v579_v62 = vrot.slane %v8236_v22, 4  ;;  %v583_v4 = vrot.slane %v581_v34, 7  ;;  %v8276_v20 = vld [vmem:[%s8127_s22 + $0x20] sm:$0xf]  ;;  %v7506_v50 = vld [vmem:[#allocation6 + $0x158] sm:$0xff]  }
  0x9a   : > { %v1087_v1 = vrot.slane %v1085_v56, 5  ;;  %v1091_v3 = vrot.slane %v1089_v57, 4  ;;  %v879_v5 = vsel %vm8158_vm8, %v578_v43, %v878_v51  ;;  %7092 = vmatpush3.bf16.msra.mxu1 %v7493_v36  ;;  %v1655_v11 = vor.u32 %v1654_v44, %v8228_v10  ;;  %v889_v60 = vld [vmem:[#allocation2 + $0x38] sm:$0x1]  ;;  %6983 = vmatprep.subr.bf16.mxu0 %v7506_v50  ;;  %s7705_s24 = sshll.u32 %s7919_s29, 4  ;;  %s7706_s24 = int_to_ptr.vmem [resolvable:$false] %s7705_s24 }
  0x9b   : > { %4054 = vmatprep.mubr.bf16.mxu0 %v6193_v61  ;;  %v1082_v12 = vor.u32 %v1081_v39, %v1078_v55  ;;  %v1097_v13 = vrot.slane %v1095_v47, 5  ;;  %880 = vst [vmem:[#allocation2 + $0x24] sm:$0xf] %v879_v5  ;;  %v6130_v14 = vrot.slane %v1413_v58, 9  ;;  %7093 = vmatprep.subr.bf16.mxu1 %v7500_v0  ;;  %v586_v16 = vor.u32 %v584_v35, %v583_v4  ;;  %s7707_s25 = scalar_lea.vmem %s7706_s24, 4096  ;;  %p7708_p13 = scmp.lt.s32.totalorder %s10461_s19, %s7706_s24 }
  0x9c   : > { %4055 = vmatmul.mubr.bf16.gmra.mxu0 %v6177_v48  ;;  %v1092_v15 = vor.u32 %v1091_v3, %v1087_v1  ;;  %v588_v17 = vrot.slane %v583_v4, 4  ;;  %v1494_v18 = vrot.slane %v8254_v40, 5  ;;  %v1497_v22 = vrot.slane %v8256_v41, 5  ;;  %v885_v48 = vld [vmem:[#allocation2 + $0x30] sm:$0xf]  ;;  %p7709_p0 = scmp.lt.s32.totalorder %s7707_s25, %s7701_s28 }
  0x9d   : > { %v1083_v21 = vrot.slane %v1082_v12, 4  ;;  %v590_v23 = vshrl.u32 %v509_v63, 16  ;;  %v593_v24 = vshll.u32 %v509_v63, 16  ;;  %v587_v29 = vsel %vm8164_vm10, %v579_v62, %v586_v16 }
  0x9e   : > { %v1093_v28 = vrot.slane %v1092_v15, 4  ;;  %v1496_v30 = vrot.slane %v1494_v18, 4  ;;  %7094 = vmatpush3.bf16.msra.mxu1 %v7501_v8  ;;  %881 = vst [vmem:[#allocation2 + $0x28] sm:$0xf] %v587_v29  ;;  %v883_v32 = vsel %vm8171_vm11, %v588_v17, %v882_v6  ;;  %v598_v35 = vshrl.u32 %v510_v7, 16  ;;  %p7710_p10 = por %p7709_p0, %p7708_p13 }
  0x9f   : > { %v1088_v31 = vsel %vm8152_vm7, %v1083_v21, %v1087_v1  ;;  %v592_v34 = vrot.slane %v590_v23, 7  ;;  %v6178_v38 = vcombine.low %v8248_v33, %v8254_v40  ;;  %884 = vst [vmem:[#allocation2 + $0x2c] sm:$0x1] %v883_v32  ;;  %v601_v41 = vshll.u32 %v510_v7, 16  ;;  %v7508_v32 = vld [vmem:[#allocation6 + $0x1d8] sm:$0xff]  }
  0xa0   : > { %v1098_v37 = vsel %vm8152_vm7, %v1093_v28, %v1097_v13  ;;  %v8290_v42 = vrot.slane %v1655_v11, 4  ;;  %v607_v49 = vshrl.u32 %v8276_v20, 16  ;;  %v1495_v51 = vsel %vm8192_vm13, %v6130_v14, %v1494_v18  ;;  %v892_v13 = vld [vmem:[#allocation2 + $0x3c] sm:$0xf]  ;;  %v7507_v28 = vld [vmem:[#allocation6 + $0x118] sm:$0xff]   ;;  %7095 = vmatprep.subr.bf16.mxu1 %v7508_v32  ;;  %p7711_p3 = pnand %p7710_p10, %p7704_p12 }
  0xa1   : > { %v6194_v43 = vcombine.low %v1088_v31, %v1098_v37  ;;  %v595_v44 = vor.u32 %v593_v24, %v592_v34  ;;  %v1498_v52 = vsel %vm8192_vm13, %v1496_v30, %v1497_v22  ;;  %v596_v55 = vrot.slane %v592_v34, 4  ;;  %v8326_v24 = vld [vmem:[%s8127_s22 + $0x24] sm:$0xf]  ;;  %6984 = vmatpush3.bf16.msra.mxu0 %v7507_v28 }
  0xa2   : > { %v8297_v54 = vld [vmem:[#allocation2 + $0x24] sm:$0xf]  ;;  %v600_v33 = vrot.slane %v598_v35, 7  ;;  %v1663_v40 = vshrl.u32 %v8238_v25, 16  ;;  %v1666_v56 = vshll.u32 %v8238_v25, 16  ;;  %v6210_v1 = vcombine.low %v1495_v51, %v1498_v52 }
  0xa3   : > { %4062 = vmatprep.mubr.bf16.mxu0 %v6194_v43  ;;  %v1100_v57 = vshrl.u32 %v8297_v54, 16  ;;  %v1103_v58 = vshll.u32 %v8297_v54, 16  ;;  %v8304_v39 = vld [vmem:[#allocation2 + $0x24] sm:$0xf]  ;;  %v886_v63 = vsel %vm8158_vm8, %v595_v44, %v885_v48  ;;  %v8308_v4 = vrot.slane %v607_v49, 7 }
  0xa4   : > { %4063 = vmatmul.mubr.bf16.gmra.mxu0 %v6178_v38  ;;  %v603_v47 = vor.u32 %v601_v41, %v600_v33  ;;  %v605_v62 = vrot.slane %v600_v33, 4  ;;  %v1414_v0 = vld [vmem:[#allocation2 + $0x24] sm:$0xe]  ;;  %887 = vst [vmem:[#allocation2 + $0x30] sm:$0xf] %v886_v63  ;;  %v1687_v6 = vshrl.u32 %v8304_v39, 16 }
  0xa5   : > { %v1102_v25 = vrot.slane %v1100_v57, 4  ;;  %v1105_v3 = vrot.slane %v1103_v58, 5  ;;  %v8310_v5 = vld [vmem:[#allocation2 + $0x28] sm:$0xf]  ;;  %v610_v12 = vshll.u32 %v8276_v20, 16  ;;  %v6131_v18 = vrot.slane %v1414_v0, 9 }
  0xa6   : > { %v8313_v7 = vld [vmem:[#allocation2 + $0x28] sm:$0xf]  ;;  %v604_v8 = vsel %vm8164_vm10, %v596_v55, %v603_v47  ;;  %v890_v11 = vsel %vm8171_vm11, %v605_v62, %v889_v60  ;;  %v6226_v14 = vcombine.low %v8304_v39, %v8310_v5  ;;  %v1011_v15 = vld [vmem:[#allocation2 + $0x2c] sm:$0x1]  ;;  %v8328_v20 = vrot.slane %v1663_v40, 4  ;;  %v7509_v38 = vld [vmem:[#allocation6 + $0x198] sm:$0xff]  }
  0xa7   : > { %v1106_v16 = vor.u32 %v1105_v3, %v1102_v25  ;;  %v1109_v17 = vshll.u32 %v8313_v7, 16  ;;  %888 = vst [vmem:[#allocation2 + $0x34] sm:$0xf] %v604_v8  ;;  %891 = vst [vmem:[#allocation2 + $0x38] sm:$0x1] %v890_v11  ;;  %v1113_v21 = vshrl.u32 %v8313_v7, 16  ;;  %v612_v31 = vor.u32 %v610_v12, %v8308_v4  ;;  %7096 = vmatpush3.bf16.msra.mxu1 %v7509_v38 }
  0xa8   : > { %v1119_v22 = vshll.u32 %v1011_v15, 16  ;;  %v1501_v23 = vrot.slane %v8313_v7, 5  ;;  %4223 = vmatprep.mubr.bf16.mxu1 %v6226_v14  ;;  %v1504_v30 = vrot.slane %v1011_v15, 5  ;;  %v8331_v41 = vrot.slane %v1666_v56, 5  ;;  %v7514_v60 = vld [vmem:[#allocation6 + $0x150] sm:$0xff]   ;;  %v7522_v38 = vld [vmem:[#allocation6 + $0x148] sm:$0xff]  }
  0xa9   : > { %v1111_v29 = vrot.slane %v1109_v17, 5  ;;  %4224 = vmatmul.mubr.bf16.gmra.mxu1 %v6210_v1  ;;  %v1107_v34 = vrot.slane %v1106_v16, 4  ;;  %v1115_v35 = vrot.slane %v1113_v21, 4  ;;  %v1690_v43 = vshll.u32 %v8304_v39, 16  ;;  %6985 = vmatprep.subr.bf16.mxu0 %v7514_v60  ;;  %v7516_v14 = vld [vmem:[#allocation6 + $0x1d0] sm:$0xff]  }
  0xaa   : > { %v1503_v37 = vrot.slane %v1501_v23, 4  ;;  %v1502_v44 = vsel %vm8192_vm13, %v6131_v18, %v1501_v23  ;;  %v893_v48 = vsel %vm8158_vm8, %v612_v31, %v892_v13  ;;  %v8338_v49 = vrot.slane %v1687_v6, 4  ;;  %7097 = vmatprep.subr.bf16.mxu1 %v7516_v14 }
  0xab   : > { %v1116_v50 = vor.u32 %v1115_v35, %v1111_v29  ;;  %v1121_v51 = vrot.slane %v1119_v22, 5  ;;  %v1596_v52 = vld [vmem:[#allocation2 + $0x30] sm:$0xf]  ;;  %894 = vst [vmem:[#allocation2 + $0x3c] sm:$0xf] %v893_v48  ;;  %v6179_v40 = vcombine.low %v8297_v54, %v8313_v7  ;;  %v613_v57 = vrot.slane %v8308_v4, 4 }
  0xac   : > { %v1505_v55 = vsel %vm8192_vm13, %v1503_v37, %v1504_v30  ;;  %v8342_v33 = vld [vmem:[#allocation2 + $0x30] sm:$0xf]  ;;  %v615_v58 = vshrl.u32 %v8326_v24, 16  ;;  %v1112_v39 = vsel %vm8152_vm7, %v1107_v34, %v1111_v29  ;;  %v1711_v25 = vshrl.u32 %v1596_v52, 16  ;;  %v7515_v7 = vld [vmem:[#allocation6 + $0x110] sm:$0xff]  }
  0xad   : > { %v1124_v56 = vshrl.u32 %v8342_v33, 16  ;;  %v1117_v47 = vrot.slane %v1116_v50, 4  ;;  %v6211_v63 = vcombine.low %v1502_v44, %v1505_v55  ;;  %v1127_v1 = vshll.u32 %v8342_v33, 16  ;;  %v1415_v21 = vld [vmem:[#allocation2 + $0x30] sm:$0xe]  ;;  %6986 = vmatpush3.bf16.msra.mxu0 %v7515_v7  ;;  %v7517_v22 = vld [vmem:[#allocation6 + $0x190] sm:$0xff]  }
  0xae   : > { %v8351_v62 = vld [vmem:[#allocation2 + $0x34] sm:$0xf]  ;;  %v1714_v54 = vshll.u32 %v1596_v52, 16  ;;  %v8357_v6 = vld [vmem:[#allocation2 + $0x38] sm:$0x1]  ;;  %v618_v4 = vshll.u32 %v8326_v24, 16  ;;  %7098 = vmatpush3.bf16.msra.mxu1 %v7517_v22  ;;  %6987 = vmatprep.subr.bf16.mxu0 %v7522_v38 }
  0xaf   : > { %v8353_v0 = vld [vmem:[#allocation2 + $0x34] sm:$0xf]  ;;  %v6227_v3 = vcombine.low %v1596_v52, %v8351_v62  ;;  %v1122_v8 = vsel %vm8152_vm7, %v1117_v47, %v1121_v51  ;;  %v1126_v11 = vrot.slane %v1124_v56, 4  ;;  %v1129_v12 = vrot.slane %v1127_v1, 5  ;;  %v896_v30 = vld [vmem:[#allocation2 + $0x44] sm:$0x1] }
  0xb0   : > { %v1133_v13 = vshll.u32 %v8353_v0, 16  ;;  %v6195_v15 = vcombine.low %v1112_v39, %v1122_v8  ;;  %v1137_v16 = vshrl.u32 %v8353_v0, 16  ;;  %v1143_v17 = vshll.u32 %v8357_v6, 16  ;;  %v513_v37 = vld [vmem:[%s8127_s22 + $0x28] sm:$0xf] }
  0xb1   : > { %4231 = vmatprep.mubr.bf16.mxu1 %v6227_v3  ;;  %v617_v18 = vrot.slane %v615_v58, 7  ;;  %v8365_v23 = vrot.slane %v1690_v43, 5  ;;  %v1130_v28 = vor.u32 %v1129_v12, %v1126_v11  ;;  %v8368_v31 = vrot.slane %v1711_v25, 4  ;;  %v514_v39 = vld [vmem:[%s8127_s22 + $0x2c] sm:$0xf] }
  0xb2   : > { %4232 = vmatmul.mubr.bf16.gmra.mxu1 %v6211_v63  ;;  %v1135_v29 = vrot.slane %v1133_v13, 5  ;;  %4070 = vmatprep.mubr.bf16.mxu0 %v6195_v15  ;;  %v1139_v32 = vrot.slane %v1137_v16, 4  ;;  %v8371_v44 = vrot.slane %v1714_v54, 5  ;;  %v6132_v48 = vrot.slane %v1415_v21, 9  ;;  %v8374_v51 = vld [vmem:[#allocation2 + $0x3c] sm:$0xf] }
  0xb3   : > { %v620_v34 = vor.u32 %v618_v4, %v617_v18  ;;  %v622_v35 = vrot.slane %v617_v18, 4  ;;  %4071 = vmatmul.mubr.bf16.gmra.mxu0 %v6179_v40  ;;  %v1131_v43 = vrot.slane %v1130_v28, 4  ;;  %v1508_v50 = vrot.slane %v8353_v0, 5  ;;  %v8378_v58 = vld [vmem:[#allocation2 + $0x3c] sm:$0xf]  ;;  %v7523_v47 = vld [vmem:[#allocation6 + $0x108] sm:$0xff]  }
  0xb4   : > { %v1140_v52 = vor.u32 %v1139_v32, %v1135_v29  ;;  %v1145_v55 = vrot.slane %v1143_v17, 5  ;;  %v1735_v63 = vshrl.u32 %v8378_v58, 16  ;;  %v6180_v1 = vcombine.low %v8342_v33, %v8353_v0  ;;  %6988 = vmatpush3.bf16.msra.mxu0 %v7523_v47  ;;  %v515_v13 = vld [vmem:[%s8127_s22 + $0x30] sm:$0xf]  ;;  %v1416_v22 = vld [vmem:[#allocation2 + $0x3c] sm:$0xe] }
  0xb5   : > { %v621_v56 = vsel %vm8164_vm10, %v613_v57, %v620_v34  ;;  %v897_v60 = vsel %vm8171_vm11, %v622_v35, %v896_v30  ;;  %v1136_v40 = vsel %vm8152_vm7, %v1131_v43, %v1135_v29  ;;  %v1511_v57 = vrot.slane %v8357_v6, 5  ;;  %v899_v21 = vld [vmem:[#allocation2 + $0x48] sm:$0xf]  ;;  %v7524_v29 = vld [vmem:[#allocation6 + $0x1c8] sm:$0xff]  }
  0xb6   : > { %895 = vst [vmem:[#allocation2 + $0x40] sm:$0xf] %v621_v56  ;;  %898 = vst [vmem:[#allocation2 + $0x44] sm:$0x1] %v897_v60  ;;  %v1141_v25 = vrot.slane %v1140_v52, 4  ;;  %v1510_v54 = vrot.slane %v1508_v50, 4  ;;  %v1509_v33 = vsel %vm8192_vm13, %v6132_v48, %v1508_v50  ;;  %7099 = vmatprep.subr.bf16.mxu1 %v7524_v29 }
  0xb7   : > { %v1148_v3 = vshrl.u32 %v8374_v51, 16  ;;  %v1151_v4 = vshll.u32 %v8374_v51, 16  ;;  %v624_v7 = vshrl.u32 %v513_v37, 16  ;;  %v627_v8 = vshll.u32 %v513_v37, 16  ;;  %v903_v37 = vld [vmem:[#allocation2 + $0x50] sm:$0x1] }
  0xb8   : > { %v632_v11 = vshrl.u32 %v514_v39, 16  ;;  %v635_v12 = vshll.u32 %v514_v39, 16  ;;  %v1146_v14 = vsel %vm8152_vm7, %v1141_v25, %v1145_v55  ;;  %v1512_v16 = vsel %vm8192_vm13, %v1510_v54, %v1511_v57  ;;  %v7525_v47 = vld [vmem:[#allocation6 + $0x188] sm:$0xff]   ;;  %v516_v54 = vld [vmem:[%s8127_s22 + $0x34] sm:$0xf] }
  0xb9   : > { %v1150_v0 = vrot.slane %v1148_v3, 4  ;;  %v1153_v6 = vrot.slane %v1151_v4, 5  ;;  %v6196_v15 = vcombine.low %v1136_v40, %v1146_v14  ;;  %v626_v17 = vrot.slane %v624_v7, 7  ;;  %7100 = vmatpush3.bf16.msra.mxu1 %v7525_v47 }
  0xba   : > { %v634_v18 = vrot.slane %v632_v11, 7  ;;  %v641_v28 = vshrl.u32 %v515_v13, 16  ;;  %v6212_v43 = vcombine.low %v1509_v33, %v1512_v16  ;;  %v1738_v55 = vshll.u32 %v8378_v58, 16  ;;  %v7530_v11 = vld [vmem:[#allocation6 + $0x140] sm:$0xff]  }
  0xbb   : > { %4078 = vmatprep.mubr.bf16.mxu0 %v6196_v15  ;;  %v629_v30 = vor.u32 %v627_v8, %v626_v17  ;;  %v630_v32 = vrot.slane %v626_v17, 4  ;;  %v1154_v52 = vor.u32 %v1153_v6, %v1150_v0  ;;  %v644_v39 = vshll.u32 %v515_v13, 16  ;;  %v8418_v0 = vld [vmem:[%s8127_s22 + $0x38] sm:$0xf]  ;;  %v7531_v6 = vld [vmem:[#allocation6 + $0x100] sm:$0xff]   ;;  %6989 = vmatprep.subr.bf16.mxu0 %v7530_v11 }
  0xbc   : > { %v637_v34 = vor.u32 %v635_v12, %v634_v18  ;;  %v639_v35 = vrot.slane %v634_v18, 4  ;;  %4079 = vmatmul.mubr.bf16.gmra.mxu0 %v6180_v1  ;;  %v6133_v4 = vrot.slane %v1416_v22, 9  ;;  %v8415_v33 = vrot.slane %v641_v28, 7  ;;  %v931_v15 = vld [vmem:[#allocation2 + $0x80] sm:$0x1] }
  0xbd   : > { %v8398_v38 = vld [vmem:[#allocation2 + $0x40] sm:$0xf]  ;;  %v1013_v50 = vld [vmem:[#allocation2 + $0x44] sm:$0x1]  ;;  %v900_v25 = vsel %vm8158_vm8, %v629_v30, %v899_v21  ;;  %v1155_v12 = vrot.slane %v1154_v52, 4  ;;  %v8423_v16 = vrot.slane %v1735_v63, 4  ;;  %6990 = vmatpush3.bf16.msra.mxu0 %v7531_v6 }
  0xbe   : > { %v8400_v48 = vld [vmem:[#allocation2 + $0x40] sm:$0xf]  ;;  %v6228_v56 = vcombine.low %v8378_v58, %v8398_v38  ;;  %v1167_v57 = vshll.u32 %v1013_v50, 16  ;;  %v638_v1 = vsel %vm8164_vm10, %v630_v32, %v637_v34  ;;  %901 = vst [vmem:[#allocation2 + $0x48] sm:$0xf] %v900_v25  ;;  %v1518_v8 = vrot.slane %v1013_v50, 5 }
  0xbf   : > { %v1157_v60 = vshll.u32 %v8400_v48, 16  ;;  %v1161_v40 = vshrl.u32 %v8400_v48, 16  ;;  %902 = vst [vmem:[#allocation2 + $0x4c] sm:$0xf] %v638_v1  ;;  %v1515_v7 = vrot.slane %v8400_v48, 5  ;;  %v904_v14 = vsel %vm8171_vm11, %v639_v35, %v903_v37  ;;  %v7532_v37 = vld [vmem:[#allocation6 + $0x1c0] sm:$0xff]  }
  0xc0   : > { %4239 = vmatprep.mubr.bf16.mxu1 %v6228_v56  ;;  %905 = vst [vmem:[#allocation2 + $0x50] sm:$0x1] %v904_v14  ;;  %v649_v18 = vshrl.u32 %v516_v54, 16  ;;  %v906_v21 = vld [vmem:[#allocation2 + $0x54] sm:$0xf]  ;;  %v1169_v29 = vrot.slane %v1167_v57, 5  ;;  %v646_v30 = vor.u32 %v644_v39, %v8415_v33  ;;  %7101 = vmatprep.subr.bf16.mxu1 %v7532_v37  ;;  %v6181_v25 = vcombine.low %v8374_v51, %v8400_v48 }
  0xc1   : > { %v1159_v3 = vrot.slane %v1157_v60, 5  ;;  %4240 = vmatmul.mubr.bf16.gmra.mxu1 %v6212_v43  ;;  %v1163_v13 = vrot.slane %v1161_v40, 4  ;;  %v1517_v17 = vrot.slane %v1515_v7, 4  ;;  %v652_v28 = vshll.u32 %v516_v54, 16  ;;  %v8427_v32 = vld [vmem:[%s8127_s22 + $0x3c] sm:$0xf] }
  0xc2   : > { %v1516_v34 = vsel %vm8192_vm13, %v6133_v4, %v1515_v7  ;;  %v651_v63 = vrot.slane %v649_v18, 7  ;;  %v658_v35 = vshrl.u32 %v8418_v0, 16  ;;  %v8434_v43 = vrot.slane %v1738_v55, 5  ;;  %v7533_v40 = vld [vmem:[#allocation6 + $0x180] sm:$0xff]  }
  0xc3   : > { %v1164_v22 = vor.u32 %v1163_v13, %v1159_v3  ;;  %v1519_v58 = vsel %vm8192_vm13, %v1517_v17, %v1518_v8  ;;  %v1160_v50 = vsel %vm8152_vm7, %v1155_v12, %v1159_v3  ;;  %v907_v56 = vsel %vm8158_vm8, %v646_v30, %v906_v21  ;;  %v910_v12 = vld [vmem:[#allocation2 + $0x5c] sm:$0x1]  ;;  %7102 = vmatpush3.bf16.msra.mxu1 %v7533_v40 }
  0xc4   : > { %v647_v39 = vrot.slane %v8415_v33, 4  ;;  %908 = vst [vmem:[#allocation2 + $0x54] sm:$0xf] %v907_v56  ;;  %v661_v47 = vshll.u32 %v8418_v0, 16  ;;  %v6213_v54 = vcombine.low %v1516_v34, %v1519_v58  ;;  %v654_v4 = vor.u32 %v652_v28, %v651_v63 }
  0xc5   : > { %v1165_v52 = vrot.slane %v1164_v22, 4  ;;  %v1600_v57 = vld [vmem:[#allocation2 + $0x48] sm:$0xf]  ;;  %v656_v11 = vrot.slane %v651_v63, 4  ;;  %v8453_v13 = vrot.slane %v658_v35, 7  ;;  %v666_v14 = vshrl.u32 %v8427_v32, 16 }
  0xc6   : > { %v8445_v1 = vld [vmem:[#allocation2 + $0x4c] sm:$0xf]  ;;  %v8449_v3 = vld [vmem:[#allocation2 + $0x48] sm:$0xf]  ;;  %v1759_v18 = vshrl.u32 %v1600_v57, 16  ;;  %v669_v30 = vshll.u32 %v8427_v32, 16  ;;  %v655_v63 = vsel %vm8164_vm10, %v647_v39, %v654_v4 }
  0xc7   : > { %v1170_v55 = vsel %vm8152_vm7, %v1165_v52, %v1169_v29  ;;  %10970 = vst [vmem:[#allocation27_spill] sm:$0xff] %v8445_v1  ;;  %v8451_v8 = vld [vmem:[#allocation2 + $0x4c] sm:$0xf]  ;;  %v6229_v33 = vcombine.low %v1600_v57, %v8445_v1  ;;  %v1014_v6 = vld [vmem:[#allocation2 + $0x50] sm:$0x1]  ;;  %v1172_v17 = vshrl.u32 %v8449_v3, 16  ;;  %v911_v32 = vsel %vm8171_vm11, %v656_v11, %v910_v12 }
  0xc8   : > { %v6197_v7 = vcombine.low %v1160_v50, %v1170_v55  ;;  %v1175_v51 = vshll.u32 %v8449_v3, 16  ;;  %v1181_v48 = vshll.u32 %v8451_v8, 16  ;;  %v1185_v21 = vshrl.u32 %v8451_v8, 16  ;;  %v1417_v29 = vld [vmem:[#allocation2 + $0x48] sm:$0xe]  ;;  %v7537_v52 = vld [vmem:[#allocation6 + $0x238] sm:$0xff]  }
  0xc9   : > { %v1191_v22 = vshll.u32 %v1014_v6, 16  ;;  %4247 = vmatprep.mubr.bf16.mxu1 %v6229_v33  ;;  %v1174_v28 = vrot.slane %v1172_v17, 4  ;;  %v1762_v35 = vshll.u32 %v1600_v57, 16  ;;  %909 = vst [vmem:[#allocation2 + $0x58] sm:$0xf] %v655_v63  ;;  %v6134_v50 = vrot.slane %v1417_v29, 9  ;;  %7247 = vmatprep.subr.bf16.mxu0 %v7537_v52 }
  0xca   : > { %4086 = vmatprep.mubr.bf16.mxu0 %v6197_v7  ;;  %v1177_v34 = vrot.slane %v1175_v51, 5  ;;  %v1183_v58 = vrot.slane %v1181_v48, 5  ;;  %4248 = vmatmul.mubr.bf16.gmra.mxu1 %v6213_v54  ;;  %v1187_v37 = vrot.slane %v1185_v21, 4  ;;  %v1522_v40 = vrot.slane %v8451_v8, 5  ;;  %912 = vst [vmem:[#allocation2 + $0x5c] sm:$0x1] %v911_v32 }
  0xcb   : > { %4087 = vmatmul.mubr.bf16.gmra.mxu0 %v6181_v25  ;;  %v1525_v55 = vrot.slane %v1014_v6, 5  ;;  %v8467_v25 = vld [vmem:[#allocation2 + $0x54] sm:$0xf]  ;;  %v1193_v17 = vrot.slane %v1191_v22, 5  ;;  %v913_v57 = vld [vmem:[#allocation2 + $0x60] sm:$0xf] }
  0xcc   : > { %v1178_v56 = vor.u32 %v1177_v34, %v1174_v28  ;;  %v1188_v33 = vor.u32 %v1187_v37, %v1183_v58  ;;  %v1196_v39 = vshrl.u32 %v8467_v25, 16  ;;  %v7538_v54 = vld [vmem:[#allocation8 + $0x38] sm:$0xff]   ;;  %v1523_v51 = vsel %vm8192_vm13, %v6134_v50, %v1522_v40 }
  0xcd   : > { %v1524_v6 = vrot.slane %v1522_v40, 4  ;;  %v1199_v48 = vshll.u32 %v8467_v25, 16  ;;  %v8474_v11 = vrot.slane %v1759_v18, 4  ;;  %v8476_v12 = vrot.slane %v1762_v35, 5  ;;  %7295 = vmatprep.subr.bf16.mxu1 %v7538_v54  ;;  %v1602_v28 = vld [vmem:[#allocation2 + $0x54] sm:$0xf] }
  0xce   : > { %v1179_v4 = vrot.slane %v1178_v56, 4  ;;  %v1189_v21 = vrot.slane %v1188_v33, 4  ;;  %v1198_v22 = vrot.slane %v1196_v39, 4  ;;  %v663_v37 = vor.u32 %v661_v47, %v8453_v13  ;;  %v917_v56 = vld [vmem:[#allocation2 + $0x68] sm:$0x1] }
  0xcf   : > { %10971 = vst [vmem:[#allocation28_spill] sm:$0xff] %v8474_v11  ;;  %10972 = vst [vmem:[#allocation29_spill] sm:$0xff] %v8476_v12  ;;  %v1526_v34 = vsel %vm8192_vm13, %v1524_v6, %v1525_v55  ;;  %v1201_v63 = vrot.slane %v1199_v48, 5  ;;  %v6182_v35 = vcombine.low %v8449_v3, %v8451_v8  ;;  %v668_v52 = vrot.slane %v666_v14, 7  ;;  %v519_v40 = vld [vmem:[%s8127_s22 + $0x40] sm:$0xf] }
  0xd0   : > { %v1184_v29 = vsel %vm8152_vm7, %v1179_v4, %v1183_v58  ;;  %v1194_v18 = vsel %vm8152_vm7, %v1189_v21, %v1193_v17  ;;  %v6214_v50 = vcombine.low %v1523_v51, %v1526_v34  ;;  %v8490_v32 = vld [vmem:[#allocation2 + $0x58] sm:$0xf]  ;;  %v664_v39 = vrot.slane %v8453_v13, 4  ;;  %v1418_v14 = vld [vmem:[#allocation2 + $0x54] sm:$0xe] }
  0xd1   : > { %v6198_v58 = vcombine.low %v1184_v29, %v1194_v18  ;;  %10973 = vst [vmem:[#allocation30_spill] sm:$0xff] %v8490_v32  ;;  %v8492_v33 = vld [vmem:[#allocation2 + $0x58] sm:$0xf]  ;;  %v1202_v55 = vor.u32 %v1201_v63, %v1198_v22  ;;  %v914_v0 = vsel %vm8158_vm8, %v663_v37, %v913_v57  ;;  %v1783_v47 = vshrl.u32 %v1602_v28, 16  ;;  %v1015_v4 = vld [vmem:[#allocation2 + $0x5c] sm:$0x1] }
  0xd2   : > { %v6230_v17 = vcombine.low %v1602_v28, %v8490_v32  ;;  %v1205_v3 = vshll.u32 %v8492_v33, 16  ;;  %v1209_v8 = vshrl.u32 %v8492_v33, 16  ;;  %915 = vst [vmem:[#allocation2 + $0x60] sm:$0xf] %v914_v0  ;;  %v1786_v54 = vshll.u32 %v1602_v28, 16 }
  0xd3   : > { %4094 = vmatprep.mubr.bf16.mxu0 %v6198_v58  ;;  %v1203_v51 = vrot.slane %v1202_v55, 4  ;;  %v671_v6 = vor.u32 %v669_v30, %v668_v52  ;;  %v673_v48 = vrot.slane %v668_v52, 4  ;;  %v1215_v21 = vshll.u32 %v1015_v4, 16  ;;  %v520_v29 = vld [vmem:[%s8127_s22 + $0x44] sm:$0xf] }
  0xd4   : > { %4255 = vmatprep.mubr.bf16.mxu1 %v6230_v17  ;;  %4095 = vmatmul.mubr.bf16.gmra.mxu0 %v6182_v35  ;;  %v1207_v13 = vrot.slane %v1205_v3, 5  ;;  %v1211_v57 = vrot.slane %v1209_v8, 4  ;;  %v1529_v22 = vrot.slane %v8492_v33, 5  ;;  %v6135_v63 = vrot.slane %v1418_v14, 9  ;;  %v920_v17 = vld [vmem:[#allocation2 + $0x6c] sm:$0xf] }
  0xd5   : > { %4256 = vmatmul.mubr.bf16.gmra.mxu1 %v6214_v50  ;;  %v672_v34 = vsel %vm8164_vm10, %v664_v39, %v671_v6  ;;  %v918_v28 = vsel %vm8171_vm11, %v673_v48, %v917_v56  ;;  %v675_v37 = vshrl.u32 %v519_v40, 16  ;;  %v1217_v18 = vrot.slane %v1215_v21, 5  ;;  %v8507_v3 = vld [vmem:[%s8127_s22 + $0x48] sm:$0xf] }
  0xd6   : > { %v1212_v30 = vor.u32 %v1211_v57, %v1207_v13  ;;  %916 = vst [vmem:[#allocation2 + $0x64] sm:$0xf] %v672_v34  ;;  %v1532_v35 = vrot.slane %v1015_v4, 5  ;;  %919 = vst [vmem:[#allocation2 + $0x68] sm:$0x1] %v918_v28  ;;  %v1531_v52 = vrot.slane %v1529_v22, 4  ;;  %v1208_v39 = vsel %vm8152_vm7, %v1203_v51, %v1207_v13 }
  0xd7   : > { %v677_v58 = vrot.slane %v675_v37, 7  ;;  %v678_v55 = vshll.u32 %v519_v40, 16  ;;  %v683_v0 = vshrl.u32 %v520_v29, 16  ;;  %v8509_v50 = vrot.slane %v1783_v47, 4 }
  0xd8   : > { %v1213_v8 = vrot.slane %v1212_v30, 4  ;;  %v686_v56 = vshll.u32 %v520_v29, 16  ;;  %v8513_v14 = vrot.slane %v1786_v54, 5  ;;  %v6183_v47 = vcombine.low %v8467_v25, %v8492_v33 }
  0xd9   : > { %10974 = vst [vmem:[#allocation31_spill] sm:$0xff] %v8509_v50  ;;  %v8515_v6 = vld [vmem:[#allocation2 + $0x60] sm:$0xf]  ;;  %v680_v4 = vor.u32 %v678_v55, %v677_v58  ;;  %v681_v48 = vrot.slane %v677_v58, 4  ;;  %v685_v57 = vrot.slane %v683_v0, 7  ;;  %v1530_v34 = vsel %vm8192_vm13, %v6135_v63, %v1529_v22 }
  0xda   : > { %10975 = vst [vmem:[#allocation32_spill] sm:$0xff] %v8513_v14  ;;  %v1218_v40 = vsel %vm8152_vm7, %v1213_v8, %v1217_v18  ;;  %v1604_v21 = vld [vmem:[#allocation2 + $0x60] sm:$0xf]  ;;  %v1533_v51 = vsel %vm8192_vm13, %v1531_v52, %v1532_v35  ;;  %v1220_v13 = vshrl.u32 %v8515_v6, 16  ;;  %v1223_v29 = vshll.u32 %v8515_v6, 16 }
  0xdb   : > { %v6199_v54 = vcombine.low %v1208_v39, %v1218_v40  ;;  %v688_v28 = vor.u32 %v686_v56, %v685_v57  ;;  %v690_v30 = vrot.slane %v685_v57, 4  ;;  %v921_v18 = vsel %vm8158_vm8, %v680_v4, %v920_v17  ;;  %v1419_v58 = vld [vmem:[#allocation2 + $0x60] sm:$0xe]  ;;  %v924_v8 = vld [vmem:[#allocation2 + $0x74] sm:$0x1] }
  0xdc   : > { %v692_v25 = vshrl.u32 %v8507_v3, 16  ;;  %v6215_v22 = vcombine.low %v1530_v34, %v1533_v51  ;;  %922 = vst [vmem:[#allocation2 + $0x6c] sm:$0xf] %v921_v18  ;;  %v1807_v55 = vshrl.u32 %v1604_v21, 16  ;;  %v1222_v39 = vrot.slane %v1220_v13, 4 }
  0xdd   : > { %4102 = vmatprep.mubr.bf16.mxu0 %v6199_v54  ;;  %v8531_v33 = vld [vmem:[#allocation2 + $0x64] sm:$0xf]  ;;  %v1016_v35 = vld [vmem:[#allocation2 + $0x68] sm:$0x1]  ;;  %v689_v52 = vsel %vm8164_vm10, %v681_v48, %v688_v28  ;;  %v1225_v17 = vrot.slane %v1223_v29, 5  ;;  %v1810_v56 = vshll.u32 %v1604_v21, 16  ;;  %v925_v29 = vsel %vm8171_vm11, %v690_v30, %v924_v8 }
  0xde   : > { %10976 = vst [vmem:[#allocation33_spill] sm:$0xff] %v8531_v33  ;;  %v8533_v63 = vld [vmem:[#allocation2 + $0x64] sm:$0xf]  ;;  %v6231_v0 = vcombine.low %v1604_v21, %v8531_v33  ;;  %4103 = vmatmul.mubr.bf16.gmra.mxu0 %v6183_v47  ;;  %923 = vst [vmem:[#allocation2 + $0x70] sm:$0xf] %v689_v52  ;;  %v1239_v40 = vshll.u32 %v1016_v35, 16 }
  0xdf   : > { %v1229_v4 = vshll.u32 %v8533_v63, 16  ;;  %v1233_v57 = vshrl.u32 %v8533_v63, 16  ;;  %v1226_v34 = vor.u32 %v1225_v17, %v1222_v39  ;;  %v6136_v51 = vrot.slane %v1419_v58, 9  ;;  %v522_v28 = vld [vmem:[%s8127_s22 + $0x4c] sm:$0xf] }
  0xe0   : > { %4263 = vmatprep.mubr.bf16.mxu1 %v6231_v0  ;;  %v1536_v48 = vrot.slane %v8533_v63, 5  ;;  %v1539_v54 = vrot.slane %v1016_v35, 5  ;;  %v695_v21 = vshll.u32 %v8507_v3, 16  ;;  %926 = vst [vmem:[#allocation2 + $0x74] sm:$0x1] %v925_v29  ;;  %v694_v58 = vrot.slane %v692_v25, 7 }
  0xe1   : > { %4264 = vmatmul.mubr.bf16.gmra.mxu1 %v6215_v22  ;;  %v1231_v47 = vrot.slane %v1229_v4, 5  ;;  %v1235_v13 = vrot.slane %v1233_v57, 4  ;;  %v1227_v18 = vrot.slane %v1226_v34, 4  ;;  %v8547_v39 = vrot.slane %v1807_v55, 4  ;;  %v8552_v4 = vld [vmem:[%s8127_s22 + $0x50] sm:$0xf] }
  0xe2   : > { %v1537_v52 = vsel %vm8192_vm13, %v6136_v51, %v1536_v48  ;;  %v1538_v0 = vrot.slane %v1536_v48, 4  ;;  %v8549_v35 = vrot.slane %v1810_v56, 5  ;;  %v1241_v17 = vrot.slane %v1239_v40, 5 }
  0xe3   : > { %10977 = vst [vmem:[#allocation34_spill] sm:$0xff] %v8547_v39  ;;  %v1236_v22 = vor.u32 %v1235_v13, %v1231_v47  ;;  %v8554_v57 = vld [vmem:[#allocation2 + $0x6c] sm:$0xf]  ;;  %v6184_v3 = vcombine.low %v8515_v6, %v8533_v63  ;;  %v700_v34 = vshrl.u32 %v522_v28, 16  ;;  %v1232_v55 = vsel %vm8152_vm7, %v1227_v18, %v1231_v47  ;;  %v927_v13 = vld [vmem:[#allocation2 + $0x78] sm:$0xf] }
  0xe4   : > { %10978 = vst [vmem:[#allocation35_spill] sm:$0xff] %v8549_v35  ;;  %v1540_v30 = vsel %vm8192_vm13, %v1538_v0, %v1539_v54  ;;  %v8560_v8 = vld [vmem:[#allocation2 + $0x6c] sm:$0xf]  ;;  %v697_v48 = vor.u32 %v695_v21, %v694_v58  ;;  %v703_v0 = vshll.u32 %v522_v28, 16  ;;  %v698_v18 = vrot.slane %v694_v58, 4 }
  0xe5   : > { %v1237_v56 = vrot.slane %v1236_v22, 4  ;;  %v8566_v40 = vld [vmem:[#allocation2 + $0x70] sm:$0xf]  ;;  %v6216_v51 = vcombine.low %v1537_v52, %v1540_v30  ;;  %v1244_v54 = vshrl.u32 %v8560_v8, 16  ;;  %v1247_v29 = vshll.u32 %v8560_v8, 16 }
  0xe6   : > { %10979 = vst [vmem:[#allocation36_spill] sm:$0xff] %v8566_v40  ;;  %v6232_v6 = vcombine.low %v8554_v57, %v8566_v40  ;;  %v8570_v63 = vld [vmem:[#allocation2 + $0x70] sm:$0xf]  ;;  %v709_v52 = vshrl.u32 %v8552_v4, 16  ;;  %v1420_v60 = vld [vmem:[#allocation2 + $0x6c] sm:$0xe] }
  0xe7   : > { %v1242_v37 = vsel %vm8152_vm7, %v1237_v56, %v1241_v17  ;;  %v1253_v47 = vshll.u32 %v8570_v63, 16  ;;  %v1246_v22 = vrot.slane %v1244_v54, 4  ;;  %v1249_v30 = vrot.slane %v1247_v29, 5  ;;  %v1017_v28 = vld [vmem:[#allocation2 + $0x74] sm:$0x1] }
  0xe8   : > { %v6200_v21 = vcombine.low %v1232_v55, %v1242_v37  ;;  %4271 = vmatprep.mubr.bf16.mxu1 %v6232_v6  ;;  %v1257_v7 = vshrl.u32 %v8570_v63, 16  ;;  %v702_v61 = vrot.slane %v700_v34, 7  ;;  %v928_v17 = vsel %vm8158_vm8, %v697_v48, %v927_v13  ;;  %v524_v54 = vld [vmem:[%s8127_s22 + $0x54] sm:$0xf]  ;;  %v8586_v29 = vld [vmem:[%s8127_s22 + $0x58] sm:$0xf] }
  0xe9   : > { %4272 = vmatmul.mubr.bf16.gmra.mxu1 %v6216_v51  ;;  %v1255_v24 = vrot.slane %v1253_v47, 5  ;;  %v1250_v55 = vor.u32 %v1249_v30, %v1246_v22  ;;  %v1263_v6 = vshll.u32 %v1017_v28, 16  ;;  %929 = vst [vmem:[#allocation2 + $0x78] sm:$0xf] %v928_v17  ;;  %v6137_v34 = vrot.slane %v1420_v60, 9 }
  0xea   : > { %4110 = vmatprep.mubr.bf16.mxu0 %v6200_v21  ;;  %v1259_v56 = vrot.slane %v1257_v7, 4  ;;  %v705_v51 = vor.u32 %v703_v0, %v702_v61  ;;  %v707_v47 = vrot.slane %v702_v61, 4  ;;  %v1543_v25 = vrot.slane %v8570_v63, 5  ;;  %v959_v35 = vld [vmem:[#allocation2 + $0xb0] sm:$0x1] }
  0xeb   : > { %4111 = vmatmul.mubr.bf16.gmra.mxu0 %v6184_v3  ;;  %v1251_v48 = vrot.slane %v1250_v55, 4  ;;  %v1265_v19 = vrot.slane %v1263_v6, 5  ;;  %v711_v58 = vrot.slane %v709_v52, 7  ;;  %v1546_v7 = vrot.slane %v1017_v28, 5  ;;  %v934_v6 = vld [vmem:[#allocation2 + $0x84] sm:$0xf] }
  0xec   : > { %v1260_v13 = vor.u32 %v1259_v56, %v1255_v24  ;;  %v706_v21 = vsel %vm8164_vm10, %v698_v18, %v705_v51  ;;  %v1545_v22 = vrot.slane %v1543_v25, 4  ;;  %v932_v30 = vsel %vm8171_vm11, %v707_v47, %v931_v15  ;;  %v938_v51 = vld [vmem:[#allocation2 + $0x8c] sm:$0x1] }
  0xed   : > { %v1831_v17 = vshrl.u32 %v8554_v57, 16  ;;  %v1256_v61 = vsel %vm8152_vm7, %v1251_v48, %v1255_v24  ;;  %930 = vst [vmem:[#allocation2 + $0x7c] sm:$0xf] %v706_v21  ;;  %933 = vst [vmem:[#allocation2 + $0x80] sm:$0x1] %v932_v30  ;;  %v712_v3 = vshll.u32 %v8552_v4, 16  ;;  %v6185_v15 = vcombine.low %v8560_v8, %v8570_v63 }
  0xee   : > { %v1261_v60 = vrot.slane %v1260_v13, 4  ;;  %v1834_v0 = vshll.u32 %v8554_v57, 16  ;;  %v717_v52 = vshrl.u32 %v524_v54, 16  ;;  %v720_v55 = vshll.u32 %v524_v54, 16 }
  0xef   : > { %v726_v18 = vshrl.u32 %v8586_v29, 16  ;;  %v1544_v24 = vsel %vm8192_vm13, %v6137_v34, %v1543_v25  ;;  %v714_v56 = vor.u32 %v712_v3, %v711_v58  ;;  %v1547_v57 = vsel %vm8192_vm13, %v1545_v22, %v1546_v7 }
  0xf0   : > { %v1266_v28 = vsel %vm8152_vm7, %v1261_v60, %v1265_v19  ;;  %v1608_v4 = vld [vmem:[#allocation2 + $0x78] sm:$0xf]  ;;  %v715_v48 = vrot.slane %v711_v58, 4  ;;  %v719_v13 = vrot.slane %v717_v52, 7  ;;  %v729_v25 = vshll.u32 %v8586_v29, 16 }
  0xf1   : > { %v6201_v47 = vcombine.low %v1256_v61, %v1266_v28  ;;  %v8607_v54 = vld [vmem:[#allocation2 + $0x78] sm:$0xf]  ;;  %v8611_v63 = vrot.slane %v726_v18, 7  ;;  %v1855_v34 = vshrl.u32 %v1608_v4, 16  ;;  %v935_v22 = vsel %vm8158_vm8, %v714_v56, %v934_v6 }
  0xf2   : > { %v1268_v19 = vshrl.u32 %v8607_v54, 16  ;;  %v1271_v21 = vshll.u32 %v8607_v54, 16  ;;  %v1421_v8 = vld [vmem:[#allocation2 + $0x78] sm:$0xe]  ;;  %v722_v30 = vor.u32 %v720_v55, %v719_v13  ;;  %v724_v61 = vrot.slane %v719_v13, 4 }
  0xf3   : > { %4118 = vmatprep.mubr.bf16.mxu0 %v6201_v47  ;;  %v1858_v7 = vshll.u32 %v1608_v4, 16  ;;  %936 = vst [vmem:[#allocation2 + $0x84] sm:$0xf] %v935_v22  ;;  %v6138_v3 = vrot.slane %v1421_v8, 9  ;;  %v6217_v28 = vcombine.low %v1544_v24, %v1547_v57  ;;  %v731_v24 = vor.u32 %v729_v25, %v8611_v63 }
  0xf4   : > { %4119 = vmatmul.mubr.bf16.gmra.mxu0 %v6185_v15  ;;  %v1270_v58 = vrot.slane %v1268_v19, 4  ;;  %v1273_v60 = vrot.slane %v1271_v21, 5  ;;  %v8616_v52 = vld [vmem:[#allocation2 + $0x7c] sm:$0xf]  ;;  %v1018_v37 = vld [vmem:[#allocation2 + $0x80] sm:$0x1]  ;;  %v723_v29 = vsel %vm8164_vm10, %v715_v48, %v722_v30  ;;  %v939_v55 = vsel %vm8171_vm11, %v724_v61, %v938_v51 }
  0xf5   : > { %10980 = vst [vmem:[#allocation37_spill] sm:$0xff] %v8616_v52  ;;  %v8618_v18 = vld [vmem:[#allocation2 + $0x7c] sm:$0xf]  ;;  %v6233_v15 = vcombine.low %v1608_v4, %v8616_v52  ;;  %937 = vst [vmem:[#allocation2 + $0x88] sm:$0xf] %v723_v29  ;;  %v1287_v13 = vshll.u32 %v1018_v37, 16 }
  0xf6   : > { %v1274_v6 = vor.u32 %v1273_v60, %v1270_v58  ;;  %v1277_v47 = vshll.u32 %v8618_v18, 16  ;;  %940 = vst [vmem:[#allocation2 + $0x8c] sm:$0x1] %v939_v55  ;;  %v1281_v48 = vshrl.u32 %v8618_v18, 16  ;;  %v1550_v51 = vrot.slane %v8618_v18, 5 }
  0xf7   : > { %v941_v19 = vld [vmem:[#allocation2 + $0x90] sm:$0xf]  ;;  %v8632_v21 = vrot.slane %v1831_v17, 4  ;;  %v8634_v8 = vrot.slane %v1834_v0, 5  ;;  %4279 = vmatprep.mubr.bf16.mxu1 %v6233_v15  ;;  %v1553_v30 = vrot.slane %v1018_v37, 5  ;;  %v8639_v29 = vrot.slane %v1855_v34, 4 }
  0xf8   : > { %v1279_v4 = vrot.slane %v1277_v47, 5  ;;  %v526_v61 = vld [vmem:[%s8127_s22 + $0x5c] sm:$0xf]  ;;  %4280 = vmatmul.mubr.bf16.gmra.mxu1 %v6217_v28  ;;  %v1275_v22 = vrot.slane %v1274_v6, 4  ;;  %v1283_v58 = vrot.slane %v1281_v48, 4  ;;  %v1552_v25 = vrot.slane %v1550_v51, 4 }
  0xf9   : > { %10981 = vst [vmem:[#allocation38_spill] sm:$0xff] %v8632_v21  ;;  %10982 = vst [vmem:[#allocation39_spill] sm:$0xff] %v8634_v8  ;;  %v8641_v55 = vrot.slane %v1858_v7, 5  ;;  %v1551_v17 = vsel %vm8192_vm13, %v6138_v3, %v1550_v51  ;;  %v942_v0 = vsel %vm8158_vm8, %v731_v24, %v941_v19  ;;  %v1289_v37 = vrot.slane %v1287_v13, 5  ;;  %v948_v52 = vld [vmem:[#allocation2 + $0x9c] sm:$0xf] }
  0xfa   : > { %v1284_v15 = vor.u32 %v1283_v58, %v1279_v4  ;;  %v1610_v47 = vld [vmem:[#allocation2 + $0x84] sm:$0xf]  ;;  %v1554_v28 = vsel %vm8192_vm13, %v1552_v25, %v1553_v30  ;;  %943 = vst [vmem:[#allocation2 + $0x90] sm:$0xf] %v942_v0  ;;  %v6186_v48 = vcombine.low %v8607_v54, %v8618_v18  ;;  %v734_v51 = vshrl.u32 %v526_v61, 16 }
  0xfb   : > { %v8649_v6 = vld [vmem:[#allocation2 + $0x84] sm:$0xf]  ;;  %v1879_v7 = vshrl.u32 %v1610_v47, 16  ;;  %v1280_v24 = vsel %vm8152_vm7, %v1275_v22, %v1279_v4  ;;  %v6218_v30 = vcombine.low %v1551_v17, %v1554_v28  ;;  %v1882_v0 = vshll.u32 %v1610_v47, 16 }
  0xfc   : > { %v1292_v3 = vshrl.u32 %v8649_v6, 16  ;;  %v1285_v13 = vrot.slane %v1284_v15, 4  ;;  %v8658_v19 = vld [vmem:[#allocation2 + $0x88] sm:$0xf]  ;;  %v1295_v25 = vshll.u32 %v8649_v6, 16  ;;  %v732_v54 = vrot.slane %v8611_v63, 4 }
  0xfd   : > { %10983 = vst [vmem:[#allocation40_spill] sm:$0xff] %v8658_v19  ;;  %v8660_v58 = vld [vmem:[#allocation2 + $0x88] sm:$0xf]  ;;  %v6234_v57 = vcombine.low %v1610_v47, %v8658_v19  ;;  %v1019_v34 = vld [vmem:[#allocation2 + $0x8c] sm:$0x1]  ;;  %v737_v18 = vshll.u32 %v526_v61, 16 }
  0xfe   : > { %v1290_v60 = vsel %vm8152_vm7, %v1285_v13, %v1289_v37  ;;  %v1294_v56 = vrot.slane %v1292_v3, 4  ;;  %v1297_v4 = vrot.slane %v1295_v25, 5  ;;  %v1301_v22 = vshll.u32 %v8660_v58, 16  ;;  %v1422_v40 = vld [vmem:[#allocation2 + $0x84] sm:$0xe] }
  0xff   : > { %v6202_v15 = vcombine.low %v1280_v24, %v1290_v60  ;;  %4287 = vmatprep.mubr.bf16.mxu1 %v6234_v57  ;;  %v1305_v17 = vshrl.u32 %v8660_v58, 16  ;;  %v1311_v28 = vshll.u32 %v1019_v34, 16  ;;  %v736_v36 = vrot.slane %v734_v51, 7  ;;  %v945_v37 = vld [vmem:[#allocation2 + $0x98] sm:$0x1] }
 0x100   : > { %v8670_v33 = vrot.slane %v1879_v7, 4  ;;  %4288 = vmatmul.mubr.bf16.gmra.mxu1 %v6218_v30  ;;  %v1298_v63 = vor.u32 %v1297_v4, %v1294_v56  ;;  %v1303_v61 = vrot.slane %v1301_v22, 5  ;;  %v8672_v3 = vrot.slane %v1882_v0, 5  ;;  %v527_v13 = vld [vmem:[%s8127_s22 + $0x60] sm:$0xf] }
 0x101   : > { %4126 = vmatprep.mubr.bf16.mxu0 %v6202_v15  ;;  %v1307_v60 = vrot.slane %v1305_v17, 4  ;;  %v739_v57 = vor.u32 %v737_v18, %v736_v36  ;;  %v741_v24 = vrot.slane %v736_v36, 4  ;;  %v6187_v51 = vcombine.low %v8649_v6, %v8660_v58  ;;  %v8678_v30 = vld [vmem:[#allocation2 + $0x90] sm:$0xf] }
 0x102   : > { %10984 = vst [vmem:[#allocation41_spill] sm:$0xff] %v8670_v33  ;;  %10985 = vst [vmem:[#allocation42_spill] sm:$0xff] %v8672_v3  ;;  %4127 = vmatmul.mubr.bf16.gmra.mxu0 %v6186_v48  ;;  %v1299_v25 = vrot.slane %v1298_v63, 4  ;;  %v6139_v47 = vrot.slane %v1422_v40, 9  ;;  %v1557_v7 = vrot.slane %v8660_v58, 5  ;;  %v1313_v4 = vrot.slane %v1311_v28, 5 }
 0x103   : > { %v1308_v56 = vor.u32 %v1307_v60, %v1303_v61  ;;  %v740_v0 = vsel %vm8164_vm10, %v732_v54, %v739_v57  ;;  %v1612_v22 = vld [vmem:[#allocation2 + $0x90] sm:$0xf]  ;;  %v946_v36 = vsel %vm8171_vm11, %v741_v24, %v945_v37  ;;  %v528_v48 = vld [vmem:[%s8127_s22 + $0x64] sm:$0xf]  ;;  %v1560_v58 = vrot.slane %v1019_v34, 5 }
 0x104   : > { %v1304_v18 = vsel %vm8152_vm7, %v1299_v25, %v1303_v61  ;;  %944 = vst [vmem:[#allocation2 + $0x94] sm:$0xf] %v740_v0  ;;  %v1903_v40 = vshrl.u32 %v1612_v22, 16  ;;  %v1906_v6 = vshll.u32 %v1612_v22, 16  ;;  %947 = vst [vmem:[#allocation2 + $0x98] sm:$0x1] %v946_v36  ;;  %v1558_v25 = vsel %vm8192_vm13, %v6139_v47, %v1557_v7 }
 0x105   : > { %v1309_v15 = vrot.slane %v1308_v56, 4  ;;  %v1559_v17 = vrot.slane %v1557_v7, 4  ;;  %v1316_v28 = vshrl.u32 %v8678_v30, 16  ;;  %v1319_v54 = vshll.u32 %v8678_v30, 16  ;;  %v8690_v24 = vld [vmem:[%s8127_s22 + $0x68] sm:$0xf] }
 0x106   : > { %v743_v63 = vshrl.u32 %v527_v13, 16  ;;  %v746_v60 = vshll.u32 %v527_v13, 16  ;;  %v751_v57 = vshrl.u32 %v528_v48, 16  ;;  %v754_v37 = vshll.u32 %v528_v48, 16  ;;  %v8696_v56 = vld [vmem:[#allocation2 + $0x90] sm:$0xe] }
 0x107   : > { %v1314_v61 = vsel %vm8152_vm7, %v1309_v15, %v1313_v4  ;;  %v1318_v34 = vrot.slane %v1316_v28, 4  ;;  %v1321_v0 = vrot.slane %v1319_v54, 5  ;;  %v1561_v3 = vsel %vm8192_vm13, %v1559_v17, %v1560_v58  ;;  %v952_v28 = vld [vmem:[#allocation2 + $0xa4] sm:$0x1]  ;;  %v8706_v54 = vld [vmem:[#allocation2 + $0x18] sm:$0xf] }
 0x108   : > { %v6203_v36 = vcombine.low %v1304_v18, %v1314_v61  ;;  %v745_v33 = vrot.slane %v743_v63, 7  ;;  %v753_v13 = vrot.slane %v751_v57, 7  ;;  %v8701_v32 = vrot.slane %v1903_v40, 4  ;;  %v8708_v58 = vld [vmem:[#allocation2 + $0x1c] sm:$0xf] }
 0x109   : > { %v8703_v1 = vrot.slane %v1906_v6, 5  ;;  %v760_v4 = vshrl.u32 %v8690_v24, 16  ;;  %v6219_v40 = vcombine.low %v1558_v25, %v1561_v3  ;;  %v1322_v57 = vor.u32 %v1321_v0, %v1318_v34  ;;  %v8728_v48 = vld [vmem:[#allocation2 + $0x24] sm:$0xf] }
 0x10a   : > { %10986 = vst [vmem:[#allocation43_spill] sm:$0xff] %v8701_v32  ;;  %4134 = vmatprep.mubr.bf16.mxu0 %v6203_v36  ;;  %v748_v47 = vor.u32 %v746_v60, %v745_v33  ;;  %v749_v7 = vrot.slane %v745_v33, 4  ;;  %v756_v15 = vor.u32 %v754_v37, %v753_v13  ;;  %v758_v18 = vrot.slane %v753_v13, 4  ;;  %v530_v13 = vld [vmem:[%s8127_s22 + $0x6c] sm:$0xf] }
 0x10b   : > { %10987 = vst [vmem:[#allocation44_spill] sm:$0xff] %v8703_v1  ;;  %v8710_v17 = vld [vmem:[#allocation2 + $0x94] sm:$0xf]  ;;  %4135 = vmatmul.mubr.bf16.gmra.mxu0 %v6187_v51  ;;  %v1020_v6 = vld [vmem:[#allocation2 + $0x98] sm:$0x1]  ;;  %v6140_v36 = vrot.slane %v8696_v56, 9 }
 0x10c   : > { %10988 = vst [vmem:[#allocation45_spill] sm:$0xff] %v8710_v17  ;;  %v8712_v63 = vld [vmem:[#allocation2 + $0x94] sm:$0xf]  ;;  %v6235_v37 = vcombine.low %v1612_v22, %v8710_v17  ;;  %v763_v51 = vshll.u32 %v8690_v24, 16  ;;  %v1335_v25 = vshll.u32 %v1020_v6, 16  ;;  %v757_v34 = vsel %vm8164_vm10, %v749_v7, %v756_v15 }
 0x10d   : > { %v1325_v61 = vshll.u32 %v8712_v63, 16  ;;  %v1329_v3 = vshrl.u32 %v8712_v63, 16  ;;  %v949_v0 = vsel %vm8158_vm8, %v748_v47, %v948_v52  ;;  %v8730_v33 = vld [vmem:[#allocation2 + $0x28] sm:$0xf]  ;;  %951 = vst [vmem:[#allocation2 + $0xa0] sm:$0xf] %v757_v34  ;;  %v953_v47 = vsel %vm8171_vm11, %v758_v18, %v952_v28 }
 0x10e   : > { %10989 = vst [vmem:[#allocation46_spill] sm:$0xff] %v8730_v33  ;;  %4295 = vmatprep.mubr.bf16.mxu1 %v6235_v37  ;;  %950 = vst [vmem:[#allocation2 + $0x9c] sm:$0xf] %v949_v0  ;;  %v1564_v24 = vrot.slane %v8712_v63, 5  ;;  %v1567_v56 = vrot.slane %v1020_v6, 5  ;;  %v1323_v7 = vrot.slane %v1322_v57, 4 }
 0x10f   : > { %v1327_v22 = vrot.slane %v1325_v61, 5  ;;  %v8735_v1 = vld [vmem:[#allocation2 + $0x30] sm:$0xf]  ;;  %4296 = vmatmul.mubr.bf16.gmra.mxu1 %v6219_v40  ;;  %v1331_v52 = vrot.slane %v1329_v3, 4  ;;  %v762_v15 = vrot.slane %v760_v4, 7  ;;  %v768_v34 = vshrl.u32 %v530_v13, 16 }
 0x110   : > { %v8739_v37 = vld [vmem:[#allocation2 + $0x34] sm:$0xf]  ;;  %v1566_v61 = vrot.slane %v1564_v24, 4  ;;  %954 = vst [vmem:[#allocation2 + $0xa4] sm:$0x1] %v953_v47  ;;  %v1337_v3 = vrot.slane %v1335_v25, 5  ;;  %v1565_v28 = vsel %vm8192_vm13, %v6140_v36, %v1564_v24 }
 0x111   : > { %v955_v0 = vld [vmem:[#allocation2 + $0xa8] sm:$0xf]  ;;  %v1332_v57 = vor.u32 %v1331_v52, %v1327_v22  ;;  %v765_v32 = vor.u32 %v763_v51, %v762_v15  ;;  %v771_v19 = vshll.u32 %v530_v13, 16  ;;  %v8749_v18 = vld [vmem:[%s8127_s22 + $0x74] sm:$0xf]  ;;  %v8756_v50 = vrot.slane %v768_v34, 7 }
 0x112   : > { %v8742_v6 = vld [vmem:[%s8127_s22 + $0x70] sm:$0xf]  ;;  %v1568_v47 = vsel %vm8192_vm13, %v1566_v61, %v1567_v56  ;;  %v1328_v60 = vsel %vm8152_vm7, %v1323_v7, %v1327_v22  ;;  %v766_v25 = vrot.slane %v762_v15, 4  ;;  %v6188_v22 = vcombine.low %v8678_v30, %v8712_v63 }
 0x113   : > { %v1333_v40 = vrot.slane %v1332_v57, 4  ;;  %v956_v51 = vsel %vm8158_vm8, %v765_v32, %v955_v0  ;;  %v777_v13 = vshrl.u32 %v8742_v6, 16  ;;  %v775_v52 = vrot.slane %v8756_v50, 4 }
 0x114   : > { %957 = vst [vmem:[#allocation2 + $0xa8] sm:$0xf] %v956_v51  ;;  %v8768_v34 = vld [vmem:[#allocation2 + $0xa0] sm:$0xf]  ;;  %v6220_v32 = vcombine.low %v1565_v28, %v1568_v47  ;;  %v773_v15 = vor.u32 %v771_v19, %v8756_v50  ;;  %v788_v28 = vshll.u32 %v8749_v18, 16 }
 0x115   : > { %v1338_v56 = vsel %vm8152_vm7, %v1333_v40, %v1337_v3  ;;  %v1614_v61 = vld [vmem:[#allocation2 + $0x9c] sm:$0xf]  ;;  %v1936_v4 = vshll.u32 %v8768_v34, 16  ;;  %v8776_v24 = vld [vmem:[#allocation2 + $0xa0] sm:$0xf]  ;;  %v8781_v30 = vrot.slane %v777_v13, 7 }
 0x116   : > { %v8772_v7 = vld [vmem:[#allocation2 + $0x9c] sm:$0xf]  ;;  %v6204_v0 = vcombine.low %v1328_v60, %v1338_v56  ;;  %v1927_v57 = vshrl.u32 %v1614_v61, 16  ;;  %v1930_v51 = vshll.u32 %v1614_v61, 16  ;;  %v6236_v40 = vcombine.low %v1614_v61, %v8768_v34 }
 0x117   : > { %v1021_v3 = vld [vmem:[#allocation2 + $0xa4] sm:$0x1]  ;;  %v1340_v36 = vshrl.u32 %v8772_v7, 16  ;;  %v1343_v17 = vshll.u32 %v8772_v7, 16  ;;  %v1349_v19 = vshll.u32 %v8776_v24, 16  ;;  %v1940_v47 = vshrl.u32 %v8768_v34, 16 }
 0x118   : > { %4142 = vmatprep.mubr.bf16.mxu0 %v6204_v0  ;;  %v8783_v63 = vrot.slane %v1927_v57, 4  ;;  %v8785_v50 = vrot.slane %v1930_v51, 5  ;;  %v1424_v60 = vld [vmem:[#allocation2 + $0x9c] sm:$0xe]  ;;  %4303 = vmatprep.mubr.bf16.mxu1 %v6236_v40  ;;  %v1353_v39 = vshrl.u32 %v8776_v24, 16  ;;  %v8791_v13 = vrot.slane %v1936_v4, 5 }
 0x119   : > { %4143 = vmatmul.mubr.bf16.gmra.mxu0 %v6188_v22  ;;  %v1342_v56 = vrot.slane %v1340_v36, 4  ;;  %v1345_v61 = vrot.slane %v1343_v17, 5  ;;  %4304 = vmatmul.mubr.bf16.gmra.mxu1 %v6220_v32  ;;  %v1351_v0 = vrot.slane %v1349_v19, 5  ;;  %v1359_v57 = vshll.u32 %v1021_v3, 16 }
 0x11a   : > { %10990 = vst [vmem:[#allocation47_spill] sm:$0xff] %v8791_v13  ;;  %v774_v51 = vsel %vm8164_vm10, %v766_v25, %v773_v15  ;;  %v1355_v11 = vrot.slane %v1353_v39, 4  ;;  %v6141_v34 = vrot.slane %v1424_v60, 9  ;;  %v1933_v4 = vor.u32 %v8785_v50, %v8783_v63 }
 0x11b   : > { %v1346_v14 = vor.u32 %v1345_v61, %v1342_v56  ;;  %958 = vst [vmem:[#allocation2 + $0xac] sm:$0xf] %v774_v51  ;;  %v1616_v12 = vld [vmem:[#allocation2 + $0xa8] sm:$0xf]  ;;  %v1361_v36 = vrot.slane %v1359_v57, 5  ;;  %v1571_v25 = vrot.slane %v8776_v24, 5  ;;  %v960_v60 = vsel %vm8171_vm11, %v775_v52, %v959_v35 }
 0x11c   : > { %v8795_v40 = vld [vmem:[#allocation2 + $0xa8] sm:$0xf]  ;;  %v1951_v22 = vshrl.u32 %v1616_v12, 16  ;;  %v1954_v32 = vshll.u32 %v1616_v12, 16  ;;  %v1356_v13 = vor.u32 %v1355_v11, %v1351_v0  ;;  %v1574_v15 = vrot.slane %v1021_v3, 5 }
 0x11d   : > { %v1347_v19 = vrot.slane %v1346_v14, 4  ;;  %v1364_v61 = vshrl.u32 %v8795_v40, 16  ;;  %v1572_v63 = vsel %vm8192_vm13, %v6141_v34, %v1571_v25  ;;  %v1573_v50 = vrot.slane %v1571_v25, 4  ;;  %961 = vst [vmem:[#allocation2 + $0xb0] sm:$0x1] %v960_v60 }
 0x11e   : > { %v1953_v39 = vrot.slane %v1951_v22, 4  ;;  %v1956_v56 = vrot.slane %v1954_v32, 5  ;;  %v1357_v17 = vrot.slane %v1356_v13, 4  ;;  %v6189_v14 = vcombine.low %v8772_v7, %v8776_v24  ;;  %v962_v22 = vld [vmem:[#allocation2 + $0xb4] sm:$0xf] }
 0x11f   : > { %v1352_v51 = vsel %vm8152_vm7, %v1347_v19, %v1351_v0  ;;  %v1366_v3 = vrot.slane %v1364_v61, 4  ;;  %v1367_v57 = vshll.u32 %v8795_v40, 16  ;;  %v1575_v52 = vsel %vm8192_vm13, %v1573_v50, %v1574_v15 }
 0x120   : > { %v1957_v11 = vor.u32 %v1956_v56, %v1953_v39  ;;  %v1362_v35 = vsel %vm8152_vm7, %v1357_v17, %v1361_v36  ;;  %v10991_v13 = vshll.u32 %v8742_v6, 16  ;;  %v10992_v34 = vshrl.u32 %v8749_v18, 16  ;;  %v966_v6 = vld [vmem:[#allocation2 + $0xbc] sm:$0x1] }
 0x121   : > { %v6205_v19 = vcombine.low %v1352_v51, %v1362_v35  ;;  %v6221_v24 = vcombine.low %v1572_v63, %v1575_v52  ;;  %v1369_v39 = vrot.slane %v1367_v57, 5  ;;  %v783_v56 = vrot.slane %v8781_v30, 4  ;;  %v1425_v63 = vld [vmem:[#allocation2 + $0xa8] sm:$0xe] }
 0x122   : > { %v782_v0 = vor.u32 %v10991_v13, %v8781_v30  ;;  %v787_v32 = vrot.slane %v10992_v34, 7  ;;  %v1617_v25 = vld [vmem:[#allocation2 + $0xac] sm:$0xf]  ;;  %v8824_v60 = vrot.slane %v1940_v47, 4  ;;  %v8828_v35 = vrot.slane %v1933_v4, 4 }
 0x123   : > { %v8821_v7 = vld [vmem:[#allocation2 + $0xac] sm:$0xf]  ;;  %v1960_v17 = vshll.u32 %v1617_v25, 16  ;;  %v6237_v36 = vcombine.low %v1616_v12, %v1617_v25  ;;  %4150 = vmatprep.mubr.bf16.mxu0 %v6205_v19  ;;  %v1370_v61 = vor.u32 %v1369_v39, %v1366_v3  ;;  %v1964_v57 = vshrl.u32 %v1617_v25, 16  ;;  %v533_v47 = vld [vmem:[%s8127_s22 + $0x78] sm:$0xf] }
 0x124   : > { %10993 = vst [vmem:[#allocation48_spill] sm:$0xff] %v8824_v60  ;;  %v1373_v15 = vshll.u32 %v8821_v7, 16  ;;  %v1377_v18 = vshrl.u32 %v8821_v7, 16  ;;  %v790_v51 = vor.u32 %v788_v28, %v787_v32  ;;  %v792_v50 = vrot.slane %v787_v32, 4  ;;  %10994 = vst [vmem:[#allocation49_spill] sm:$0xff] %v8828_v35  ;;  %4151 = vmatmul.mubr.bf16.gmra.mxu0 %v6189_v14 }
 0x125   : > { %4311 = vmatprep.mubr.bf16.mxu1 %v6237_v36  ;;  %v963_v12 = vsel %vm8158_vm8, %v782_v0, %v962_v22  ;;  %v8833_v52 = vrot.slane %v1957_v11, 4  ;;  %v1022_v3 = vld [vmem:[#allocation2 + $0xb0] sm:$0x1]  ;;  %v1371_v13 = vrot.slane %v1370_v61, 4  ;;  %v6142_v32 = vrot.slane %v1425_v63, 9 }
 0x126   : > { %v1375_v30 = vrot.slane %v1373_v15, 5  ;;  %4312 = vmatmul.mubr.bf16.gmra.mxu1 %v6221_v24  ;;  %v1379_v34 = vrot.slane %v1377_v18, 4  ;;  %v791_v28 = vsel %vm8164_vm10, %v783_v56, %v790_v51  ;;  %964 = vst [vmem:[#allocation2 + $0xb4] sm:$0xf] %v963_v12  ;;  %v1383_v4 = vshll.u32 %v1022_v3, 16 }
 0x127   : > { %10995 = vst [vmem:[#allocation50_spill] sm:$0xff] %v8833_v52  ;;  %965 = vst [vmem:[#allocation2 + $0xb8] sm:$0xf] %v791_v28  ;;  %v1578_v14 = vrot.slane %v8821_v7, 5  ;;  %v1581_v19 = vrot.slane %v1022_v3, 5  ;;  %v8841_v22 = vrot.slane %v1960_v17, 5  ;;  %v967_v0 = vsel %vm8171_vm11, %v792_v50, %v966_v6 }
 0x128   : > { %v8839_v25 = vld [vmem:[%s8127_s22 + $0x7c] sm:$0xf]  ;;  %v1380_v11 = vor.u32 %v1379_v34, %v1375_v30  ;;  %v794_v24 = vshrl.u32 %v533_v47, 16  ;;  %v8847_v36 = vrot.slane %v1964_v57, 4  ;;  %v1385_v56 = vrot.slane %v1383_v4, 5 }
 0x129   : > { %10996 = vst [vmem:[#allocation51_spill] sm:$0xff] %v8841_v22  ;;  %v8845_v39 = vld [vmem:[#allocation2 + $0x14] sm:$0x1]  ;;  %v1580_v15 = vrot.slane %v1578_v14, 4  ;;  %968 = vst [vmem:[#allocation2 + $0xbc] sm:$0x1] %v967_v0  ;;  %v1376_v51 = vsel %vm8152_vm7, %v1371_v13, %v1375_v30  ;;  %v6190_v6 = vcombine.low %v8795_v40, %v8821_v7  ;;  %v1579_v50 = vsel %vm8192_vm13, %v6142_v32, %v1578_v14 }
 0x12a   : > { %10997 = vst [vmem:[#allocation52_spill] sm:$0xff] %v8847_v36  ;;  %v797_v61 = vshll.u32 %v533_v47, 16  ;;  %v2022_v18 = vld [vmem:[#allocation2 + $0xc] sm:$0xe]  ;;  %v1381_v63 = vrot.slane %v1380_v11, 4  ;;  %v796_v17 = vrot.slane %v794_v24, 7 }
 0x12b   : > { %v802_v12 = vshrl.u32 %v8839_v25, 16  ;;  %v1582_v57 = vsel %vm8192_vm13, %v1580_v15, %v1581_v19  ;;  %v805_v3 = vshll.u32 %v8839_v25, 16  ;;  %v969_v47 = vld [vmem:[#allocation2 + $0xc0] sm:$0xf]  ;;  %v8859_v34 = vld [vmem:[#allocation2 + $0x3c] sm:$0xf] }
 0x12c   : > { %v1386_v30 = vsel %vm8152_vm7, %v1381_v63, %v1385_v56  ;;  %v799_v13 = vor.u32 %v797_v61, %v796_v17  ;;  %v1658_v28 = vshll.u32 %v8845_v39, 16  ;;  %v6144_v4 = vrot.slane %v2022_v18, 9  ;;  %v8864_v11 = vld [vmem:[#allocation2 + $0x40] sm:$0xf]  ;;  %v8881_v0 = vld [vmem:[#allocation2 + $0x4c] sm:$0xf] }
 0x12d   : > { %v6206_v40 = vcombine.low %v1376_v51, %v1386_v30  ;;  %v1618_v7 = vld [vmem:[#allocation2 + $0xb4] sm:$0xf]  ;;  %v800_v14 = vrot.slane %v796_v17, 4  ;;  %v10998_v19 = vrot.slane %v8207_v46, 5  ;;  %v6222_v56 = vcombine.low %v1579_v50, %v1582_v57  ;;  %v8878_v51 = vld [vmem:[#allocation2 + $0x48] sm:$0xf] }
 0x12e   : > { %v8866_v32 = vld [vmem:[#allocation2 + $0xb4] sm:$0xf]  ;;  %v1619_v24 = vld [vmem:[#allocation2 + $0xb8] sm:$0xf]  ;;  %v1975_v15 = vshrl.u32 %v1618_v7, 16  ;;  %v8874_v63 = vrot.slane %v802_v12, 7  ;;  %v970_v18 = vsel %vm8158_vm8, %v799_v13, %v969_v47 }
 0x12f   : > { %v2090_v25 = vrot.slane %v10998_v19, 4  ;;  %v8872_v61 = vld [vmem:[#allocation2 + $0xb8] sm:$0xf]  ;;  %4158 = vmatprep.mubr.bf16.mxu0 %v6206_v40  ;;  %v1978_v17 = vshll.u32 %v1618_v7, 16  ;;  %v1984_v30 = vshll.u32 %v1619_v24, 16  ;;  %v6238_v2 = vcombine.low %v1618_v7, %v1619_v24 }
 0x130   : > { %10999 = vst [vmem:[#allocation53_spill] sm:$0xff] %v8874_v63  ;;  %v1388_v19 = vshrl.u32 %v8866_v32, 16  ;;  %971 = vst [vmem:[#allocation2 + $0xc0] sm:$0xf] %v970_v18  ;;  %v1988_v36 = vshrl.u32 %v1619_v24, 16  ;;  %4159 = vmatmul.mubr.bf16.gmra.mxu0 %v6190_v6  ;;  %v1391_v12 = vshll.u32 %v8866_v32, 16  ;;  %v807_v60 = vor.u32 %v805_v3, %v8874_v63 }
 0x131   : > { %v1023_v50 = vld [vmem:[#allocation2 + $0xbc] sm:$0x1]  ;;  %v1397_v57 = vshll.u32 %v8872_v61, 16  ;;  %v8885_v53 = vrot.slane %v1658_v28, 5  ;;  %4319 = vmatprep.mubr.bf16.mxu1 %v6238_v2  ;;  %v1401_v13 = vshrl.u32 %v8872_v61, 16  ;;  %v11000_v7 = vrot.slane %v8207_v46, 5 }
 0x132   : > { %v1390_v47 = vrot.slane %v1388_v19, 4  ;;  %v1426_v40 = vld [vmem:[#allocation2 + $0xb4] sm:$0xe]  ;;  %v1977_v24 = vrot.slane %v1975_v15, 4  ;;  %4320 = vmatmul.mubr.bf16.gmra.mxu1 %v6222_v56  ;;  %v1393_v52 = vrot.slane %v1391_v12, 5  ;;  %v1407_v28 = vshll.u32 %v1023_v50, 16 }
 0x133   : > { %v8892_v18 = vsel %vm8192_vm13, %v6144_v4, %v11000_v7  ;;  %v1399_v22 = vrot.slane %v1397_v57, 5  ;;  %v1980_v35 = vrot.slane %v1978_v17, 5  ;;  %v8896_v2 = vrot.slane %v1984_v30, 5 }
 0x134   : > { %v1403_v19 = vrot.slane %v1401_v13, 4  ;;  %v8899_v21 = vrot.slane %v1988_v36, 4  ;;  %v1394_v46 = vor.u32 %v1393_v52, %v1390_v47  ;;  %v1409_v8 = vrot.slane %v1407_v28, 5 }
 0x135   : > { %11001 = vst [vmem:[#allocation54_spill] sm:$0xff] %v8896_v2  ;;  %v6143_v4 = vrot.slane %v1426_v40, 9  ;;  %v808_v6 = vsel %vm8164_vm10, %v800_v14, %v807_v60  ;;  %v1585_v15 = vrot.slane %v8872_v61, 5  ;;  %v1588_v56 = vrot.slane %v1023_v50, 5 }
 0x136   : > { %11002 = vst [vmem:[#allocation55_spill] sm:$0xff] %v8899_v21  ;;  %v1404_v7 = vor.u32 %v1403_v19, %v1399_v22  ;;  %v1395_v12 = vrot.slane %v1394_v46, 4  ;;  %972 = vst [vmem:[#allocation2 + $0xc4] sm:$0xf] %v808_v6  ;;  %v2091_v17 = vrot.slane %v8845_v39, 5  ;;  %v2248_v30 = vshrl.u32 %v8706_v54, 16 }
 0x137   : > { %v2251_v3 = vshll.u32 %v8706_v54, 16  ;;  %v1981_v36 = vor.u32 %v1980_v35, %v1977_v24  ;;  %v6191_v47 = vcombine.low %v8866_v32, %v8872_v61  ;;  %v1620_v60 = vld [vmem:[#allocation2 + $0xc0] sm:$0xf]  ;;  %v1587_v14 = vrot.slane %v1585_v15, 4  ;;  %v2023_v32 = vld [vmem:[#allocation2 + $0x18] sm:$0xe] }
 0x138   : > { %v1405_v57 = vrot.slane %v1404_v7, 4  ;;  %v1400_v59 = vsel %vm8152_vm7, %v1395_v12, %v1399_v22  ;;  %v2092_v50 = vsel %vm8192_vm13, %v2090_v25, %v2091_v17  ;;  %v2231_v39 = vld [vmem:[#allocation2 + $0x20] sm:$0x1]  ;;  %v2250_v13 = vrot.slane %v2248_v30, 4  ;;  %v8924_v46 = vld [vmem:[#allocation2 + $0x54] sm:$0xf] }
 0x139   : > { %v1999_v35 = vshrl.u32 %v1620_v60, 16  ;;  %v1586_v6 = vsel %vm8192_vm13, %v6143_v4, %v1585_v15  ;;  %v6256_v24 = vcombine.low %v8892_v18, %v2092_v50  ;;  %v1589_v22 = vsel %vm8192_vm13, %v1587_v14, %v1588_v56  ;;  %v8922_v25 = vld [vmem:[#allocation2 + $0x20] sm:$0x1]  ;;  %v8926_v7 = vld [vmem:[#allocation2 + $0x58] sm:$0xf]  ;;  %v7558_v18 = vld [vmem:[#allocation8 + $0x10] sm:$0xff]  }
 0x13a   : > { %v1410_v40 = vsel %vm8152_vm7, %v1405_v57, %v1409_v8  ;;  %v2253_v28 = vrot.slane %v2251_v3, 5  ;;  %v2257_v19 = vshll.u32 %v8708_v58, 16  ;;  %v2261_v8 = vshrl.u32 %v8708_v58, 16 }
 0x13b   : > { %v6207_v61 = vcombine.low %v1400_v59, %v1410_v40  ;;  %v2267_v12 = vshll.u32 %v2231_v39, 16  ;;  %v2002_v15 = vshll.u32 %v1620_v60, 16  ;;  %v1661_v30 = vsel %vm8152_vm7, %v8290_v42, %v8885_v53  ;;  %v7584_v53 = vld [vmem:[#allocation2 + $0x1c] sm:$0xf] }
 0x13c   : > { %v2254_v56 = vor.u32 %v2253_v28, %v2250_v13  ;;  %v2259_v17 = vrot.slane %v2257_v19, 5  ;;  %v6223_v57 = vcombine.low %v1586_v6, %v1589_v22  ;;  %v2263_v59 = vrot.slane %v2261_v8, 4  ;;  %v2232_v6 = vld [vmem:[#allocation2 + $0x2c] sm:$0x1] }
 0x13d   : > { %4166 = vmatprep.mubr.bf16.mxu0 %v6207_v61  ;;  %v8937_v3 = vld [vmem:[#allocation2 + $0xc4] sm:$0xf]  ;;  %v11003_v14 = vsel %vm8152_vm7, %v8226_v9, %v8228_v10  ;;  %v6145_v39 = vrot.slane %v2023_v32, 9  ;;  %v8944_v40 = vrot.slane %v1981_v36, 4  ;;  %v2269_v28 = vrot.slane %v2267_v12, 5 }
 0x13e   : > { %4167 = vmatmul.mubr.bf16.gmra.mxu0 %v6191_v47  ;;  %v6240_v50 = vcombine.low %v11003_v14, %v1661_v30  ;;  %v6239_v13 = vcombine.low %v1620_v60, %v8937_v3  ;;  %v2255_v61 = vrot.slane %v2254_v56, 4  ;;  %v2264_v42 = vor.u32 %v2263_v59, %v2259_v17 }
 0x13f   : > { %11004 = vst [vmem:[#allocation56_spill] sm:$0xff] %v8944_v40  ;;  %4368 = vmatprep.mubr.bf16.mxu0 %v6256_v24  ;;  %v2095_v19 = vrot.slane %v7584_v53, 5  ;;  %v2098_v47 = vrot.slane %v8922_v25, 5  ;;  %v2272_v22 = vshrl.u32 %v8728_v48, 16  ;;  %v8949_v8 = vrot.slane %v1999_v35, 4  ;;  %v11027_v40 = vld [vmem:[#allocation31_spill] sm:$0xff] }
 0x140   : > { %v8951_v9 = vrot.slane %v2002_v15, 5  ;;  %4327 = vmatprep.mubr.bf16.mxu1 %v6239_v13  ;;  %v2260_v10 = vsel %vm8152_vm7, %v2255_v61, %v2259_v17  ;;  %v2275_v36 = vshll.u32 %v8728_v48, 16  ;;  %v2265_v60 = vrot.slane %v2264_v42, 4  ;;  %v7541_v13 = vld [vmem:[#allocation6 + $0x230] sm:$0xff]  }
 0x141   : > { %4328 = vmatmul.mubr.bf16.gmra.mxu1 %v6223_v57  ;;  %v2096_v24 = vsel %vm8192_vm13, %v6145_v39, %v2095_v19  ;;  %v2097_v32 = vrot.slane %v2095_v19, 4  ;;  %v2274_v12 = vrot.slane %v2272_v22, 4  ;;  %v2281_v30 = vshll.u32 %v8730_v33, 16  ;;  %v2024_v22 = vld [vmem:[#allocation2 + $0x24] sm:$0xe] }
 0x142   : > { %v2277_v56 = vrot.slane %v2275_v36, 5  ;;  %v2285_v35 = vshrl.u32 %v8730_v33, 16  ;;  %v2291_v15 = vshll.u32 %v2232_v6, 16  ;;  %v2270_v59 = vsel %vm8152_vm7, %v2265_v60, %v2269_v28 }
 0x143   : > { %v2099_v17 = vsel %vm8192_vm13, %v2097_v32, %v2098_v47  ;;  %v10914_v57 = vrot.slane %v8730_v33, 5  ;;  %v2707_v14 = vrot.slane %v2232_v6, 5  ;;  %v6288_v61 = vcombine.low %v2260_v10, %v2270_v59  ;;  %v8972_v47 = vld [vmem:[#allocation2 + $0x2c] sm:$0x1]  ;;  %v8974_v32 = vld [vmem:[#allocation6 + $0x228] sm:$0xff]   ;;  %v7585_v10 = vld [vmem:[#allocation6 + $0x238] sm:$0xff]  }
 0x144   : > { %v6257_v39 = vcombine.low %v2096_v24, %v2099_v17  ;;  %v2278_v42 = vor.u32 %v2277_v56, %v2274_v12  ;;  %v2283_v19 = vrot.slane %v2281_v30, 5  ;;  %v2287_v36 = vrot.slane %v2285_v35, 4  ;;  %v7542_v6 = vld [vmem:[#allocation8 + $0x30] sm:$0xff]  }
 0x145   : > { %v2293_v52 = vrot.slane %v2291_v15, 5  ;;  %v2706_v4 = vrot.slane %v10914_v57, 4  ;;  %v11005_v28 = vor.u32 %v8331_v41, %v8328_v20  ;;  %4529 = vmatprep.mubr.bf16.mxu1 %v6288_v61  ;;  %v11006_v12 = vshrl.u32 %v8240_v27, 16  ;;  %v7586_v15 = vld [vmem:[#allocation2 + $0x28] sm:$0xf] }
 0x146   : > { %4369 = vmatmul.mubr.bf16.vlgmr.msra.gmra.mxu0 %v6240_v50  ;;  %v2279_v24 = vrot.slane %v2278_v42, 4  ;;  %v1672_v50 = vshll.u32 %v7584_v53, 16  ;;  %v1682_v30 = vshll.u32 %v8922_v25, 16  ;;  %v2288_v35 = vor.u32 %v2287_v36, %v2283_v19  ;;  %v7587_v36 = vld [vmem:[#allocation8 + $0x38] sm:$0xff]  }
 0x147   : > { %v8970_v60 = vrot.slane %v11005_v28, 4  ;;  %7248 = vmatpush3.bf16.msra.mxu0 %v7585_v10  ;;  %v1678_v56 = vrot.slane %v11006_v12, 4  ;;  %4376 = vmatprep.mubr.bf16.mxu0 %v6257_v39  ;;  %v8981_v20 = vsel %vm8192_vm13, %v2706_v4, %v2707_v14  ;;  %v6146_v41 = vrot.slane %v2024_v22, 9  ;;  %v2233_v10 = vld [vmem:[#allocation2 + $0x38] sm:$0x1] }
 0x148   : > { %11007 = vst [vmem:[#allocation57_spill] sm:$0xff] %v8981_v20  ;;  %v2102_v59 = vrot.slane %v7586_v15, 5  ;;  %7249 = vmatprep.subr.bf16.mxu0 %v7541_v13  ;;  %v2284_v17 = vsel %vm8152_vm7, %v2279_v24, %v2283_v19  ;;  %v1674_v61 = vrot.slane %v1672_v50, 5  ;;  %v1684_v53 = vrot.slane %v1682_v30, 5 }
 0x149   : > { %v2105_v27 = vrot.slane %v8972_v47, 5  ;;  %v11008_v25 = vcombine.low %v8706_v54, %v8708_v58  ;;  %v2289_v39 = vrot.slane %v2288_v35, 4  ;;  %v2296_v42 = vshrl.u32 %v8735_v1, 16  ;;  %v8992_v22 = vpop.f32.mrf.mxu0 }
 0x14a   : > { %v2103_v4 = vsel %vm8192_vm13, %v6146_v41, %v2102_v59  ;;  %v2104_v14 = vrot.slane %v2102_v59, 4  ;;  %v1675_v19 = vsel %vm8152_vm7, %v8970_v60, %v1674_v61  ;;  %v1679_v28 = vor.u32 %v1678_v56, %v1674_v61  ;;  %v7546_v60 = vld [vmem:[#allocation8 + $0x28] sm:$0xff]   ;;  %v7549_v61 = vld [vmem:[#allocation6 + $0x220] sm:$0xff]  }
 0x14b   : > { %4530 = vmatmul.mubr.bf16.vlgmr.msra.gmra.mxu1 %v11008_v25  ;;  %v2299_v54 = vshll.u32 %v8735_v1, 16  ;;  %v2305_v58 = vshll.u32 %v8739_v37, 16  ;;  %7250 = vmatpush3.bf16.msra.mxu0 %v7541_v13  ;;  %v2294_v24 = vsel %vm8152_vm7, %v2289_v39, %v2293_v52  ;;  %v2298_v12 = vrot.slane %v2296_v42, 4 }
 0x14c   : > { %7296 = vmatpush3.bf16.msra.mxu1 %v7587_v36  ;;  %v2106_v50 = vsel %vm8192_vm13, %v2104_v14, %v2105_v27  ;;  %v2309_v30 = vshrl.u32 %v8739_v37, 16  ;;  %7251 = vmatprep.subr.bf16.mxu0 %v8974_v32  ;;  %v6289_v56 = vcombine.low %v2284_v17, %v2294_v24  ;;  %v1680_v35 = vrot.slane %v1679_v28, 4  ;;  %v2025_v27 = vld [vmem:[#allocation2 + $0x30] sm:$0xe]  ;;  %v9010_v14 = vpop.f32.mrf.mxu0 }
 0x14d   : > { %7297 = vmatprep.subr.bf16.mxu1 %v7542_v6  ;;  %v6258_v41 = vcombine.low %v2103_v4, %v2106_v50  ;;  %v2301_v59 = vrot.slane %v2299_v54, 5  ;;  %v2307_v25 = vrot.slane %v2305_v58, 5  ;;  %v2315_v36 = vshll.u32 %v2233_v10, 16  ;;  %v9016_v58 = vld [vmem:[#allocation2 + $0x38] sm:$0x1] }
 0x14e   : > { %v2311_v13 = vrot.slane %v2309_v30, 4  ;;  %v11009_v52 = vor.u32 %v8365_v23, %v8338_v49  ;;  %4537 = vmatprep.mubr.bf16.mxu1 %v6289_v56  ;;  %v1685_v42 = vsel %vm8152_vm7, %v1680_v35, %v1684_v53  ;;  %v1696_v28 = vshll.u32 %v7586_v15, 16  ;;  %v7550_v10 = vld [vmem:[#allocation8 + $0x20] sm:$0xff]   ;;  %v7553_v49 = vld [vmem:[#allocation6 + $0x218] sm:$0xff]  }
 0x14f   : > { %v2302_v17 = vor.u32 %v2301_v59, %v2298_v12  ;;  %v11010_v4 = vshrl.u32 %v8310_v5, 16  ;;  %v6241_v23 = vcombine.low %v1675_v19, %v1685_v42  ;;  %v2317_v30 = vrot.slane %v2315_v36, 5  ;;  %7252 = vmatpush3.bf16.msra.mxu0 %v8974_v32  ;;  %v9022_v5 = vld [vmem:[#allocation2 + $0x34] sm:$0xf]  ;;  %v9032_v36 = vpop.f32.mrf.mxu0 }
 0x150   : > { %v9008_v39 = vrot.slane %v11009_v52, 4  ;;  %7298 = vmatpush3.bf16.msra.mxu1 %v7542_v6  ;;  %v2312_v50 = vor.u32 %v2311_v13, %v2307_v25  ;;  %v1706_v56 = vshll.u32 %v8972_v47, 16  ;;  %v1698_v15 = vrot.slane %v1696_v28, 5  ;;  %7253 = vmatprep.subr.bf16.mxu0 %v7549_v61 }
 0x151   : > { %v1702_v54 = vrot.slane %v11010_v4, 4  ;;  %v9018_v24 = vpop.f32.mrf.mxu1  ;;  %7299 = vmatprep.subr.bf16.mxu1 %v7546_v60  ;;  %v2303_v53 = vrot.slane %v2302_v17, 4  ;;  %v6147_v12 = vrot.slane %v2025_v27, 9  ;;  %v2109_v6 = vrot.slane %v9022_v5, 5  ;;  %4377 = vmatmul.mubr.bf16.gmra.mxu0 %v6241_v23  ;;  %v2234_v17 = vld [vmem:[#allocation2 + $0x44] sm:$0x1] }
 0x152   : > { %v11011_v19 = vcombine.low %v8728_v48, %v8730_v33  ;;  %v2313_v59 = vrot.slane %v2312_v50, 4  ;;  %v1708_v47 = vrot.slane %v1706_v56, 5  ;;  %v2112_v32 = vrot.slane %v9016_v58, 5  ;;  %4384 = vmatprep.mubr.bf16.mxu0 %v6258_v41 }
 0x153   : > { %v9025_v35 = vpop.f32.mrf.mxu1  ;;  %v2320_v13 = vshrl.u32 %v8859_v34, 16  ;;  %v2308_v52 = vsel %vm8152_vm7, %v2303_v53, %v2307_v25  ;;  %v1699_v27 = vsel %vm8152_vm7, %v9008_v39, %v1698_v15  ;;  %v1703_v42 = vor.u32 %v1702_v54, %v1698_v15  ;;  %7254 = vmatpush3.bf16.msra.mxu0 %v7549_v61  ;;  %v7554_v53 = vld [vmem:[#allocation8 + $0x18] sm:$0xff]  }
 0x154   : > { %4538 = vmatmul.mubr.bf16.gmra.mxu1 %v11011_v19  ;;  %v2110_v48 = vsel %vm8192_vm13, %v6147_v12, %v2109_v6  ;;  %v2318_v4 = vsel %vm8152_vm7, %v2313_v59, %v2317_v30  ;;  %v2111_v23 = vrot.slane %v2109_v6, 4  ;;  %v2323_v41 = vshll.u32 %v8859_v34, 16  ;;  %7255 = vmatprep.subr.bf16.mxu0 %v7553_v49  ;;  %v7557_v12 = vld [vmem:[#allocation6 + $0x210] sm:$0xff]   ;;  %v9054_v19 = vld [vmem:[#allocation2 + $0x44] sm:$0x1] }
 0x155   : > { %v9041_v28 = vpop.f32.mrf.mxu1  ;;  %v2322_v50 = vrot.slane %v2320_v13, 4  ;;  %7300 = vmatpush3.bf16.msra.mxu1 %v7546_v60  ;;  %v6290_v25 = vcombine.low %v2308_v52, %v2318_v4  ;;  %v1704_v56 = vrot.slane %v1703_v42, 4  ;;  %v2329_v39 = vshll.u32 %v8864_v11, 16  ;;  %v2026_v59 = vld [vmem:[#allocation2 + $0x3c] sm:$0xe]  ;;  %v9056_v13 = vpop.f32.mrf.mxu0 }
 0x156   : > { %v2333_v54 = vshrl.u32 %v8864_v11, 16  ;;  %7301 = vmatprep.subr.bf16.mxu1 %v7550_v10  ;;  %v2113_v6 = vsel %vm8192_vm13, %v2111_v23, %v2112_v32  ;;  %v2325_v60 = vrot.slane %v2323_v41, 5  ;;  %v2339_v61 = vshll.u32 %v2234_v17, 16 }
 0x157   : > { %v9048_v15 = vpop.f32.mrf.mxu1  ;;  %4545 = vmatprep.mubr.bf16.mxu1 %v6290_v25  ;;  %v1709_v52 = vsel %vm8152_vm7, %v1704_v56, %v1708_v47  ;;  %v6259_v42 = vcombine.low %v2110_v48, %v2113_v6  ;;  %v2331_v4 = vrot.slane %v2329_v39, 5  ;;  %v11012_v32 = vor.u32 %v8371_v44, %v8368_v31  ;;  %7256 = vmatpush3.bf16.msra.mxu0 %v7553_v49  ;;  %v7589_v49 = vld [vmem:[#allocation2 + $0x40] sm:$0xf] }
 0x158   : > { %v2335_v57 = vrot.slane %v2333_v54, 4  ;;  %v6242_v20 = vcombine.low %v1699_v27, %v1709_v52  ;;  %v2326_v30 = vor.u32 %v2325_v60, %v2322_v50  ;;  %v2341_v33 = vrot.slane %v2339_v61, 5  ;;  %7257 = vmatprep.subr.bf16.mxu0 %v7557_v12  ;;  %v7561_v27 = vld [vmem:[#allocation6 + $0x208] sm:$0xff]  }
 0x159   : > { %v9063_v17 = vrot.slane %v11012_v32, 4  ;;  %7302 = vmatpush3.bf16.msra.mxu1 %v7550_v10  ;;  %v9065_v23 = vpop.f32.mrf.mxu1  ;;  %v1720_v25 = vshll.u32 %v9022_v5, 16  ;;  %v11013_v47 = vshrl.u32 %v8351_v62, 16  ;;  %v1730_v56 = vshll.u32 %v9016_v58, 16  ;;  %v2235_v5 = vld [vmem:[#allocation2 + $0x50] sm:$0x1] }
 0x15a   : > { %v2336_v41 = vor.u32 %v2335_v57, %v2331_v4  ;;  %7303 = vmatprep.subr.bf16.mxu1 %v7554_v53  ;;  %4385 = vmatmul.mubr.bf16.gmra.mxu0 %v6242_v20  ;;  %v11014_v31 = vcombine.low %v8735_v1, %v8739_v37  ;;  %v2327_v44 = vrot.slane %v2326_v30, 4  ;;  %v6148_v10 = vrot.slane %v2026_v59, 9  ;;  %v7562_v32 = vld [vmem:[#allocation8 + $0x8] sm:$0xff]  }
 0x15b   : > { %v1726_v48 = vrot.slane %v11013_v47, 4  ;;  %v2116_v50 = vrot.slane %v7589_v49, 5  ;;  %v2119_v57 = vrot.slane %v9054_v19, 5  ;;  %4392 = vmatprep.mubr.bf16.mxu0 %v6259_v42  ;;  %v1722_v58 = vrot.slane %v1720_v25, 5  ;;  %v9085_v61 = vpop.f32.mrf.mxu1  ;;  %7258 = vmatpush3.bf16.msra.mxu0 %v7557_v12  ;;  %v9095_v12 = vld [vmem:[#allocation2 + $0x50] sm:$0x1] }
 0x15c   : > { %4546 = vmatmul.mubr.bf16.gmra.mxu1 %v11014_v31  ;;  %v9075_v39 = vpop.f32.mrf.mxu0  ;;  %v2337_v62 = vrot.slane %v2336_v41, 4  ;;  %v1732_v54 = vrot.slane %v1730_v56, 5  ;;  %v2344_v6 = vshrl.u32 %v8878_v51, 16  ;;  %v2332_v20 = vsel %vm8152_vm7, %v2327_v44, %v2331_v4  ;;  %7259 = vmatprep.subr.bf16.mxu0 %v7561_v27  ;;  %v2027_v56 = vld [vmem:[#allocation2 + $0x48] sm:$0xe]  ;;  %v7565_v31 = vld [vmem:[#allocation6 + $0x200] sm:$0xff]  }
 0x15d   : > { %v2117_v1 = vsel %vm8192_vm13, %v6148_v10, %v2116_v50  ;;  %v2118_v37 = vrot.slane %v2116_v50, 4  ;;  %v2347_v30 = vshll.u32 %v8878_v51, 16  ;;  %7304 = vmatpush3.bf16.msra.mxu1 %v7554_v53  ;;  %v1723_v52 = vsel %vm8152_vm7, %v9063_v17, %v1722_v58 }
 0x15e   : > { %v9083_v60 = vpop.f32.mrf.mxu0  ;;  %v2342_v59 = vsel %vm8152_vm7, %v2337_v62, %v2341_v33  ;;  %v1727_v42 = vor.u32 %v1726_v48, %v1722_v58  ;;  %v2346_v4 = vrot.slane %v2344_v6, 4  ;;  %7305 = vmatprep.subr.bf16.mxu1 %v7558_v18  ;;  %v2353_v47 = vshll.u32 %v8881_v0, 16 }
 0x15f   : > { %v6291_v41 = vcombine.low %v2332_v20, %v2342_v59  ;;  %v2120_v53 = vsel %vm8192_vm13, %v2118_v37, %v2119_v57  ;;  %v2349_v25 = vrot.slane %v2347_v30, 5  ;;  %v2357_v48 = vshrl.u32 %v8881_v0, 16  ;;  %v9103_v20 = vpop.f32.mrf.mxu1  ;;  %7260 = vmatpush3.bf16.msra.mxu0 %v7561_v27 }
 0x160   : > { %v9097_v33 = vpop.f32.mrf.mxu0  ;;  %v1728_v44 = vrot.slane %v1727_v42, 4  ;;  %v6260_v17 = vcombine.low %v2117_v1, %v2120_v53  ;;  %v2363_v10 = vshll.u32 %v2235_v5, 16  ;;  %v2355_v62 = vrot.slane %v2353_v47, 5  ;;  %7261 = vmatprep.subr.bf16.mxu0 %v7565_v31 }
 0x161   : > { %4553 = vmatprep.mubr.bf16.mxu1 %v6291_v41  ;;  %v2350_v50 = vor.u32 %v2349_v25, %v2346_v4  ;;  %v11015_v57 = vor.u32 %v8434_v43, %v8423_v16  ;;  %v1744_v6 = vshll.u32 %v7589_v49, 16  ;;  %7306 = vmatpush3.bf16.msra.mxu1 %v7558_v18  ;;  %v2359_v1 = vrot.slane %v2357_v48, 4  ;;  %v2236_v18 = vld [vmem:[#allocation2 + $0x5c] sm:$0x1]  ;;  %v9122_v48 = vpop.f32.mrf.mxu1 }
 0x162   : > { %v9105_v37 = vpop.f32.mrf.mxu0  ;;  %v1733_v30 = vsel %vm8152_vm7, %v1728_v44, %v1732_v54  ;;  %v2365_v59 = vrot.slane %v2363_v10, 5  ;;  %v11016_v5 = vshrl.u32 %v8398_v38, 16  ;;  %7307 = vmatprep.subr.bf16.mxu1 %v7562_v32  ;;  %v11017_v16 = vcombine.low %v8859_v34, %v8864_v11  ;;  %v7566_v54 = vld [vmem:[#allocation8] sm:$0xff]   ;;  %v7590_v38 = vld [vmem:[#allocation2 + $0x4c] sm:$0xf] }
 0x163   : > { %v1742_v58 = vrot.slane %v11015_v57, 4  ;;  %v6243_v4 = vcombine.low %v1723_v52, %v1733_v30  ;;  %v2351_v43 = vrot.slane %v2350_v50, 4  ;;  %v1746_v49 = vrot.slane %v1744_v6, 5  ;;  %7262 = vmatpush3.bf16.msra.mxu0 %v7565_v31  ;;  %v9136_v31 = vld [vmem:[#allocation2 + $0x5c] sm:$0x1] }
 0x164   : > { %v1750_v42 = vrot.slane %v11016_v5, 4  ;;  %4554 = vmatmul.mubr.bf16.gmra.mxu1 %v11017_v16  ;;  %v1754_v41 = vshll.u32 %v9054_v19, 16  ;;  %v9115_v53 = vpop.f32.mrf.mxu0  ;;  %v2360_v25 = vor.u32 %v2359_v1, %v2355_v62  ;;  %v6149_v47 = vrot.slane %v2027_v56, 9  ;;  %v2028_v1 = vld [vmem:[#allocation2 + $0x54] sm:$0xe] }
 0x165   : > { %v2123_v44 = vrot.slane %v7590_v38, 5  ;;  %v2126_v27 = vrot.slane %v9095_v12, 5  ;;  %4393 = vmatmul.mubr.bf16.gmra.mxu0 %v6243_v4  ;;  %v2356_v34 = vsel %vm8152_vm7, %v2351_v43, %v2355_v62  ;;  %v1747_v11 = vsel %vm8152_vm7, %v1742_v58, %v1746_v49  ;;  %7308 = vmatpush3.bf16.msra.mxu1 %v7562_v32 }
 0x166   : > { %v1751_v52 = vor.u32 %v1750_v42, %v1746_v49  ;;  %v1756_v19 = vrot.slane %v1754_v41, 5  ;;  %4400 = vmatprep.mubr.bf16.mxu0 %v6260_v17  ;;  %v2361_v10 = vrot.slane %v2360_v25, 4  ;;  %v2368_v57 = vshrl.u32 %v8924_v46, 16  ;;  %v9130_v5 = vpop.f32.mrf.mxu0  ;;  %7309 = vmatprep.subr.bf16.mxu1 %v7566_v54 }
 0x167   : > { %v2124_v56 = vsel %vm8192_vm13, %v6149_v47, %v2123_v44  ;;  %v2125_v50 = vrot.slane %v2123_v44, 4  ;;  %v2371_v62 = vshll.u32 %v8924_v46, 16  ;;  %v2377_v30 = vshll.u32 %v8926_v7, 16 }
 0x168   : > { %v1752_v6 = vrot.slane %v1751_v52, 4  ;;  %v2381_v58 = vshrl.u32 %v8926_v7, 16  ;;  %v2366_v32 = vsel %vm8152_vm7, %v2361_v10, %v2365_v59  ;;  %v2370_v42 = vrot.slane %v2368_v57, 4 }
 0x169   : > { %v2127_v17 = vsel %vm8192_vm13, %v2125_v50, %v2126_v27  ;;  %v2387_v4 = vshll.u32 %v2236_v18, 16  ;;  %v11018_v16 = vor.u32 %v8951_v9, %v8949_v8  ;;  %v6292_v49 = vcombine.low %v2356_v34, %v2366_v32  ;;  %v9145_v47 = vpop.f32.mrf.mxu1  ;;  %7310 = vmatpush3.bf16.msra.mxu1 %v7566_v54  ;;  %v9147_v18 = vld [vmem:[#allocation2 + $0x60] sm:$0xf]  ;;  %v11020_v8 = vld [vmem:[#allocation29_spill] sm:$0xff]  ;;  %v11021_v9 = vld [vmem:[#allocation28_spill] sm:$0xff] }
 0x16a   : > { %v1757_v41 = vsel %vm8152_vm7, %v1752_v6, %v1756_v19  ;;  %v2373_v25 = vrot.slane %v2371_v62, 5  ;;  %v6261_v44 = vcombine.low %v2124_v56, %v2127_v17  ;;  %v2379_v27 = vrot.slane %v2377_v30, 5  ;;  %v9154_v19 = vpop.f32.mrf.mxu0  ;;  %v11024_v56 = vld [vmem:[#allocation27_spill] sm:$0xff] }
 0x16b   : > { %v9141_v43 = vrot.slane %v11018_v16, 4  ;;  %v6244_v59 = vcombine.low %v1747_v11, %v1757_v41  ;;  %v2383_v52 = vrot.slane %v2381_v58, 4  ;;  %4561 = vmatprep.mubr.bf16.mxu1 %v6292_v49  ;;  %v2389_v50 = vrot.slane %v2387_v4, 5  ;;  %v9152_v16 = vpop.f32.mrf.mxu1  ;;  %v7591_v4 = vld [vmem:[#allocation2 + $0x58] sm:$0xf] }
 0x16c   : > { %v2374_v10 = vor.u32 %v2373_v25, %v2370_v42  ;;  %v11022_v57 = vor.u32 %v11020_v8, %v11021_v9  ;;  %v1768_v32 = vshll.u32 %v7590_v38, 16  ;;  %v11023_v54 = vcombine.low %v8878_v51, %v8881_v0  ;;  %v9165_v51 = vld [vmem:[#allocation2 + $0x64] sm:$0xf]  ;;  %v2237_v9 = vld [vmem:[#allocation2 + $0x68] sm:$0x1] }
 0x16d   : > { %11019 = vst [vmem:[#allocation58_spill] sm:$0xff] %v9141_v43  ;;  %v2384_v11 = vor.u32 %v2383_v52, %v2379_v27  ;;  %v11025_v6 = vshrl.u32 %v11024_v56, 16  ;;  %v1778_v30 = vshll.u32 %v9095_v12, 16  ;;  %v6150_v58 = vrot.slane %v2028_v1, 9  ;;  %4401 = vmatmul.mubr.bf16.gmra.mxu0 %v6244_v59  ;;  %v9163_v41 = vpop.f32.mrf.mxu1  ;;  %v11026_v43 = vld [vmem:[#allocation32_spill] sm:$0xff] }
 0x16e   : > { %v1766_v34 = vrot.slane %v11022_v57, 4  ;;  %4562 = vmatmul.mubr.bf16.gmra.mxu1 %v11023_v54  ;;  %v2375_v17 = vrot.slane %v2374_v10, 4  ;;  %v1770_v42 = vrot.slane %v1768_v32, 5  ;;  %v2130_v38 = vrot.slane %v7591_v4, 5  ;;  %4408 = vmatprep.mubr.bf16.mxu0 %v6261_v44  ;;  %v9175_v44 = vpop.f32.mrf.mxu0 }
 0x16f   : > { %v1774_v62 = vrot.slane %v11025_v6, 4  ;;  %v2133_v49 = vrot.slane %v9136_v31, 5  ;;  %v2385_v25 = vrot.slane %v2384_v11, 4  ;;  %v1780_v0 = vrot.slane %v1778_v30, 5  ;;  %v9177_v57 = vpop.f32.mrf.mxu1 }
 0x170   : > { %v2392_v52 = vshrl.u32 %v9147_v18, 16  ;;  %v2395_v8 = vshll.u32 %v9147_v18, 16  ;;  %v2380_v12 = vsel %vm8152_vm7, %v2375_v17, %v2379_v27  ;;  %v1771_v1 = vsel %vm8152_vm7, %v1766_v34, %v1770_v42 }
 0x171   : > { %v1775_v59 = vor.u32 %v1774_v62, %v1770_v42  ;;  %v2131_v10 = vsel %vm8192_vm13, %v6150_v58, %v2130_v38  ;;  %v2390_v32 = vsel %vm8152_vm7, %v2385_v25, %v2389_v50  ;;  %v2132_v54 = vrot.slane %v2130_v38, 4 }
 0x172   : > { %v2394_v11 = vrot.slane %v2392_v52, 4  ;;  %v2397_v56 = vrot.slane %v2395_v8, 5  ;;  %v6293_v6 = vcombine.low %v2380_v12, %v2390_v32  ;;  %v2401_v30 = vshll.u32 %v9165_v51, 16  ;;  %v9183_v62 = vpop.f32.mrf.mxu1  ;;  %v9192_v12 = vld [vmem:[#allocation2 + $0x68] sm:$0x1] }
 0x173   : > { %v1776_v27 = vrot.slane %v1775_v59, 4  ;;  %v2405_v34 = vshrl.u32 %v9165_v51, 16  ;;  %v2134_v58 = vsel %vm8192_vm13, %v2132_v54, %v2133_v49  ;;  %v2411_v42 = vshll.u32 %v2237_v9, 16  ;;  %v2029_v59 = vld [vmem:[#allocation2 + $0x60] sm:$0xe]  ;;  %v9194_v32 = vpop.f32.mrf.mxu0 }
 0x174   : > { %v2398_v17 = vor.u32 %v2397_v56, %v2394_v11  ;;  %v11028_v21 = vor.u32 %v11026_v43, %v11027_v40  ;;  %4569 = vmatprep.mubr.bf16.mxu1 %v6293_v6  ;;  %v6262_v25 = vcombine.low %v2131_v10, %v2134_v58  ;;  %v2403_v52 = vrot.slane %v2401_v30, 5  ;;  %v9199_v43 = vld [vmem:[#allocation2 + $0x6c] sm:$0xf]  ;;  %v9201_v54 = vpop.f32.mrf.mxu1  ;;  %v11031_v10 = vld [vmem:[#allocation30_spill] sm:$0xff]  ;;  %v9212_v58 = vld [vmem:[#allocation2 + $0x70] sm:$0xf] }
 0x175   : > { %v1781_v38 = vsel %vm8152_vm7, %v1776_v27, %v1780_v0  ;;  %v2407_v8 = vrot.slane %v2405_v34, 4  ;;  %v11029_v49 = vcombine.low %v8924_v46, %v8926_v7  ;;  %v2413_v40 = vrot.slane %v2411_v42, 5  ;;  %11030 = vst [vmem:[#allocation29_spill] sm:$0xff] %v9201_v54  ;;  %v9208_v27 = vpop.f32.mrf.mxu0  ;;  %v7592_v30 = vld [vmem:[#allocation2 + $0x64] sm:$0xf] }
 0x176   : > { %v1790_v50 = vrot.slane %v11028_v21, 4  ;;  %v6245_v2 = vcombine.low %v1771_v1, %v1781_v38  ;;  %v2399_v9 = vrot.slane %v2398_v17, 4  ;;  %v1792_v21 = vshll.u32 %v7591_v4, 16 }
 0x177   : > { %4570 = vmatmul.mubr.bf16.gmra.mxu1 %v11029_v49  ;;  %v2408_v0 = vor.u32 %v2407_v8, %v2403_v52  ;;  %v11032_v11 = vshrl.u32 %v11031_v10, 16  ;;  %v1802_v6 = vshll.u32 %v9136_v31, 16  ;;  %v6278_v1 = vcombine.low %v9147_v18, %v9165_v51  ;;  %v9216_v18 = vpop.f32.mrf.mxu0  ;;  %v9222_v49 = vpop.f32.mrf.mxu1 }
 0x178   : > { %4409 = vmatmul.mubr.bf16.gmra.mxu0 %v6245_v2  ;;  %v2404_v46 = vsel %vm8152_vm7, %v2399_v9, %v2403_v52  ;;  %v1794_v7 = vrot.slane %v1792_v21, 5  ;;  %v6151_v4 = vrot.slane %v2029_v59, 9  ;;  %v2137_v34 = vrot.slane %v7592_v30, 5  ;;  %11033 = vst [vmem:[#allocation28_spill] sm:$0xff] %v9216_v18  ;;  %v2238_v59 = vld [vmem:[#allocation2 + $0x74] sm:$0x1] }
 0x179   : > { %v1798_v56 = vrot.slane %v11032_v11, 4  ;;  %4416 = vmatprep.mubr.bf16.mxu0 %v6262_v25  ;;  %v2409_v17 = vrot.slane %v2408_v0, 4  ;;  %v1804_v42 = vrot.slane %v1802_v6, 5  ;;  %v2140_v31 = vrot.slane %v9192_v12, 5  ;;  %11034 = vst [vmem:[#allocation27_spill] sm:$0xff] %v9222_v49  ;;  %v9228_v10 = vpop.f32.mrf.mxu0  ;;  %v11036_v49 = vld [vmem:[#allocation35_spill] sm:$0xff]  ;;  %v9239_v18 = vpop.f32.mrf.mxu1 }
 0x17a   : > { %v2416_v38 = vshrl.u32 %v9199_v43, 16  ;;  %v1795_v2 = vsel %vm8152_vm7, %v1790_v50, %v1794_v7  ;;  %v2138_v52 = vsel %vm8192_vm13, %v6151_v4, %v2137_v34  ;;  %v2139_v8 = vrot.slane %v2137_v34, 4  ;;  %11035 = vst [vmem:[#allocation32_spill] sm:$0xff] %v9228_v10  ;;  %v11037_v10 = vld [vmem:[#allocation34_spill] sm:$0xff]  ;;  %11039 = vst [vmem:[#allocation31_spill] sm:$0xff] %v9239_v18 }
 0x17b   : > { %v1799_v51 = vor.u32 %v1798_v56, %v1794_v7  ;;  %v2414_v25 = vsel %vm8152_vm7, %v2409_v17, %v2413_v40  ;;  %v2419_v21 = vshll.u32 %v9199_v43, 16  ;;  %v2425_v0 = vshll.u32 %v9212_v58, 16  ;;  %v9245_v7 = vld [vmem:[#allocation2 + $0x78] sm:$0xf] }
 0x17c   : > { %v2418_v9 = vrot.slane %v2416_v38, 4  ;;  %v6294_v11 = vcombine.low %v2404_v46, %v2414_v25  ;;  %v2141_v56 = vsel %vm8192_vm13, %v2139_v8, %v2140_v31  ;;  %v2429_v6 = vshrl.u32 %v9212_v58, 16  ;;  %v2030_v25 = vld [vmem:[#allocation2 + $0x6c] sm:$0xe]  ;;  %v9241_v31 = vpop.f32.mrf.mxu0 }
 0x17d   : > { %v1800_v50 = vrot.slane %v1799_v51, 4  ;;  %v2421_v4 = vrot.slane %v2419_v21, 5  ;;  %v2427_v34 = vrot.slane %v2425_v0, 5  ;;  %v2435_v63 = vshll.u32 %v2238_v59, 16  ;;  %11040 = vst [vmem:[#allocation30_spill] sm:$0xff] %v9241_v31 }
 0x17e   : > { %4577 = vmatprep.mubr.bf16.mxu1 %v6294_v11  ;;  %v6263_v17 = vcombine.low %v2138_v52, %v2141_v56  ;;  %v2431_v38 = vrot.slane %v2429_v6, 4  ;;  %v11038_v46 = vor.u32 %v11036_v49, %v11037_v10  ;;  %v1816_v59 = vshll.u32 %v7592_v30, 16  ;;  %v9243_v11 = vld [vmem:[#allocation2 + $0x74] sm:$0x1]  ;;  %v11041_v52 = vld [vmem:[#allocation33_spill] sm:$0xff]  ;;  %v9252_v6 = vpop.f32.mrf.mxu0 }
 0x17f   : > { %v1805_v40 = vsel %vm8152_vm7, %v1800_v50, %v1804_v42  ;;  %4578 = vmatmul.mubr.bf16.gmra.mxu1 %v6278_v1  ;;  %v2422_v21 = vor.u32 %v2421_v4, %v2418_v9  ;;  %v2437_v0 = vrot.slane %v2435_v63, 5  ;;  %v11042_v50 = vshrl.u32 %v11041_v52, 16  ;;  %11043 = vst [vmem:[#allocation35_spill] sm:$0xff] %v9252_v6  ;;  %v7593_v30 = vld [vmem:[#allocation2 + $0x70] sm:$0xf] }
 0x180   : > { %v1814_v51 = vrot.slane %v11038_v46, 4  ;;  %v6246_v8 = vcombine.low %v1795_v2, %v1805_v40  ;;  %v2432_v42 = vor.u32 %v2431_v38, %v2427_v34  ;;  %v1826_v49 = vshll.u32 %v9192_v12, 16  ;;  %v9255_v46 = vld [vmem:[#allocation2 + $0x7c] sm:$0xf] }
 0x181   : > { %v1822_v56 = vrot.slane %v11042_v50, 4  ;;  %v6279_v10 = vcombine.low %v9199_v43, %v9212_v58  ;;  %v2423_v1 = vrot.slane %v2422_v21, 4  ;;  %v1818_v2 = vrot.slane %v1816_v59, 5  ;;  %v9258_v52 = vpop.f32.mrf.mxu1 }
 0x182   : > { %4417 = vmatmul.mubr.bf16.gmra.mxu0 %v6246_v8  ;;  %v6152_v63 = vrot.slane %v2030_v25, 9  ;;  %v2144_v9 = vrot.slane %v7593_v30, 5  ;;  %v2433_v4 = vrot.slane %v2432_v42, 4  ;;  %v1828_v40 = vrot.slane %v1826_v49, 5  ;;  %11044 = vst [vmem:[#allocation34_spill] sm:$0xff] %v9258_v52  ;;  %v9271_v52 = vpop.f32.mrf.mxu0 }
 0x183   : > { %4424 = vmatprep.mubr.bf16.mxu0 %v6263_v17  ;;  %v2147_v38 = vrot.slane %v9243_v11, 5  ;;  %v2440_v12 = vshrl.u32 %v9245_v7, 16  ;;  %v2428_v43 = vsel %vm8152_vm7, %v2423_v1, %v2427_v34  ;;  %v1819_v58 = vsel %vm8152_vm7, %v1814_v51, %v1818_v2  ;;  %v2239_v8 = vld [vmem:[#allocation2 + $0x80] sm:$0x1]  ;;  %v9269_v49 = vpop.f32.mrf.mxu1  ;;  %11046 = vst [vmem:[#allocation59_spill] sm:$0xff] %v9271_v52 }
 0x184   : > { %v1823_v25 = vor.u32 %v1822_v56, %v1818_v2  ;;  %v2145_v17 = vsel %vm8192_vm13, %v6152_v63, %v2144_v9  ;;  %v2438_v21 = vsel %vm8152_vm7, %v2433_v4, %v2437_v0  ;;  %v2146_v59 = vrot.slane %v2144_v9, 4  ;;  %11045 = vst [vmem:[#allocation33_spill] sm:$0xff] %v9269_v49  ;;  %v11047_v0 = vld [vmem:[#allocation39_spill] sm:$0xff]  ;;  %v11048_v9 = vld [vmem:[#allocation38_spill] sm:$0xff] }
 0x185   : > { %v2442_v42 = vrot.slane %v2440_v12, 4  ;;  %v2443_v50 = vshll.u32 %v9245_v7, 16  ;;  %v6295_v34 = vcombine.low %v2428_v43, %v2438_v21  ;;  %v2449_v51 = vshll.u32 %v9255_v46, 16  ;;  %v9280_v31 = vpop.f32.mrf.mxu1 }
 0x186   : > { %v1824_v1 = vrot.slane %v1823_v25, 4  ;;  %v2453_v56 = vshrl.u32 %v9255_v46, 16  ;;  %v2148_v2 = vsel %vm8192_vm13, %v2146_v59, %v2147_v38  ;;  %v2459_v6 = vshll.u32 %v2239_v8, 16  ;;  %v9284_v59 = vpop.f32.mrf.mxu0 }
 0x187   : > { %v2445_v63 = vrot.slane %v2443_v50, 5  ;;  %v11049_v4 = vor.u32 %v11047_v0, %v11048_v9  ;;  %4585 = vmatprep.mubr.bf16.mxu1 %v6295_v34  ;;  %v6264_v25 = vcombine.low %v2145_v17, %v2148_v2  ;;  %v2451_v21 = vrot.slane %v2449_v51, 5  ;;  %v11050_v50 = vld [vmem:[#allocation36_spill] sm:$0xff] }
 0x188   : > { %v1829_v43 = vsel %vm8152_vm7, %v1824_v1, %v1828_v40  ;;  %v2455_v52 = vrot.slane %v2453_v56, 4  ;;  %4586 = vmatmul.mubr.bf16.gmra.mxu1 %v6279_v10  ;;  %v2461_v54 = vrot.slane %v2459_v6, 5  ;;  %v1840_v38 = vshll.u32 %v7593_v30, 16  ;;  %v9294_v40 = vld [vmem:[%s10879_s2] ss:$0 sm:$0xff]  ;;  %v9296_v10 = vpop.f32.mrf.mxu1 }
 0x189   : > { %v1838_v12 = vrot.slane %v11049_v4, 4  ;;  %v6247_v49 = vcombine.low %v1819_v58, %v1829_v43  ;;  %v2446_v18 = vor.u32 %v2445_v63, %v2442_v42  ;;  %v11051_v0 = vshrl.u32 %v11050_v50, 16  ;;  %v1631_v1 = vld [vmem:[#allocation2 + $0x80] sm:$0x1]  ;;  %v9318_v56 = vld [vmem:[#allocation2 + $0x88] sm:$0xf] }
 0x18a   : > { %v2456_v8 = vor.u32 %v2455_v52, %v2451_v21  ;;  %v1850_v4 = vshll.u32 %v9243_v11, 16  ;;  %v6280_v34 = vcombine.low %v9245_v7, %v9255_v46  ;;  %v1842_v30 = vrot.slane %v1840_v38, 5  ;;  %v2031_v11 = vld [vmem:[#allocation2 + $0x78] sm:$0xe]  ;;  %v9320_v2 = vpop.f32.mrf.mxu1 }
 0x18b   : > { %v1846_v9 = vrot.slane %v11051_v0, 4  ;;  %4425 = vmatmul.mubr.bf16.gmra.mxu0 %v6247_v49  ;;  %v2447_v6 = vrot.slane %v2446_v18, 4  ;;  %v6769_v52 = vadd.f32 %v9010_v14, %v8992_v22  ;;  %v6881_v58 = vadd.f32 %v9025_v35, %v9018_v24  ;;  %v9311_v35 = vld [vmem:[#allocation2 + $0x84] sm:$0xf]  ;;  %v9313_v49 = vpop.f32.mrf.mxu0 }
 0x18c   : > { %4432 = vmatprep.mubr.bf16.mxu0 %v6264_v25  ;;  %v2457_v17 = vrot.slane %v2456_v8, 4  ;;  %v1852_v7 = vrot.slane %v1850_v4, 5  ;;  %v6772_v46 = vadd.f32 %v9056_v13, %v9032_v36  ;;  %v6884_v42 = vadd.f32 %v9048_v15, %v9041_v28  ;;  %v7594_v15 = vld [vmem:[#allocation2 + $0x7c] sm:$0xf] }
 0x18d   : > { %v2452_v18 = vsel %vm8152_vm7, %v2447_v6, %v2451_v21  ;;  %v1843_v22 = vsel %vm8152_vm7, %v1838_v12, %v1842_v30  ;;  %v1847_v14 = vor.u32 %v1846_v9, %v1842_v30  ;;  %v4049_v24 = vadd.f32 %v6769_v52, %v9294_v40  ;;  %v2240_v21 = vld [vmem:[#allocation2 + $0x8c] sm:$0x1]  ;;  %v9324_v38 = vpop.f32.mrf.mxu0  ;;  %v9331_v9 = vpop.f32.mrf.mxu1 }
 0x18e   : > { %v2462_v36 = vsel %vm8152_vm7, %v2457_v17, %v2461_v54  ;;  %v4052_v13 = vadd.f32 %v6772_v46, %v9294_v40  ;;  %v6153_v28 = vrot.slane %v2031_v11, 9  ;;  %v2151_v51 = vrot.slane %v7594_v15, 5 }
 0x18f   : > { %v6296_v63 = vcombine.low %v2452_v18, %v2462_v36  ;;  %v1848_v12 = vrot.slane %v1847_v14, 4  ;;  %v9322_v43 = vadd.f32 %v6881_v58, %v4049_v24  ;;  %v2154_v25 = vrot.slane %v1631_v1, 5  ;;  %v9338_v58 = vpop.f32.mrf.mxu0  ;;  %v9342_v18 = vpop.f32.mrf.mxu1 }
 0x190   : > { %v9326_v8 = vadd.f32 %v6884_v42, %v4052_v13  ;;  %v2152_v54 = vsel %vm8192_vm13, %v6153_v28, %v2151_v51  ;;  %v2153_v50 = vrot.slane %v2151_v51, 4  ;;  %v2464_v0 = vshrl.u32 %v9311_v35, 16  ;;  %v9344_v13 = vld [vmem:[#allocation2 + $0xc4] sm:$0xf]  ;;  %v11062_v28 = vld [vmem:[#allocation40_spill] sm:$0xff] }
 0x191   : > { %11052 = vst [vmem:[#allocation39_spill] sm:$0xff] %v9322_v43  ;;  %4593 = vmatprep.mubr.bf16.mxu1 %v6296_v63  ;;  %v1853_v4 = vsel %vm8152_vm7, %v1848_v12, %v1852_v7  ;;  %v2467_v6 = vshll.u32 %v9311_v35, 16  ;;  %v2473_v30 = vshll.u32 %v9318_v56, 16  ;;  %v2477_v52 = vshrl.u32 %v9318_v56, 16  ;;  %v9350_v12 = vpop.f32.mrf.mxu0 }
 0x192   : > { %11053 = vst [vmem:[#allocation38_spill] sm:$0xff] %v9326_v8  ;;  %v6248_v11 = vcombine.low %v1843_v22, %v1853_v4  ;;  %4594 = vmatmul.mubr.bf16.gmra.mxu1 %v6280_v34  ;;  %v2155_v17 = vsel %vm8192_vm13, %v2153_v50, %v2154_v25  ;;  %v2466_v46 = vrot.slane %v2464_v0, 4  ;;  %v2483_v42 = vshll.u32 %v2240_v21, 16 }
 0x193   : > { %v6265_v14 = vcombine.low %v2152_v54, %v2155_v17  ;;  %v2469_v24 = vrot.slane %v2467_v6, 5  ;;  %v2475_v7 = vrot.slane %v2473_v30, 5  ;;  %v2479_v36 = vrot.slane %v2477_v52, 4  ;;  %v11055_v54 = vld [vmem:[#allocation37_spill] sm:$0xff]  ;;  %v9354_v6 = vpop.f32.mrf.mxu1 }
 0x194   : > { %4433 = vmatmul.mubr.bf16.gmra.mxu0 %v6248_v11  ;;  %v2485_v51 = vrot.slane %v2483_v42, 5  ;;  %v11054_v34 = vor.u32 %v8641_v55, %v8639_v29  ;;  %v1864_v63 = vshll.u32 %v7594_v15, 16  ;;  %v11056_v50 = vshrl.u32 %v11055_v54, 16  ;;  %v2032_v15 = vld [vmem:[#allocation2 + $0x84] sm:$0xe] }
 0x195   : > { %4440 = vmatprep.mubr.bf16.mxu0 %v6265_v14  ;;  %v2470_v25 = vor.u32 %v2469_v24, %v2466_v46  ;;  %v2480_v21 = vor.u32 %v2479_v36, %v2475_v7  ;;  %v1874_v4 = vshll.u32 %v1631_v1, 16  ;;  %v6281_v52 = vcombine.low %v9311_v35, %v9318_v56  ;;  %v9378_v36 = vld [vmem:[#allocation2 + $0x94] sm:$0xf] }
 0x196   : > { %v1862_v22 = vrot.slane %v11054_v34, 4  ;;  %v1870_v0 = vrot.slane %v11056_v50, 4  ;;  %v1866_v30 = vrot.slane %v1864_v63, 5  ;;  %v6775_v29 = vadd.f32 %v9083_v60, %v9075_v39  ;;  %v1632_v39 = vld [vmem:[#allocation2 + $0x8c] sm:$0x1]  ;;  %11057 = vst [vmem:[#allocation36_spill] sm:$0xff] %v9378_v36  ;;  %v9380_v34 = vpop.f32.mrf.mxu1 }
 0x197   : > { %v6887_v55 = vadd.f32 %v9085_v61, %v9065_v23  ;;  %v2471_v11 = vrot.slane %v2470_v25, 4  ;;  %v2481_v17 = vrot.slane %v2480_v21, 4  ;;  %v1876_v46 = vrot.slane %v1874_v4, 5  ;;  %v9369_v60 = vld [vmem:[#allocation2 + $0x90] sm:$0xf]  ;;  %v9371_v23 = vpop.f32.mrf.mxu0 }
 0x198   : > { %v6778_v42 = vadd.f32 %v9105_v37, %v9097_v33  ;;  %v1867_v1 = vsel %vm8152_vm7, %v1862_v22, %v1866_v30  ;;  %v1871_v14 = vor.u32 %v1870_v0, %v1866_v30  ;;  %v4057_v24 = vadd.f32 %v6775_v29, %v9294_v40  ;;  %v7596_v63 = vld [vmem:[#allocation2 + $0x88] sm:$0xf]  ;;  %v2241_v50 = vld [vmem:[#allocation2 + $0x98] sm:$0x1]  ;;  %v9390_v4 = vpop.f32.mrf.mxu1 }
 0x199   : > { %v6890_v35 = vadd.f32 %v9122_v48, %v9103_v20  ;;  %v2476_v61 = vsel %vm8152_vm7, %v2471_v11, %v2475_v7  ;;  %v2486_v33 = vsel %vm8152_vm7, %v2481_v17, %v2485_v51  ;;  %v6154_v56 = vrot.slane %v2032_v15, 9  ;;  %v9384_v21 = vpop.f32.mrf.mxu0 }
 0x19a   : > { %v4060_v37 = vadd.f32 %v6778_v42, %v9294_v40  ;;  %v6297_v22 = vcombine.low %v2476_v61, %v2486_v33  ;;  %v1872_v20 = vrot.slane %v1871_v14, 4  ;;  %v9382_v48 = vadd.f32 %v6887_v55, %v4057_v24 }
 0x19b   : > { %v2158_v25 = vrot.slane %v7596_v63, 5  ;;  %v2161_v7 = vrot.slane %v1632_v39, 5  ;;  %v2488_v51 = vshrl.u32 %v9369_v60, 16  ;;  %v2491_v0 = vshll.u32 %v9369_v60, 16  ;;  %v9397_v11 = vpop.f32.mrf.mxu0 }
 0x19c   : > { %11058 = vst [vmem:[#allocation37_spill] sm:$0xff] %v9382_v48  ;;  %v9386_v54 = vadd.f32 %v6890_v35, %v4060_v37  ;;  %4601 = vmatprep.mubr.bf16.mxu1 %v6297_v22  ;;  %v1877_v30 = vsel %vm8152_vm7, %v1872_v20, %v1876_v46  ;;  %v2497_v15 = vshll.u32 %v9378_v36, 16  ;;  %v2501_v24 = vshrl.u32 %v9378_v36, 16  ;;  %v9400_v35 = vpop.f32.mrf.mxu1  ;;  %v11060_v37 = vld [vmem:[#allocation41_spill] sm:$0xff] }
 0x19d   : > { %v2159_v29 = vsel %vm8192_vm13, %v6154_v56, %v2158_v25  ;;  %v2160_v55 = vrot.slane %v2158_v25, 4  ;;  %v6249_v17 = vcombine.low %v1867_v1, %v1877_v30  ;;  %4602 = vmatmul.mubr.bf16.gmra.mxu1 %v6281_v52  ;;  %v2490_v42 = vrot.slane %v2488_v51, 4  ;;  %v11061_v56 = vld [vmem:[#allocation42_spill] sm:$0xff]  ;;  %v9406_v20 = vpop.f32.mrf.mxu0 }
 0x19e   : > { %11059 = vst [vmem:[#allocation60_spill] sm:$0xff] %v9386_v54  ;;  %v2493_v14 = vrot.slane %v2491_v0, 5  ;;  %v2499_v46 = vrot.slane %v2497_v15, 5  ;;  %v2507_v33 = vshll.u32 %v2241_v50, 16  ;;  %v1885_v22 = vor.u32 %v11061_v56, %v11060_v37  ;;  %v2033_v37 = vld [vmem:[#allocation2 + $0x90] sm:$0xe]  ;;  %v9412_v56 = vpop.f32.mrf.mxu1 }
 0x19f   : > { %v2162_v61 = vsel %vm8192_vm13, %v2160_v55, %v2161_v7  ;;  %4441 = vmatmul.mubr.bf16.gmra.mxu0 %v6249_v17  ;;  %v2503_v52 = vrot.slane %v2501_v24, 4  ;;  %v1888_v51 = vshll.u32 %v7596_v63, 16  ;;  %v11063_v54 = vshrl.u32 %v11062_v28, 16  ;;  %v9428_v24 = vld [vmem:[#allocation2 + $0x9c] sm:$0xf] }
 0x1a0   : > { %v6266_v25 = vcombine.low %v2159_v29, %v2162_v61  ;;  %v2494_v1 = vor.u32 %v2493_v14, %v2490_v42  ;;  %v2509_v0 = vrot.slane %v2507_v33, 5  ;;  %v1886_v30 = vrot.slane %v1885_v22, 4  ;;  %v9439_v22 = vld [vmem:[#allocation2 + $0xa0] sm:$0xf] }
 0x1a1   : > { %v1894_v48 = vrot.slane %v11063_v54, 4  ;;  %v1898_v8 = vshll.u32 %v1632_v39, 16  ;;  %v2504_v55 = vor.u32 %v2503_v52, %v2499_v46  ;;  %v1890_v50 = vrot.slane %v1888_v51, 5  ;;  %v9420_v39 = vld [vmem:[#allocation2 + $0x98] sm:$0x1]  ;;  %v9422_v54 = vpop.f32.mrf.mxu0  ;;  %11064 = vst [vmem:[#allocation41_spill] sm:$0xff] %v9439_v22 }
 0x1a2   : > { %4448 = vmatprep.mubr.bf16.mxu0 %v6266_v25  ;;  %v2495_v7 = vrot.slane %v2494_v1, 4  ;;  %v6282_v15 = vcombine.low %v9369_v60, %v9378_v36  ;;  %v6781_v63 = vadd.f32 %v9130_v5, %v9115_v53  ;;  %v6893_v17 = vadd.f32 %v9152_v16, %v9145_v47  ;;  %v9441_v25 = vpop.f32.mrf.mxu1 }
 0x1a3   : > { %v1900_v29 = vrot.slane %v1898_v8, 5  ;;  %v6784_v28 = vadd.f32 %v9175_v44, %v9154_v19  ;;  %v2505_v42 = vrot.slane %v2504_v55, 4  ;;  %v1891_v8 = vsel %vm8152_vm7, %v1886_v30, %v1890_v50  ;;  %v9434_v19 = vpop.f32.mrf.mxu0 }
 0x1a4   : > { %v2500_v60 = vsel %vm8152_vm7, %v2495_v7, %v2499_v46  ;;  %v1895_v14 = vor.u32 %v1894_v48, %v1890_v50  ;;  %v4065_v53 = vadd.f32 %v6781_v63, %v9294_v40  ;;  %v6896_v47 = vadd.f32 %v9177_v57, %v9163_v41  ;;  %v7597_v46 = vld [vmem:[#allocation2 + $0x94] sm:$0xf]  ;;  %v9447_v41 = vld [vmem:[#allocation2 + $0xa4] sm:$0x1]  ;;  %v9455_v50 = vpop.f32.mrf.mxu1 }
 0x1a5   : > { %v4068_v5 = vadd.f32 %v6784_v28, %v9294_v40  ;;  %v6155_v16 = vrot.slane %v2033_v37, 9  ;;  %v2510_v44 = vsel %vm8152_vm7, %v2505_v42, %v2509_v0  ;;  %v2165_v33 = vrot.slane %v7597_v46, 5  ;;  %11067 = vst [vmem:[#allocation61_spill] sm:$0xff] %v9447_v41  ;;  %v9457_v37 = vpop.f32.mrf.mxu0 }
 0x1a6   : > { %v1896_v61 = vrot.slane %v1895_v14, 4  ;;  %v2168_v48 = vrot.slane %v9420_v39, 5  ;;  %v6298_v1 = vcombine.low %v2500_v60, %v2510_v44  ;;  %v9443_v52 = vadd.f32 %v6893_v17, %v4065_v53 }
 0x1a7   : > { %v9445_v51 = vadd.f32 %v6896_v47, %v4068_v5  ;;  %v2512_v57 = vshrl.u32 %v9428_v24, 16  ;;  %v2166_v30 = vsel %vm8192_vm13, %v6155_v16, %v2165_v33  ;;  %v2167_v7 = vrot.slane %v2165_v33, 4  ;;  %v9468_v47 = vpop.f32.mrf.mxu1  ;;  %v11070_v33 = vld [vmem:[#allocation44_spill] sm:$0xff] }
 0x1a8   : > { %11065 = vst [vmem:[#allocation42_spill] sm:$0xff] %v9443_v52  ;;  %v1901_v0 = vsel %vm8152_vm7, %v1896_v61, %v1900_v29  ;;  %v2515_v55 = vshll.u32 %v9428_v24, 16  ;;  %4609 = vmatprep.mubr.bf16.mxu1 %v6298_v1  ;;  %v2521_v28 = vshll.u32 %v9439_v22, 16  ;;  %v2525_v60 = vshrl.u32 %v9439_v22, 16  ;;  %v11069_v61 = vld [vmem:[#allocation43_spill] sm:$0xff]  ;;  %v9474_v52 = vpop.f32.mrf.mxu0 }
 0x1a9   : > { %11066 = vst [vmem:[#allocation40_spill] sm:$0xff] %v9445_v51  ;;  %v6250_v63 = vcombine.low %v1891_v8, %v1901_v0  ;;  %v2514_v17 = vrot.slane %v2512_v57, 4  ;;  %v11068_v42 = vshll.u32 %v8937_v3, 16  ;;  %4610 = vmatmul.mubr.bf16.gmra.mxu1 %v6282_v15  ;;  %v2169_v14 = vsel %vm8192_vm13, %v2167_v7, %v2168_v48  ;;  %v9476_v48 = vpop.f32.mrf.mxu1 }
 0x1aa   : > { %v2517_v53 = vrot.slane %v2515_v55, 5  ;;  %v2531_v5 = vshll.u32 %v9447_v41, 16  ;;  %v6267_v8 = vcombine.low %v2166_v30, %v2169_v14  ;;  %v2523_v16 = vrot.slane %v2521_v28, 5 }
 0x1ab   : > { %v9463_v29 = vrot.slane %v11068_v42, 5  ;;  %4449 = vmatmul.mubr.bf16.gmra.mxu0 %v6250_v63  ;;  %v2527_v44 = vrot.slane %v2525_v60, 4  ;;  %v1909_v1 = vor.u32 %v11070_v33, %v11069_v61  ;;  %v1912_v0 = vshll.u32 %v7597_v46, 16  ;;  %v11071_v42 = vld [vmem:[#allocation45_spill] sm:$0xff]  ;;  %v9485_v61 = vpop.f32.mrf.mxu1  ;;  %v11074_v33 = vld [vmem:[#allocation28_spill] sm:$0xff] }
 0x1ac   : > { %v2518_v57 = vor.u32 %v2517_v53, %v2514_v17  ;;  %v2533_v3 = vrot.slane %v2531_v5, 5  ;;  %v11072_v15 = vshrl.u32 %v11071_v42, 16  ;;  %4456 = vmatprep.mubr.bf16.mxu0 %v6267_v8  ;;  %v1922_v30 = vshll.u32 %v9420_v39, 16  ;;  %v11073_v17 = vld [vmem:[#allocation29_spill] sm:$0xff]  ;;  %v1634_v53 = vld [vmem:[#allocation2 + $0xa4] sm:$0x1] }
 0x1ad   : > { %v2528_v7 = vor.u32 %v2527_v44, %v2523_v16  ;;  %v1910_v55 = vrot.slane %v1909_v1, 4  ;;  %v6283_v63 = vcombine.low %v9428_v24, %v9439_v22  ;;  %v1914_v60 = vrot.slane %v1912_v0, 5  ;;  %v2034_v5 = vld [vmem:[#allocation2 + $0x9c] sm:$0xe]  ;;  %v11075_v1 = vld [vmem:[#allocation32_spill] sm:$0xff]  ;;  %v11076_v42 = vld [vmem:[#allocation27_spill] sm:$0xff] }
 0x1ae   : > { %v1918_v51 = vrot.slane %v11072_v15, 4  ;;  %v2519_v28 = vrot.slane %v2518_v57, 4  ;;  %v6787_v46 = vadd.f32 %v9208_v27, %v9194_v32  ;;  %v6899_v14 = vadd.f32 %v11073_v17, %v9183_v62  ;;  %v11077_v15 = vld [vmem:[#allocation31_spill] sm:$0xff]  ;;  %v9498_v17 = vpop.f32.mrf.mxu0 }
 0x1af   : > { %v2529_v8 = vrot.slane %v2528_v7, 4  ;;  %v1924_v44 = vrot.slane %v1922_v30, 5  ;;  %v6790_v39 = vadd.f32 %v11075_v1, %v11074_v33  ;;  %v6902_v24 = vadd.f32 %v11077_v15, %v11076_v42  ;;  %v9496_v0 = vld [vmem:[#allocation2 + $0xa8] sm:$0xf] }
 0x1b0   : > { %v2524_v57 = vsel %vm8152_vm7, %v2519_v28, %v2523_v16  ;;  %v1915_v32 = vsel %vm8152_vm7, %v1910_v55, %v1914_v60  ;;  %v1919_v27 = vor.u32 %v1918_v51, %v1914_v60  ;;  %v4073_v62 = vadd.f32 %v6787_v46, %v9294_v40  ;;  %v7598_v28 = vld [vmem:[#allocation2 + $0xa0] sm:$0xf]  ;;  %v9505_v51 = vld [vmem:[#allocation2 + $0xac] sm:$0xf]  ;;  %v9507_v60 = vpop.f32.mrf.mxu0  ;;  %v9509_v46 = vpop.f32.mrf.mxu1 }
 0x1b1   : > { %v2534_v7 = vsel %vm8152_vm7, %v2529_v8, %v2533_v3  ;;  %v4076_v30 = vadd.f32 %v6790_v39, %v9294_v40  ;;  %v1946_v33 = vshll.u32 %v1634_v53, 16  ;;  %v6156_v1 = vrot.slane %v2034_v5, 9  ;;  %11079 = vst [vmem:[#allocation44_spill] sm:$0xff] %v9505_v51  ;;  %v9517_v5 = vld [vmem:[#allocation2 + $0xb0] sm:$0x1] }
 0x1b2   : > { %v6299_v42 = vcombine.low %v2524_v57, %v2534_v7  ;;  %v1920_v15 = vrot.slane %v1919_v27, 4  ;;  %v9503_v16 = vadd.f32 %v6899_v14, %v4073_v62  ;;  %v2172_v55 = vrot.slane %v7598_v28, 5  ;;  %11082 = vst [vmem:[#allocation29_spill] sm:$0xff] %v9517_v5  ;;  %v9525_v7 = vpop.f32.mrf.mxu0 }
 0x1b3   : > { %v11080_v43 = vshrl.u32 %v9344_v13, 16  ;;  %v9515_v3 = vadd.f32 %v6902_v24, %v4076_v30  ;;  %v2175_v8 = vrot.slane %v1634_v53, 5  ;;  %v2536_v14 = vshrl.u32 %v9496_v0, 16 }
 0x1b4   : > { %11078 = vst [vmem:[#allocation43_spill] sm:$0xff] %v9503_v16  ;;  %4617 = vmatprep.mubr.bf16.mxu1 %v6299_v42  ;;  %v1925_v39 = vsel %vm8152_vm7, %v1920_v15, %v1924_v44  ;;  %v2173_v57 = vsel %vm8192_vm13, %v6156_v1, %v2172_v55  ;;  %v2174_v27 = vrot.slane %v2172_v55, 4  ;;  %v2539_v62 = vshll.u32 %v9496_v0, 16  ;;  %v9532_v1 = vpop.f32.mrf.mxu1  ;;  %v9534_v55 = vpop.f32.mrf.mxu0 }
 0x1b5   : > { %v9513_v41 = vrot.slane %v11080_v43, 4  ;;  %11081 = vst [vmem:[#allocation45_spill] sm:$0xff] %v9515_v3  ;;  %v6251_v43 = vcombine.low %v1915_v32, %v1925_v39  ;;  %4618 = vmatmul.mubr.bf16.gmra.mxu1 %v6283_v63  ;;  %v2538_v24 = vrot.slane %v2536_v14, 4  ;;  %v2545_v53 = vshll.u32 %v9505_v51, 16  ;;  %11083 = vst [vmem:[#allocation28_spill] sm:$0xff] %v9532_v1  ;;  %v11085_v14 = vld [vmem:[#allocation47_spill] sm:$0xff] }
 0x1b6   : > { %v2549_v30 = vshrl.u32 %v9505_v51, 16  ;;  %v1948_v28 = vrot.slane %v1946_v33, 5  ;;  %v2176_v42 = vsel %vm8192_vm13, %v2174_v27, %v2175_v8  ;;  %v2541_v44 = vrot.slane %v2539_v62, 5  ;;  %11084 = vst [vmem:[#allocation32_spill] sm:$0xff] %v9534_v55  ;;  %v11086_v39 = vld [vmem:[#allocation48_spill] sm:$0xff]  ;;  %v11087_v33 = vld [vmem:[#allocation49_spill] sm:$0xff] }
 0x1b7   : > { %v2555_v15 = vshll.u32 %v9517_v5, 16  ;;  %4457 = vmatmul.mubr.bf16.gmra.mxu0 %v6251_v43  ;;  %v6268_v3 = vcombine.low %v2173_v57, %v2176_v42  ;;  %v2547_v32 = vrot.slane %v2545_v53, 5  ;;  %v1943_v16 = vor.u32 %v11086_v39, %v11085_v14  ;;  %v11088_v27 = vld [vmem:[#allocation30_spill] sm:$0xff]  ;;  %v11089_v62 = vld [vmem:[#allocation35_spill] sm:$0xff]  ;;  %v11091_v53 = vld [vmem:[#allocation33_spill] sm:$0xff] }
 0x1b8   : > { %v2551_v63 = vrot.slane %v2549_v30, 4  ;;  %v2542_v22 = vor.u32 %v2541_v44, %v2538_v24  ;;  %v1939_v8 = vsel %vm8152_vm7, %v11087_v33, %v11085_v14  ;;  %v6793_v5 = vadd.f32 %v11089_v62, %v11088_v27  ;;  %v2035_v1 = vld [vmem:[#allocation2 + $0xa8] sm:$0xe]  ;;  %v11090_v57 = vld [vmem:[#allocation34_spill] sm:$0xff]  ;;  %v1635_v24 = vld [vmem:[#allocation2 + $0xb0] sm:$0x1]  ;;  %v9548_v44 = vpop.f32.mrf.mxu0 }
 0x1b9   : > { %v2557_v36 = vrot.slane %v2555_v15, 5  ;;  %4464 = vmatprep.mubr.bf16.mxu0 %v6268_v3  ;;  %v1944_v43 = vrot.slane %v1943_v16, 4  ;;  %v6905_v30 = vadd.f32 %v11091_v53, %v11090_v57  ;;  %v11092_v42 = vld [vmem:[#allocation59_spill] sm:$0xff]  ;;  %11093 = vst [vmem:[#allocation27_spill] sm:$0xff] %v9548_v44  ;;  %v6284_v14 = vcombine.low %v9496_v0, %v9505_v51  ;;  %v9560_v57 = vld [vmem:[#allocation2 + $0xb4] sm:$0xf] }
 0x1ba   : > { %v2552_v55 = vor.u32 %v2551_v63, %v2547_v32  ;;  %v6796_v39 = vadd.f32 %v9284_v59, %v11092_v42  ;;  %v2543_v15 = vrot.slane %v2542_v22, 4  ;;  %v4081_v33 = vadd.f32 %v6793_v5, %v9294_v40  ;;  %v9555_v63 = vpop.f32.mrf.mxu1  ;;  %v9562_v22 = vld [vmem:[#allocation2 + $0xb8] sm:$0xf] }
 0x1bb   : > { %v6908_v3 = vadd.f32 %v9296_v10, %v9280_v31  ;;  %v1949_v27 = vsel %vm8152_vm7, %v1944_v43, %v1948_v28  ;;  %v6157_v62 = vrot.slane %v2035_v1, 9  ;;  %11094 = vst [vmem:[#allocation31_spill] sm:$0xff] %v9562_v22  ;;  %v1970_v31 = vshll.u32 %v1635_v24, 16  ;;  %v9568_v10 = vld [vmem:[#allocation2 + $0xbc] sm:$0x1] }
 0x1bc   : > { %v2553_v16 = vrot.slane %v2552_v55, 4  ;;  %v4084_v59 = vadd.f32 %v6796_v39, %v9294_v40  ;;  %v2548_v0 = vsel %vm8152_vm7, %v2543_v15, %v2547_v32  ;;  %v6252_v5 = vcombine.low %v1939_v8, %v1949_v27  ;;  %11096 = vst [vmem:[#allocation48_spill] sm:$0xff] %v9568_v10  ;;  %v9570_v55 = vpop.f32.mrf.mxu0  ;;  %v7599_v1 = vld [vmem:[#allocation2 + $0xac] sm:$0xf] }
 0x1bd   : > { %v9566_v53 = vadd.f32 %v6905_v30, %v4081_v33  ;;  %11097 = vst [vmem:[#allocation49_spill] sm:$0xff] %v9570_v55  ;;  %v2179_v42 = vrot.slane %v7599_v1, 5  ;;  %v2182_v39 = vrot.slane %v1635_v24, 5  ;;  %v2560_v44 = vshrl.u32 %v9560_v57, 16  ;;  %v9579_v30 = vpop.f32.mrf.mxu1  ;;  %v11101_v55 = vld [vmem:[#allocation50_spill] sm:$0xff] }
 0x1be   : > { %v2558_v28 = vsel %vm8152_vm7, %v2553_v16, %v2557_v36  ;;  %v9574_v43 = vadd.f32 %v6908_v3, %v4084_v59  ;;  %v2563_v32 = vshll.u32 %v9560_v57, 16  ;;  %v2569_v8 = vshll.u32 %v9562_v22, 16  ;;  %11099 = vst [vmem:[#allocation35_spill] sm:$0xff] %v9579_v30  ;;  %v9585_v16 = vld [vmem:[#allocation2 + $0x44] sm:$0x1]  ;;  %v9590_v1 = vpop.f32.mrf.mxu0  ;;  %v11100_v30 = vld [vmem:[#allocation51_spill] sm:$0xff] }
 0x1bf   : > { %11095 = vst [vmem:[#allocation47_spill] sm:$0xff] %v9566_v53  ;;  %v6300_v51 = vcombine.low %v2548_v0, %v2558_v28  ;;  %4465 = vmatmul.mubr.bf16.gmra.mxu0 %v6252_v5  ;;  %v2180_v15 = vsel %vm8192_vm13, %v6157_v62, %v2179_v42  ;;  %v2181_v33 = vrot.slane %v2179_v42, 4  ;;  %v2573_v36 = vshrl.u32 %v9562_v22, 16  ;;  %v9588_v28 = vpop.f32.mrf.mxu1 }
 0x1c0   : > { %11098 = vst [vmem:[#allocation30_spill] sm:$0xff] %v9574_v43  ;;  %v2579_v3 = vshll.u32 %v9568_v10, 16  ;;  %v2562_v27 = vrot.slane %v2560_v44, 4  ;;  %v2565_v59 = vrot.slane %v2563_v32, 5  ;;  %v2571_v0 = vrot.slane %v2569_v8, 5  ;;  %v11102_v44 = vld [vmem:[#allocation52_spill] sm:$0xff] }
 0x1c1   : > { %4625 = vmatprep.mubr.bf16.mxu1 %v6300_v51  ;;  %v1972_v5 = vrot.slane %v1970_v31, 5  ;;  %v2183_v62 = vsel %vm8192_vm13, %v2181_v33, %v2182_v39  ;;  %v2575_v42 = vrot.slane %v2573_v36, 4  ;;  %v1963_v51 = vsel %vm8152_vm7, %v11101_v55, %v11100_v30  ;;  %v2036_v8 = vld [vmem:[#allocation2 + $0xb4] sm:$0xe]  ;;  %v9600_v24 = vpop.f32.mrf.mxu1  ;;  %v1636_v33 = vld [vmem:[#allocation2 + $0xbc] sm:$0x1] }
 0x1c2   : > { %4626 = vmatmul.mubr.bf16.gmra.mxu1 %v6284_v14  ;;  %v2581_v43 = vrot.slane %v2579_v3, 5  ;;  %v6269_v53 = vcombine.low %v2180_v15, %v2183_v62  ;;  %v2566_v10 = vor.u32 %v2565_v59, %v2562_v27  ;;  %v1967_v32 = vor.u32 %v11102_v44, %v11100_v30  ;;  %v9612_v27 = vpop.f32.mrf.mxu0  ;;  %v9624_v62 = vld [vmem:[#allocation2 + $0xc4] sm:$0xf] }
 0x1c3   : > { %v2576_v14 = vor.u32 %v2575_v42, %v2571_v0  ;;  %v6799_v31 = vadd.f32 %v9324_v38, %v9313_v49  ;;  %v6911_v39 = vadd.f32 %v9331_v9, %v9320_v2  ;;  %v6802_v15 = vadd.f32 %v9350_v12, %v9338_v58  ;;  %v9614_v59 = vpop.f32.mrf.mxu1  ;;  %v973_v58 = vld [vmem:[#allocation2 + $0xc8] sm:$0x1] }
 0x1c4   : > { %4472 = vmatprep.mubr.bf16.mxu0 %v6269_v53  ;;  %v2567_v36 = vrot.slane %v2566_v10, 4  ;;  %v1968_v55 = vrot.slane %v1967_v32, 4  ;;  %v6285_v30 = vcombine.low %v9560_v57, %v9562_v22  ;;  %v6914_v3 = vadd.f32 %v9354_v6, %v9342_v18  ;;  %v7601_v10 = vld [vmem:[#allocation2 + $0xb8] sm:$0xf]  ;;  %v9622_v6 = vld [vmem:[#allocation2 + $0xc0] sm:$0xf] }
 0x1c5   : > { %v2577_v49 = vrot.slane %v2576_v14, 4  ;;  %v4089_v2 = vadd.f32 %v6799_v31, %v9294_v40  ;;  %v4092_v38 = vadd.f32 %v6802_v15, %v9294_v40  ;;  %v6158_v9 = vrot.slane %v2036_v8, 9  ;;  %v9626_v42 = vpop.f32.mrf.mxu1 }
 0x1c6   : > { %v2572_v12 = vsel %vm8152_vm7, %v2567_v36, %v2571_v0  ;;  %v1973_v57 = vsel %vm8152_vm7, %v1968_v55, %v1972_v5  ;;  %v1994_v53 = vshll.u32 %v1636_v33, 16  ;;  %v2186_v18 = vrot.slane %v7601_v10, 5  ;;  %11103 = vst [vmem:[#allocation34_spill] sm:$0xff] %v9626_v42  ;;  %v9636_v36 = vpop.f32.mrf.mxu0  ;;  %v11106_v55 = vld [vmem:[#allocation53_spill] sm:$0xff] }
 0x1c7   : > { %v2582_v44 = vsel %vm8152_vm7, %v2577_v49, %v2581_v43  ;;  %v6253_v32 = vcombine.low %v1963_v51, %v1973_v57  ;;  %v9630_v8 = vadd.f32 %v6911_v39, %v4089_v2  ;;  %v9632_v14 = vadd.f32 %v6914_v3, %v4092_v38  ;;  %v9645_v3 = vpop.f32.mrf.mxu1  ;;  %v11109_v38 = vld [vmem:[#allocation54_spill] sm:$0xff] }
 0x1c8   : > { %v6301_v0 = vcombine.low %v2572_v12, %v2582_v44  ;;  %v2187_v5 = vsel %vm8192_vm13, %v6158_v9, %v2186_v18  ;;  %v2188_v31 = vrot.slane %v2186_v18, 4  ;;  %v2189_v15 = vrot.slane %v1636_v33, 5  ;;  %v11110_v9 = vld [vmem:[#allocation55_spill] sm:$0xff] }
 0x1c9   : > { %11104 = vst [vmem:[#allocation33_spill] sm:$0xff] %v9630_v8  ;;  %11105 = vst [vmem:[#allocation59_spill] sm:$0xff] %v9632_v14  ;;  %4473 = vmatmul.mubr.bf16.gmra.mxu0 %v6253_v32  ;;  %v11107_v10 = vrot.slane %v11106_v55, 4  ;;  %v2584_v43 = vshrl.u32 %v9622_v6, 16  ;;  %v2587_v51 = vshll.u32 %v9622_v6, 16  ;;  %v2593_v39 = vshll.u32 %v9624_v62, 16 }
 0x1ca   : > { %4633 = vmatprep.mubr.bf16.mxu1 %v6301_v0  ;;  %v1996_v49 = vrot.slane %v1994_v53, 5  ;;  %v2190_v33 = vsel %vm8192_vm13, %v2188_v31, %v2189_v15  ;;  %v2597_v2 = vshrl.u32 %v9624_v62, 16  ;;  %v1991_v22 = vor.u32 %v11110_v9, %v11109_v38  ;;  %v2037_v32 = vld [vmem:[#allocation2 + $0xc0] sm:$0xe]  ;;  %v11111_v53 = vld [vmem:[#allocation56_spill] sm:$0xff] }
 0x1cb   : > { %v974_v42 = vsel %vm8171_vm11, %v11107_v10, %v973_v58  ;;  %v9652_v58 = vpop.f32.mrf.mxu0  ;;  %4634 = vmatmul.mubr.bf16.gmra.mxu1 %v6285_v30  ;;  %v6270_v12 = vcombine.low %v2187_v5, %v2190_v33  ;;  %v2586_v57 = vrot.slane %v2584_v43, 4  ;;  %v2589_v18 = vrot.slane %v2587_v51, 5  ;;  %v9668_v51 = vld [vmem:[#allocation2 + $0xcc] sm:$0xf] }
 0x1cc   : > { %975 = vst [vmem:[#allocation2 + $0xc8] sm:$0x1] %v974_v42  ;;  %v2595_v44 = vrot.slane %v2593_v39, 5  ;;  %v2599_v55 = vrot.slane %v2597_v2, 4  ;;  %v1987_v0 = vsel %vm8152_vm7, %v11111_v53, %v11109_v38  ;;  %v1992_v42 = vrot.slane %v1991_v22, 4  ;;  %v9670_v39 = vpop.f32.mrf.mxu1 }
 0x1cd   : > { %v6805_v31 = vadd.f32 %v9384_v21, %v9371_v23  ;;  %v9660_v15 = vpop.f32.mrf.mxu0  ;;  %4480 = vmatprep.mubr.bf16.mxu0 %v6270_v12  ;;  %v2590_v10 = vor.u32 %v2589_v18, %v2586_v57  ;;  %v6917_v5 = vadd.f32 %v9390_v4, %v9380_v34  ;;  %v6808_v43 = vadd.f32 %v9406_v20, %v9397_v11  ;;  %v9681_v11 = vld [vmem:[#allocation2 + $0xd0] sm:$0xf]  ;;  %v9685_v57 = vld [vmem:[#allocation2 + $0xd4] sm:$0x1] }
 0x1ce   : > { %v2600_v33 = vor.u32 %v2599_v55, %v2595_v44  ;;  %v1997_v23 = vsel %vm8152_vm7, %v1992_v42, %v1996_v49  ;;  %v6159_v2 = vrot.slane %v2037_v32, 9  ;;  %v6920_v34 = vadd.f32 %v9412_v56, %v9400_v35 }
 0x1cf   : > { %v4097_v21 = vadd.f32 %v6805_v31, %v9294_v40  ;;  %v9675_v38 = vpop.f32.mrf.mxu0  ;;  %v6254_v9 = vcombine.low %v1987_v0, %v1997_v23  ;;  %v4100_v22 = vadd.f32 %v6808_v43, %v9294_v40  ;;  %v2193_v4 = vrot.slane %v9344_v13, 5  ;;  %v9695_v0 = vpop.f32.mrf.mxu1 }
 0x1d0   : > { %v2591_v20 = vrot.slane %v2590_v10, 4  ;;  %v2608_v49 = vshrl.u32 %v9668_v51, 16  ;;  %v2611_v18 = vshll.u32 %v9668_v51, 16  ;;  %v2601_v55 = vrot.slane %v2600_v33, 4 }
 0x1d1   : > { %v9683_v12 = vadd.f32 %v6917_v5, %v4097_v21  ;;  %4481 = vmatmul.mubr.bf16.gmra.mxu0 %v6254_v9  ;;  %v9691_v53 = vadd.f32 %v6920_v34, %v4100_v22  ;;  %v2194_v13 = vsel %vm8192_vm13, %v6159_v2, %v2193_v4  ;;  %v2195_v56 = vrot.slane %v2193_v4, 4  ;;  %v9697_v42 = vpop.f32.mrf.mxu0 }
 0x1d2   : > { %v2610_v43 = vrot.slane %v2608_v49, 4  ;;  %v2613_v23 = vrot.slane %v2611_v18, 5  ;;  %v2617_v33 = vshll.u32 %v9681_v11, 16  ;;  %v2621_v21 = vshrl.u32 %v9681_v11, 16 }
 0x1d3   : > { %11112 = vst [vmem:[#allocation51_spill] sm:$0xff] %v9683_v12  ;;  %v9689_v32 = vld [vmem:[#allocation2 + $0xc8] sm:$0x1]  ;;  %11114 = vst [vmem:[#allocation52_spill] sm:$0xff] %v9691_v53  ;;  %v2627_v9 = vshll.u32 %v9685_v57, 16  ;;  %v9703_v22 = vpop.f32.mrf.mxu0  ;;  %v2596_v2 = vsel %vm8152_vm7, %v2591_v20, %v2595_v44  ;;  %v9709_v12 = vpop.f32.mrf.mxu1  ;;  %v2015_v20 = vor.u32 %v9513_v41, %v9463_v29  ;;  %v6814_v41 = vadd.f32 %v9474_v52, %v9457_v37 }
 0x1d4   : > { %11113 = vst [vmem:[#allocation50_spill] sm:$0xff] %v9689_v32  ;;  %v1637_v35 = vld [vmem:[#allocation2 + $0xc8] sm:$0x1]  ;;  %v2603_v31 = vshll.u32 %v9689_v32, 16  ;;  %v2619_v49 = vrot.slane %v2617_v33, 5  ;;  %v2623_v18 = vrot.slane %v2621_v21, 4 }
 0x1d5   : > { %v2018_v10 = vshll.u32 %v1637_v35, 16  ;;  %v2196_v5 = vrot.slane %v1637_v35, 5  ;;  %v2614_v35 = vor.u32 %v2613_v23, %v2610_v43  ;;  %v2629_v8 = vrot.slane %v2627_v9, 5  ;;  %v11115_v32 = vld [vmem:[#allocation58_spill] sm:$0xff] }
 0x1d6   : > { %v2605_v34 = vrot.slane %v2603_v31, 5  ;;  %v2011_v44 = vsel %vm8152_vm7, %v11115_v32, %v9463_v29  ;;  %v2631_v31 = vld [vmem:[#allocation2 + $0x18] sm:$0xe]  ;;  %v2016_v43 = vrot.slane %v2015_v20, 4  ;;  %v6811_v23 = vadd.f32 %v9434_v19, %v9422_v54  ;;  %v2632_v29 = vld [vmem:[#allocation2 + $0x24] sm:$0xe] }
 0x1d7   : > { %v2020_v4 = vrot.slane %v2018_v10, 5  ;;  %v2197_v30 = vsel %vm8192_vm13, %v2195_v56, %v2196_v5  ;;  %v6287_v10 = vcombine.low %v9668_v51, %v9681_v11  ;;  %v9721_v5 = vpop.f32.mrf.mxu1  ;;  %v6923_v32 = vadd.f32 %v9455_v50, %v9441_v25  ;;  %v7602_v50 = vld [vmem:[#allocation2 + $0x1c] sm:$0xf] }
 0x1d8   : > { %v6271_v53 = vcombine.low %v2194_v13, %v2197_v30  ;;  %v2606_v14 = vsel %vm8152_vm7, %v2601_v55, %v2605_v34  ;;  %v2615_v30 = vrot.slane %v2614_v35, 4  ;;  %v2624_v13 = vor.u32 %v2623_v18, %v2619_v49  ;;  %v9723_v55 = vpop.f32.mrf.mxu0  ;;  %v2633_v35 = vld [vmem:[#allocation2 + $0x30] sm:$0xe] }
 0x1d9   : > { %v6302_v56 = vcombine.low %v2596_v2, %v2606_v14  ;;  %v6160_v33 = vrot.slane %v2631_v31, 9  ;;  %v9735_v21 = vpop.f32.mrf.mxu1  ;;  %v11116_v54 = vcombine.low %v9622_v6, %v9624_v62  ;;  %v2021_v19 = vsel %vm8152_vm7, %v2016_v43, %v2020_v4  ;;  %v2634_v43 = vld [vmem:[#allocation2 + $0x3c] sm:$0xe] }
 0x1da   : > { %4488 = vmatprep.mubr.bf16.mxu0 %v6271_v53  ;;  %v2620_v14 = vsel %vm8152_vm7, %v2615_v30, %v2619_v49  ;;  %v2625_v51 = vrot.slane %v2624_v13, 4  ;;  %v6926_v53 = vadd.f32 %v9476_v48, %v9468_v47  ;;  %v4105_v25 = vadd.f32 %v6811_v23, %v9294_v40  ;;  %v7603_v48 = vld [vmem:[#allocation2 + $0x20] sm:$0x1]  ;;  %v9746_v49 = vpop.f32.mrf.mxu0  ;;  %v11119_v23 = vld [vmem:[#allocation57_spill] sm:$0xff] }
 0x1db   : > { %4641 = vmatprep.mubr.bf16.mxu1 %v6302_v56  ;;  %v4108_v52 = vadd.f32 %v6814_v41, %v9294_v40  ;;  %v2697_v37 = vrot.slane %v7602_v50, 5  ;;  %v6255_v47 = vcombine.low %v2011_v44, %v2021_v19  ;;  %v2700_v2 = vrot.slane %v7603_v48, 5  ;;  %v9754_v31 = vpop.f32.mrf.mxu1  ;;  %v11120_v41 = vld [vmem:[#allocation32_spill] sm:$0xff] }
 0x1dc   : > { %4642 = vmatmul.mubr.bf16.gmra.mxu1 %v11116_v54  ;;  %v2630_v9 = vsel %vm8152_vm7, %v2625_v51, %v2629_v8  ;;  %v6161_v34 = vrot.slane %v2632_v29, 9  ;;  %v9748_v18 = vadd.f32 %v6923_v32, %v4105_v25  ;;  %v11117_v8 = vld [vmem:[#allocation46_spill] sm:$0xff]  ;;  %v6817_v30 = vadd.f32 %v9507_v60, %v9498_v17  ;;  %v7568_v54 = vld [vmem:[%s8127_s22] sm:$0xff]   ;;  %v7604_v60 = vld [vmem:[#allocation2 + $0x34] sm:$0xf]  ;;  %v9773_v25 = vpop.f32.mrf.mxu0 }
 0x1dd   : > { %v6303_v6 = vcombine.low %v2620_v14, %v2630_v9  ;;  %v9750_v4 = vadd.f32 %v6926_v53, %v4108_v52  ;;  %v2698_v20 = vsel %vm8192_vm13, %v6160_v33, %v2697_v37  ;;  %4489 = vmatmul.mubr.bf16.gmra.mxu0 %v6255_v47  ;;  %v2699_v45 = vrot.slane %v2697_v37, 4  ;;  %v11121_v14 = vld [vmem:[#allocation28_spill] sm:$0xff]  ;;  %v7606_v37 = vld [vmem:[#allocation2 + $0x40] sm:$0xf] }
 0x1de   : > { %v11118_v44 = vrot.slane %v11117_v8, 5  ;;  %v6929_v13 = vadd.f32 %v9509_v46, %v9485_v61  ;;  %v6820_v29 = vadd.f32 %v11120_v41, %v9525_v7  ;;  %v6932_v51 = vadd.f32 %v9555_v63, %v11121_v14  ;;  %v7605_v61 = vld [vmem:[#allocation2 + $0x38] sm:$0x1]  ;;  %v9776_v63 = vpop.f32.mrf.mxu1  ;;  %v9784_v8 = vpop.f32.mrf.mxu0 }
 0x1df   : > { %4649 = vmatprep.mubr.bf16.mxu1 %v6303_v6  ;;  %v6162_v53 = vrot.slane %v2633_v35, 9  ;;  %v2701_v33 = vsel %vm8192_vm13, %v2699_v45, %v2700_v2  ;;  %v4113_v17 = vadd.f32 %v6817_v30, %v9294_v40  ;;  %v2711_v19 = vrot.slane %v7604_v60, 5  ;;  %v11123_v35 = vld [vmem:[#allocation49_spill] sm:$0xff]  ;;  %v2635_v45 = vld [vmem:[#allocation2 + $0x48] sm:$0xe] }
 0x1e0   : > { %v2705_v56 = vsel %vm8192_vm13, %v6161_v34, %v11118_v44  ;;  %v2714_v46 = vrot.slane %v7605_v61, 5  ;;  %v6304_v52 = vcombine.low %v2698_v20, %v2701_v33  ;;  %v4116_v50 = vadd.f32 %v6820_v29, %v9294_v40  ;;  %v11122_v34 = vld [vmem:[#allocation27_spill] sm:$0xff]  ;;  %v9799_v29 = vpop.f32.mrf.mxu0 }
 0x1e1   : > { %v6305_v32 = vcombine.low %v2705_v56, %v11119_v23  ;;  %v6163_v7 = vrot.slane %v2634_v43, 9  ;;  %v2718_v9 = vrot.slane %v7606_v37, 5  ;;  %v9778_v47 = vadd.f32 %v6929_v13, %v4113_v17  ;;  %v11124_v56 = vld [vmem:[#allocation35_spill] sm:$0xff]  ;;  %v9790_v13 = vpop.f32.mrf.mxu1 }
 0x1e2   : > { %v2712_v48 = vsel %vm8192_vm13, %v6162_v53, %v2711_v19  ;;  %v2713_v2 = vrot.slane %v2711_v19, 4  ;;  %v6823_v6 = vadd.f32 %v11123_v35, %v11122_v34  ;;  %7263 = vmatprep.mubr.bf16.mxu0 %v6304_v52  ;;  %v9786_v20 = vadd.f32 %v6932_v51, %v4116_v50  ;;  %v7607_v53 = vld [vmem:[#allocation2 + $0x4c] sm:$0xf]  ;;  %v7609_v50 = vld [vmem:[#allocation2 + $0x58] sm:$0xf]  ;;  %v9824_v34 = vpop.f32.mrf.mxu0 }
 0x1e3   : > { %v2720_v44 = vrot.slane %v2718_v9, 4  ;;  %v6935_v30 = vadd.f32 %v9588_v28, %v11124_v56  ;;  %v2719_v23 = vsel %vm8192_vm13, %v6163_v7, %v2718_v9  ;;  %v6938_v28 = vadd.f32 %v9614_v59, %v9600_v24  ;;  %v7569_v24 = vld [vmem:[%s8127_s22 + $0x8] sm:$0xff]   ;;  %v7570_v7 = vld [vmem:[%s8127_s22 + $0x10] sm:$0xff]   ;;  %v7610_v35 = vld [vmem:[#allocation2 + $0x5c] sm:$0x1] }
 0x1e4   : > { %4650 = vmatmul.mubr.bf16.gmra.mxu1 %v6287_v10  ;;  %v2715_v43 = vsel %vm8192_vm13, %v2713_v2, %v2714_v46  ;;  %v4121_v41 = vadd.f32 %v6823_v6, %v9294_v40  ;;  %v6826_v10 = vadd.f32 %v9612_v27, %v9590_v1  ;;  %v6164_v51 = vrot.slane %v2635_v45, 9  ;;  %v7608_v27 = vld [vmem:[#allocation2 + $0x50] sm:$0x1]  ;;  %v2636_v46 = vld [vmem:[#allocation2 + $0x54] sm:$0xe]  ;;  %v11126_v9 = vld [vmem:[#allocation34_spill] sm:$0xff] }
 0x1e5   : > { %7311 = vmatprep.mubr.bf16.mxu1 %v7568_v54  ;;  %v6306_v14 = vcombine.low %v2712_v48, %v2715_v43  ;;  %v2725_v33 = vrot.slane %v7607_v53, 5  ;;  %v9803_v54 = vpop.f32.mrf.mxu1  ;;  %7264 = vmatmul.mubr.bf16.vlgmr.msra.gmra.mxu0 %v6305_v32  ;;  %v11125_v17 = vrot.slane %v9585_v16, 5  ;;  %v2728_v61 = vrot.slane %v7608_v27, 5  ;;  %v2637_v2 = vld [vmem:[#allocation2 + $0x60] sm:$0xe] }
 0x1e6   : > { %v9809_v19 = vadd.f32 %v6935_v30, %v4121_v41  ;;  %v4124_v1 = vadd.f32 %v6826_v10, %v9294_v40  ;;  %v2732_v32 = vrot.slane %v7609_v50, 5  ;;  %v6829_v37 = vadd.f32 %v9652_v58, %v9636_v36  ;;  %v9831_v36 = vld [vmem:[%s10879_s2] ss:$0 sm:$0xff]  ;;  %v7612_v41 = vld [vmem:[#allocation2 + $0x64] sm:$0xf] }
 0x1e7   : > { %v2722_v60 = vsel %vm8192_vm13, %v2720_v44, %v11125_v17  ;;  %7267 = vmatprep.mubr.bf16.mxu0 %v6306_v14  ;;  %v2726_v59 = vsel %vm8192_vm13, %v6164_v51, %v2725_v33  ;;  %v2727_v52 = vrot.slane %v2725_v33, 4  ;;  %v6941_v40 = vadd.f32 %v9645_v3, %v11126_v9  ;;  %v6955_v30 = vpop.f32.mrf.mxu1  ;;  %v7613_v14 = vld [vmem:[#allocation2 + $0x68] sm:$0x1]  ;;  %v9841_v33 = vpop.f32.mrf.mxu0  ;;  %v7616_v9 = vld [vmem:[#allocation2 + $0x74] sm:$0x1] }
 0x1e8   : > { %v9816_v16 = vadd.f32 %v6938_v28, %v4124_v1  ;;  %v6832_v48 = vadd.f32 %v9675_v38, %v9660_v15  ;;  %v2735_v6 = vrot.slane %v7610_v35, 5  ;;  %v6307_v45 = vcombine.low %v2719_v23, %v2722_v60  ;;  %v2638_v60 = vld [vmem:[#allocation2 + $0x6c] sm:$0xe]  ;;  %v7614_v1 = vld [vmem:[#allocation2 + $0x70] sm:$0xf] }
 0x1e9   : > { %v2729_v44 = vsel %vm8192_vm13, %v2727_v52, %v2728_v61  ;;  %v6165_v56 = vrot.slane %v2636_v46, 9  ;;  %v2734_v43 = vrot.slane %v2732_v32, 4  ;;  %v4129_v3 = vadd.f32 %v9831_v36, %v6829_v37  ;;  %v6957_v61 = vpop.f32.mrf.mxu1  ;;  %v2639_v52 = vld [vmem:[#allocation2 + $0x78] sm:$0xe]  ;;  %v6846_v50 = vpop.f32.mrf.mxu0 }
 0x1ea   : > { %v4132_v58 = vadd.f32 %v9831_v36, %v6832_v48  ;;  %v6944_v15 = vadd.f32 %v9695_v0, %v9670_v39  ;;  %v6308_v38 = vcombine.low %v2726_v59, %v2729_v44  ;;  %v6166_v23 = vrot.slane %v2637_v2, 9  ;;  %v7572_v48 = vld [vmem:[%s8127_s22 + $0x20] sm:$0xff]  }
 0x1eb   : > { %v2739_v10 = vrot.slane %v7612_v41, 5  ;;  %v2742_v28 = vrot.slane %v7613_v14, 5  ;;  %v9837_v51 = vadd.f32 %v6941_v40, %v4129_v3  ;;  %v2746_v27 = vrot.slane %v7614_v1, 5  ;;  %v6958_v37 = vpop.f32.mrf.mxu1  ;;  %v6848_v35 = vpop.f32.mrf.mxu0 }
 0x1ec   : > { %7312 = vmatmul.mubr.bf16.vlgmr.msra.gmra.mxu1 %v7569_v24  ;;  %v9839_v53 = vadd.f32 %v6944_v15, %v4132_v58  ;;  %v6835_v39 = vadd.f32 %v9703_v22, %v9697_v42  ;;  %v6947_v0 = vadd.f32 %v9721_v5, %v9709_v12  ;;  %v2733_v46 = vsel %vm8192_vm13, %v6165_v56, %v2732_v32  ;;  %v7615_v5 = vld [vmem:[#allocation2 + $0x7c] sm:$0xf]  ;;  %v7617_v15 = vld [vmem:[#allocation2 + $0x80] sm:$0x1] }
 0x1ed   : > { %7315 = vmatprep.mubr.bf16.mxu1 %v7570_v7  ;;  %v2741_v17 = vrot.slane %v2739_v10, 4  ;;  %7268 = vmatmul.mubr.bf16.gmra.mxu0 %v6307_v45  ;;  %v2736_v24 = vsel %vm8192_vm13, %v2734_v43, %v2735_v6  ;;  %v6838_v59 = vadd.f32 %v9746_v49, %v9723_v55  ;;  %v7571_v7 = vld [vmem:[%s8127_s22 + $0x18] sm:$0xff]   ;;  %v2740_v42 = vsel %vm8192_vm13, %v6166_v23, %v2739_v10  ;;  %v6960_v43 = vpop.f32.mrf.mxu1  ;;  %v6849_v14 = vpop.f32.mrf.mxu0 }
 0x1ee   : > { %7271 = vmatprep.mubr.bf16.mxu0 %v6308_v38  ;;  %v4137_v22 = vadd.f32 %v9831_v36, %v6835_v39  ;;  %v2753_v32 = vrot.slane %v7615_v5, 5  ;;  %v2749_v40 = vrot.slane %v7616_v9, 5  ;;  %v6167_v2 = vrot.slane %v2638_v60, 9  ;;  %v7618_v60 = vld [vmem:[#allocation2 + $0x88] sm:$0xf] }
 0x1ef   : > { %v2743_v12 = vsel %vm8192_vm13, %v2741_v17, %v2742_v28  ;;  %v4140_v55 = vadd.f32 %v9831_v36, %v6838_v59  ;;  %v6950_v49 = vadd.f32 %v9754_v31, %v9735_v21  ;;  %v6309_v6 = vcombine.low %v2733_v46, %v2736_v24  ;;  %v2640_v17 = vld [vmem:[#allocation2 + $0x84] sm:$0xe]  ;;  %v11127_v46 = vld [vmem:[#allocation36_spill] sm:$0xff] }
 0x1f0   : > { %v2748_v45 = vrot.slane %v2746_v27, 4  ;;  %v9863_v44 = vadd.f32 %v6947_v0, %v4137_v22  ;;  %v6168_v56 = vrot.slane %v2639_v52, 9  ;;  %v6310_v3 = vcombine.low %v2740_v42, %v2743_v12  ;;  %v2641_v0 = vld [vmem:[#allocation2 + $0x90] sm:$0xe]  ;;  %v6851_v59 = vpop.f32.mrf.mxu0  ;;  %v2644_v12 = vld [vmem:[#allocation2 + $0xb4] sm:$0xe] }
 0x1f1   : > { %v9865_v58 = vadd.f32 %v6950_v49, %v4140_v55  ;;  %v2756_v38 = vrot.slane %v7617_v15, 5  ;;  %v6841_v23 = vadd.f32 %v9784_v8, %v9773_v25  ;;  %v2755_v41 = vrot.slane %v2753_v32, 4  ;;  %v6961_v8 = vpop.f32.mrf.mxu1  ;;  %v7619_v22 = vld [vmem:[#allocation2 + $0x8c] sm:$0x1] }
 0x1f2   : > { %v6953_v21 = vadd.f32 %v9790_v13, %v9776_v63  ;;  %v6844_v31 = vadd.f32 %v9824_v34, %v9799_v29  ;;  %v6956_v10 = vadd.f32 %v6955_v30, %v9803_v54  ;;  %v2760_v1 = vrot.slane %v7618_v60, 5  ;;  %v7573_v54 = vld [vmem:[%s8127_s22 + $0x28] sm:$0xff]  }
 0x1f3   : > { %v4145_v28 = vadd.f32 %v9831_v36, %v6841_v23  ;;  %v2747_v63 = vsel %vm8192_vm13, %v6167_v2, %v2746_v27  ;;  %v2750_v13 = vsel %vm8192_vm13, %v2748_v45, %v2749_v40  ;;  %v2754_v34 = vsel %vm8192_vm13, %v6168_v56, %v2753_v32  ;;  %v7574_v27 = vld [vmem:[%s8127_s22 + $0x30] sm:$0xff]   ;;  %v6852_v2 = vpop.f32.mrf.mxu0 }
 0x1f4   : > { %7316 = vmatmul.mubr.bf16.gmra.mxu1 %v7571_v7  ;;  %v4148_v25 = vadd.f32 %v9831_v36, %v6844_v31  ;;  %v2757_v30 = vsel %vm8192_vm13, %v2755_v41, %v2756_v38  ;;  %v2767_v24 = vrot.slane %v11127_v46, 5  ;;  %v6169_v52 = vrot.slane %v2640_v17, 9  ;;  %v11128_v38 = vld [vmem:[#allocation48_spill] sm:$0xff]  ;;  %v11129_v41 = vld [vmem:[#allocation31_spill] sm:$0xff] }
 0x1f5   : > { %7319 = vmatprep.mubr.bf16.mxu1 %v7572_v48  ;;  %7272 = vmatmul.mubr.bf16.gmra.mxu0 %v6309_v6  ;;  %v9880_v29 = vadd.f32 %v6953_v21, %v4145_v28  ;;  %v6847_v7 = vadd.f32 %v6846_v50, %v9841_v33  ;;  %v6959_v42 = vadd.f32 %v6958_v37, %v6957_v61  ;;  %v2763_v5 = vrot.slane %v7619_v22, 5  ;;  %v6963_v48 = vpop.f32.mrf.mxu1  ;;  %v6854_v37 = vpop.f32.mrf.mxu0  ;;  %v11131_v46 = vld [vmem:[#allocation44_spill] sm:$0xff] }
 0x1f6   : > { %7275 = vmatprep.mubr.bf16.mxu0 %v6310_v3  ;;  %v9887_v39 = vadd.f32 %v6956_v10, %v4148_v25  ;;  %v2762_v9 = vrot.slane %v2760_v1, 4  ;;  %v6850_v40 = vadd.f32 %v6849_v14, %v6848_v35  ;;  %v6962_v32 = vadd.f32 %v6961_v8, %v6960_v43  ;;  %v7620_v3 = vld [vmem:[#allocation2 + $0x98] sm:$0x1]  ;;  %v2646_v25 = vld [vmem:[#allocation2 + $0xcc] sm:$0xe] }
 0x1f7   : > { %v6311_v55 = vcombine.low %v2747_v63, %v2750_v13  ;;  %v6312_v49 = vcombine.low %v2754_v34, %v2757_v30  ;;  %v6170_v6 = vrot.slane %v2641_v0, 9  ;;  %v4153_v45 = vadd.f32 %v9831_v36, %v6847_v7  ;;  %v6964_v50 = vpop.f32.mrf.mxu1  ;;  %v6855_v60 = vpop.f32.mrf.mxu0  ;;  %v11130_v8 = vld [vmem:[#allocation41_spill] sm:$0xff]  ;;  %v7575_v34 = vld [vmem:[%s8127_s22 + $0x38] sm:$0xff]  }
 0x1f8   : > { %v2769_v56 = vrot.slane %v2767_v24, 4  ;;  %v2770_v15 = vrot.slane %v7620_v3, 5  ;;  %v4156_v33 = vadd.f32 %v9831_v36, %v6850_v40  ;;  %v6173_v61 = vrot.slane %v2644_v12, 9  ;;  %v7576_v7 = vld [vmem:[%s8127_s22 + $0x40] sm:$0xff]   ;;  %v2643_v12 = vld [vmem:[#allocation2 + $0xa8] sm:$0xe] }
 0x1f9   : > { %v2791_v23 = vrot.slane %v11128_v38, 5  ;;  %v2761_v35 = vsel %vm8192_vm13, %v6169_v52, %v2760_v1  ;;  %v9897_v43 = vadd.f32 %v6959_v42, %v4153_v45  ;;  %v2788_v21 = vrot.slane %v11129_v41, 5  ;;  %v6966_v17 = vpop.f32.mrf.mxu1  ;;  %v2642_v42 = vld [vmem:[#allocation2 + $0x9c] sm:$0xe]  ;;  %v7577_v41 = vld [vmem:[%s8127_s22 + $0x48] sm:$0xff]  }
 0x1fa   : > { %v2764_v31 = vsel %vm8192_vm13, %v2762_v9, %v2763_v5  ;;  %v9902_v10 = vadd.f32 %v6962_v32, %v4156_v33  ;;  %v6853_v14 = vadd.f32 %v6852_v2, %v6851_v59  ;;  %v6965_v28 = vadd.f32 %v6964_v50, %v6963_v48  ;;  %v11133_v50 = vld [vmem:[#allocation29_spill] sm:$0xff] }
 0x1fb   : > { %v2774_v63 = vrot.slane %v11130_v8, 5  ;;  %v9907_v1 = vsel %vm8192_vm13, %v6173_v61, %v2788_v21  ;;  %v2790_v13 = vrot.slane %v2788_v21, 4  ;;  %v2768_v30 = vsel %vm8192_vm13, %v6170_v6, %v2767_v24  ;;  %v6967_v52 = vpop.f32.mrf.mxu1  ;;  %v11132_v24 = vld [vmem:[#allocation61_spill] sm:$0xff] }
 0x1fc   : > { %7320 = vmatmul.mubr.bf16.gmra.mxu1 %v7573_v54  ;;  %v6856_v54 = vadd.f32 %v6855_v60, %v6854_v37  ;;  %v2771_v0 = vsel %vm8192_vm13, %v2769_v56, %v2770_v15  ;;  %v2781_v59 = vrot.slane %v11131_v46, 5  ;;  %v6968_v9 = vadd.f32 %v6967_v52, %v6966_v17  ;;  %v7578_v17 = vld [vmem:[%s8127_s22 + $0x50] sm:$0xff]  }
 0x1fd   : > { %7323 = vmatprep.mubr.bf16.mxu1 %v7574_v27  ;;  %7276 = vmatmul.mubr.bf16.gmra.mxu0 %v6311_v55  ;;  %v4161_v27 = vadd.f32 %v9831_v36, %v6853_v14  ;;  %v9919_v22 = vsel %vm8192_vm13, %v2790_v13, %v2791_v23  ;;  %v6175_v40 = vrot.slane %v2646_v25, 9  ;;  %v2777_v32 = vrot.slane %v11132_v24, 5 }
 0x1fe   : > { %7279 = vmatprep.mubr.bf16.mxu0 %v6312_v49  ;;  %v4164_v5 = vadd.f32 %v9831_v36, %v6856_v54  ;;  %v6317_v48 = vcombine.low %v9907_v1, %v9919_v22  ;;  %v2805_v55 = vrot.slane %v9685_v57, 5  ;;  %v6313_v49 = vcombine.low %v2761_v35, %v2764_v31  ;;  %v6857_v38 = vpop.f32.mrf.mxu0  ;;  %v11137_v1 = vld [vmem:[#allocation37_spill] sm:$0xff] }
 0x1ff   : > { %v9925_v2 = vadd.f32 %v6965_v28, %v4161_v27  ;;  %v2802_v45 = vrot.slane %v9681_v11, 5  ;;  %v6314_v56 = vcombine.low %v2768_v30, %v2771_v0  ;;  %v6171_v3 = vrot.slane %v2642_v42, 9 }
 0x200   : > { %v9928_v6 = vadd.f32 %v6968_v9, %v4164_v5  ;;  %v2776_v15 = vrot.slane %v2774_v63, 4  ;;  %v6172_v33 = vrot.slane %v2643_v12, 9  ;;  %v2783_v61 = vrot.slane %v2781_v59, 4  ;;  %v6858_v35 = vpop.f32.mrf.mxu0  ;;  %v11134_v12 = vld [vmem:[#allocation50_spill] sm:$0xff] }
 0x201   : > { %v2784_v37 = vrot.slane %v11133_v50, 5  ;;  %v9934_v57 = vsel %vm8192_vm13, %v6175_v40, %v2802_v45  ;;  %v2804_v23 = vrot.slane %v2802_v45, 4  ;;  %v2775_v21 = vsel %vm8192_vm13, %v6171_v3, %v2774_v63  ;;  %v6969_v13 = vpop.f32.mrf.mxu1  ;;  %v7580_v3 = vld [vmem:[%s8127_s22 + $0x60] sm:$0xff]  }
 0x202   : > { %v2778_v31 = vsel %vm8192_vm13, %v2776_v15, %v2777_v32  ;;  %v6859_v28 = vadd.f32 %v6858_v35, %v6857_v38  ;;  %v2782_v60 = vsel %vm8192_vm13, %v6172_v33, %v2781_v59  ;;  %v2795_v8 = vrot.slane %v9624_v62, 5  ;;  %v6860_v54 = vpop.f32.mrf.mxu0 }
 0x203   : > { %v9938_v11 = vsel %vm8192_vm13, %v2804_v23, %v2805_v55  ;;  %v2785_v25 = vsel %vm8192_vm13, %v2783_v61, %v2784_v37  ;;  %v6315_v30 = vcombine.low %v2775_v21, %v2778_v31  ;;  %v6970_v0 = vpop.f32.mrf.mxu1  ;;  %v2798_v5 = vrot.slane %v11134_v12, 5  ;;  %v7583_v12 = vld [vmem:[%s8127_s22 + $0x78] sm:$0xff]  }
 0x204   : > { %7324 = vmatmul.mubr.bf16.gmra.mxu1 %v7575_v34  ;;  %v6319_v14 = vcombine.low %v9934_v57, %v9938_v11  ;;  %v2645_v34 = vld [vmem:[#allocation2 + $0xc0] sm:$0xe]  ;;  %v4169_v63 = vadd.f32 %v9831_v36, %v6859_v28  ;;  %v6861_v46 = vpop.f32.mrf.mxu0  ;;  %v6316_v27 = vcombine.low %v2782_v60, %v2785_v25  ;;  %v6971_v52 = vadd.f32 %v6970_v0, %v6969_v13 }
 0x205   : > { %7327 = vmatprep.mubr.bf16.mxu1 %v7576_v7  ;;  %7280 = vmatmul.mubr.bf16.gmra.mxu0 %v6313_v49  ;;  %v6862_v7 = vadd.f32 %v6861_v46, %v6860_v54  ;;  %v6174_v59 = vrot.slane %v2645_v34, 9  ;;  %v2797_v42 = vrot.slane %v2795_v8, 4  ;;  %v6972_v62 = vpop.f32.mrf.mxu1  ;;  %v7579_v49 = vld [vmem:[%s8127_s22 + $0x58] sm:$0xff]   ;;  %v7582_v54 = vld [vmem:[%s8127_s22 + $0x70] sm:$0xff]  }
 0x206   : > { %7283 = vmatprep.mubr.bf16.mxu0 %v6314_v56  ;;  %v6991_v9 = vpop.f32.mrf.mxu0  ;;  %v9955_v40 = vadd.f32 %v6971_v52, %v4169_v63 }
 0x207   : > { %v4172_v24 = vadd.f32 %v9831_v36, %v6862_v7  ;;  %v6973_v32 = vpop.f32.mrf.mxu1  ;;  %v2796_v15 = vsel %vm8192_vm13, %v6174_v59, %v2795_v8  ;;  %v2799_v33 = vsel %vm8192_vm13, %v2797_v42, %v2798_v5  ;;  %v11135_v36 = vld [vmem:[#allocation39_spill] sm:$0xff]  ;;  %v7581_v8 = vld [vmem:[%s8127_s22 + $0x68] sm:$0xff]  }
 0x208   : > { %v6992_v55 = vpop.f32.mrf.mxu0  ;;  %v6974_v45 = vadd.f32 %v6973_v32, %v6972_v62 }
 0x209   : > { %v6993_v56 = vadd.f32 %v6992_v55, %v6991_v9  ;;  %v11138_v55 = vld [vmem:[#allocation60_spill] sm:$0xff] }
 0x20a   : > { %v6994_v50 = vpop.f32.mrf.mxu0  ;;  %v9964_v37 = vadd.f32 %v6974_v45, %v4172_v24 }
 0x20b   : > { %v7103_v61 = vpop.f32.mrf.mxu1  ;;  %v4371_v38 = vadd.f32 %v6993_v56, %v11135_v36 }
 0x20c   : > { %7328 = vmatmul.mubr.bf16.gmra.mxu1 %v7577_v41  ;;  %v6995_v35 = vpop.f32.mrf.mxu0  ;;  %v6318_v41 = vcombine.low %v2796_v15, %v2799_v33 }
 0x20d   : > { %7331 = vmatprep.mubr.bf16.mxu1 %v7578_v17  ;;  %7284 = vmatmul.mubr.bf16.gmra.mxu0 %v6315_v30  ;;  %v7104_v23 = vpop.f32.mrf.mxu1  ;;  %v6996_v31 = vadd.f32 %v6995_v35, %v6994_v50  ;;  %v11136_v17 = vld [vmem:[#allocation38_spill] sm:$0xff] }
 0x20e   : > { %7287 = vmatprep.mubr.bf16.mxu0 %v6316_v27  ;;  %v7105_v21 = vadd.f32 %v7104_v23, %v7103_v61 }
 0x20f   : > { %v7106_v28 = vpop.f32.mrf.mxu1  ;;  %v4374_v60 = vadd.f32 %v6996_v31, %v11136_v17 }
 0x210   : > { %v9968_v26 = vadd.f32 %v7105_v21, %v4371_v38  ;;  %v11140_v21 = vld [vmem:[#allocation40_spill] sm:$0xff] }
 0x211   : > { %v7107_v25 = vpop.f32.mrf.mxu1  ;;  %v6997_v34 = vpop.f32.mrf.mxu0 }
 0x212   : > { %v7108_v13 = vadd.f32 %v7107_v25, %v7106_v28 }
 0x213   : > { %v6998_v0 = vpop.f32.mrf.mxu0 }
 0x214   : > { %7332 = vmatmul.mubr.bf16.gmra.mxu1 %v7579_v49  ;;  %v7109_v63 = vpop.f32.mrf.mxu1  ;;  %v9975_v30 = vadd.f32 %v7108_v13, %v4374_v60  ;;  %v6999_v27 = vadd.f32 %v6998_v0, %v6997_v34  ;;  %v11141_v0 = vld [vmem:[#allocation43_spill] sm:$0xff] }
 0x215   : > { %7335 = vmatprep.mubr.bf16.mxu1 %v7580_v3  ;;  %7288 = vmatmul.mubr.bf16.gmra.mxu0 %v6317_v48  ;;  %v7000_v7 = vpop.f32.mrf.mxu0 }
 0x216   : > { %7291 = vmatprep.mubr.bf16.mxu0 %v6318_v41  ;;  %v7110_v46 = vpop.f32.mrf.mxu1  ;;  %v4379_v22 = vadd.f32 %v6999_v27, %v11137_v1 }
 0x217   : > { %v7111_v52 = vadd.f32 %v7110_v46, %v7109_v63  ;;  %v7001_v48 = vpop.f32.mrf.mxu0 }
 0x218   : > { %v7112_v59 = vpop.f32.mrf.mxu1  ;;  %v7002_v5 = vadd.f32 %v7001_v48, %v7000_v7  ;;  %v11142_v48 = vld [vmem:[#allocation45_spill] sm:$0xff] }
 0x219   : > { %v9982_v9 = vadd.f32 %v7111_v52, %v4379_v22 }
 0x21a   : > { %v7113_v42 = vpop.f32.mrf.mxu1  ;;  %v7003_v24 = vpop.f32.mrf.mxu0  ;;  %v4382_v49 = vadd.f32 %v7002_v5, %v11138_v55 }
 0x21b   : > { %v7114_v62 = vadd.f32 %v7113_v42, %v7112_v59 }
 0x21c   : > { %7336 = vmatmul.mubr.bf16.gmra.mxu1 %v7581_v8  ;;  %v7115_v32 = vpop.f32.mrf.mxu1  ;;  %v7004_v45 = vpop.f32.mrf.mxu0 }
 0x21d   : > { %7339 = vmatprep.mubr.bf16.mxu1 %v7582_v54  ;;  %7292 = vmatmul.mubr.bf16.gmra.mxu0 %v6319_v14  ;;  %v7005_v3 = vadd.f32 %v7004_v45, %v7003_v24  ;;  %v9985_v33 = vadd.f32 %v7114_v62, %v4382_v49  ;;  %v11139_v14 = vld [vmem:[#allocation42_spill] sm:$0xff]  ;;  %v11143_v45 = vld [vmem:[#allocation47_spill] sm:$0xff] }
 0x21e   : > { %v7116_v56 = vpop.f32.mrf.mxu1  ;;  %v7006_v57 = vpop.f32.mrf.mxu0 }
 0x21f   : > { %v7117_v15 = vadd.f32 %v7116_v56, %v7115_v32  ;;  %v4387_v61 = vadd.f32 %v7005_v3, %v11139_v14 }
 0x220   : > { %v7118_v11 = vpop.f32.mrf.mxu1  ;;  %v7007_v50 = vpop.f32.mrf.mxu0 }
 0x221   : > { %v7008_v38 = vadd.f32 %v7007_v50, %v7006_v57  ;;  %v9988_v35 = vadd.f32 %v7117_v15, %v4387_v61  ;;  %v11144_v50 = vld [vmem:[#allocation30_spill] sm:$0xff] }
 0x222   : > { %v7119_v36 = vpop.f32.mrf.mxu1 }
 0x223   : > { %v7120_v23 = vadd.f32 %v7119_v36, %v7118_v11  ;;  %v4390_v31 = vadd.f32 %v7008_v38, %v11140_v21 }
 0x224   : > { %7340 = vmatmul.mubr.bf16.gmra.mxu1 %v7583_v12  ;;  %v7121_v41 = vpop.f32.mrf.mxu1 }
 0x225   : > { %v7009_v28 = vpop.f32.mrf.mxu0  ;;  %v9991_v25 = vadd.f32 %v7120_v23, %v4390_v31 }
 0x226   : > { %v7122_v17 = vpop.f32.mrf.mxu1 }
 0x227   : > { %v7123_v60 = vadd.f32 %v7122_v17, %v7121_v41  ;;  %v7010_v8 = vpop.f32.mrf.mxu0 }
 0x228   : > { %v7124_v13 = vpop.f32.mrf.mxu1  ;;  %v7011_v54 = vadd.f32 %v7010_v8, %v7009_v28 }
 0x229   : > { %v7012_v34 = vpop.f32.mrf.mxu0 }
 0x22a   : > { %v7125_v63 = vpop.f32.mrf.mxu1  ;;  %v4395_v46 = vadd.f32 %v7011_v54, %v11141_v0 }
 0x22b   : > { %v7126_v27 = vadd.f32 %v7125_v63, %v7124_v13  ;;  %v7013_v52 = vpop.f32.mrf.mxu0  ;;  %v11145_v13 = vld [vmem:[#allocation33_spill] sm:$0xff] }
 0x22c   : > { %v7014_v7 = vadd.f32 %v7013_v52, %v7012_v34  ;;  %v9994_v1 = vadd.f32 %v7123_v60, %v4395_v46  ;;  %v11146_v52 = vld [vmem:[#allocation59_spill] sm:$0xff] }
 0x22d   : > { %v7015_v22 = vpop.f32.mrf.mxu0 }
 0x22e   : > { %v7127_v59 = vpop.f32.mrf.mxu1  ;;  %v4398_v42 = vadd.f32 %v7014_v7, %v11142_v48 }
 0x22f   : > { %v7016_v5 = vpop.f32.mrf.mxu0 }
 0x230   : > { %v7128_v12 = vpop.f32.mrf.mxu1  ;;  %v7017_v24 = vadd.f32 %v7016_v5, %v7015_v22  ;;  %v9997_v55 = vadd.f32 %v7126_v27, %v4398_v42 }
 0x231   : > { %v7129_v62 = vadd.f32 %v7128_v12, %v7127_v59  ;;  %v7018_v49 = vpop.f32.mrf.mxu0 }
 0x232   : > { %v7130_v32 = vpop.f32.mrf.mxu1  ;;  %v4403_v56 = vadd.f32 %v7017_v24, %v11143_v45 }
 0x233   : > { %v7019_v15 = vpop.f32.mrf.mxu0 }
 0x234   : > { %v7131_v3 = vpop.f32.mrf.mxu1  ;;  %v7020_v11 = vadd.f32 %v7019_v15, %v7018_v49  ;;  %v10000_v61 = vadd.f32 %v7129_v62, %v4403_v56  ;;  %v11147_v49 = vld [vmem:[#allocation51_spill] sm:$0xff] }
 0x235   : > { %v7132_v57 = vadd.f32 %v7131_v3, %v7130_v32 }
 0x236   : > { %v4406_v36 = vadd.f32 %v7020_v11, %v11144_v50 }
 0x237   : > { %v7133_v14 = vpop.f32.mrf.mxu1 }
 0x238   : > { %v7021_v38 = vpop.f32.mrf.mxu0  ;;  %v10003_v28 = vadd.f32 %v7132_v57, %v4406_v36 }
 0x239   : > { %v7134_v23 = vpop.f32.mrf.mxu1 }
 0x23a   : > { %v7135_v41 = vadd.f32 %v7134_v23, %v7133_v14  ;;  %v7022_v21 = vpop.f32.mrf.mxu0  ;;  %v11148_v14 = vld [vmem:[#allocation52_spill] sm:$0xff] }
 0x23b   : > { %v7136_v31 = vpop.f32.mrf.mxu1  ;;  %v7023_v17 = vadd.f32 %v7022_v21, %v7021_v38 }
 0x23c   : > { %v7024_v60 = vpop.f32.mrf.mxu0 }
 0x23d   : > { %v7137_v8 = vpop.f32.mrf.mxu1  ;;  %v4411_v54 = vadd.f32 %v7023_v17, %v11145_v13 }
 0x23e   : > { %v7138_v34 = vadd.f32 %v7137_v8, %v7136_v31  ;;  %v7025_v63 = vpop.f32.mrf.mxu0 }
 0x23f   : > { %v7026_v0 = vadd.f32 %v7025_v63, %v7024_v60  ;;  %v7139_v46 = vpop.f32.mrf.mxu1  ;;  %v10006_v27 = vadd.f32 %v7135_v41, %v4411_v54 }
 0x241   : > { %v4414_v7 = vadd.f32 %v7026_v0, %v11146_v52  ;;  %v7140_v22 = vpop.f32.mrf.mxu1 }
 0x242   : > { %v7027_v59 = vpop.f32.mrf.mxu0  ;;  %v7141_v48 = vadd.f32 %v7140_v22, %v7139_v46 }
 0x243   : > { %v7142_v12 = vpop.f32.mrf.mxu1  ;;  %v10009_v5 = vadd.f32 %v7138_v34, %v4414_v7 }
 0x244   : > { %v7028_v42 = vpop.f32.mrf.mxu0 }
 0x245   : > { %v7029_v62 = vadd.f32 %v7028_v42, %v7027_v59  ;;  %v7143_v32 = vpop.f32.mrf.mxu1 }
 0x246   : > { %v7030_v24 = vpop.f32.mrf.mxu0  ;;  %v7144_v56 = vadd.f32 %v7143_v32, %v7142_v12 }
 0x247   : > { %v4419_v45 = vadd.f32 %v7029_v62, %v11147_v49 }
 0x248   : > { %v7031_v3 = vpop.f32.mrf.mxu0  ;;  %v7145_v57 = vpop.f32.mrf.mxu1 }
 0x249   : > { %v7032_v15 = vadd.f32 %v7031_v3, %v7030_v24  ;;  %v10012_v11 = vadd.f32 %v7141_v48, %v4419_v45 }
 0x24a   : > { %v7146_v38 = vpop.f32.mrf.mxu1 }
 0x24b   : > { %v4422_v50 = vadd.f32 %v7032_v15, %v11148_v14  ;;  %v7033_v36 = vpop.f32.mrf.mxu0  ;;  %v7147_v23 = vadd.f32 %v7146_v38, %v7145_v57 }
 0x24c   : > { %v7148_v21 = vpop.f32.mrf.mxu1 }
 0x24d   : > { %v7034_v41 = vpop.f32.mrf.mxu0  ;;  %v10015_v31 = vadd.f32 %v7144_v56, %v4422_v50 }
 0x24e   : > { %v7035_v17 = vadd.f32 %v7034_v41, %v7033_v36  ;;  %v7149_v8 = vpop.f32.mrf.mxu1 }
 0x24f   : > { %v7036_v60 = vpop.f32.mrf.mxu0  ;;  %v7150_v54 = vadd.f32 %v7149_v8, %v7148_v21 }
 0x250   : > { %v4427_v13 = vadd.f32 %v7035_v17, %v9748_v18 }
 0x251   : > { %v7037_v34 = vpop.f32.mrf.mxu0 }
 0x252   : > { %v7038_v63 = vadd.f32 %v7037_v34, %v7036_v60  ;;  %v7151_v0 = vpop.f32.mrf.mxu1  ;;  %v10018_v46 = vadd.f32 %v7147_v23, %v4427_v13 }
 0x254   : > { %v4430_v52 = vadd.f32 %v7038_v63, %v9750_v4  ;;  %v7039_v7 = vpop.f32.mrf.mxu0  ;;  %v7152_v59 = vpop.f32.mrf.mxu1 }
 0x255   : > { %v7153_v22 = vadd.f32 %v7152_v59, %v7151_v0 }
 0x256   : > { %v7040_v48 = vpop.f32.mrf.mxu0  ;;  %v7154_v42 = vpop.f32.mrf.mxu1  ;;  %v10021_v12 = vadd.f32 %v7150_v54, %v4430_v52 }
 0x257   : > { %v7041_v62 = vadd.f32 %v7040_v48, %v7039_v7 }
 0x258   : > { %v7042_v24 = vpop.f32.mrf.mxu0  ;;  %v7155_v32 = vpop.f32.mrf.mxu1 }
 0x259   : > { %v4435_v18 = vadd.f32 %v7041_v62, %v9778_v47  ;;  %v7156_v49 = vadd.f32 %v7155_v32, %v7154_v42 }
 0x25a   : > { %v7043_v45 = vpop.f32.mrf.mxu0 }
 0x25b   : > { %v7044_v56 = vadd.f32 %v7043_v45, %v7042_v24  ;;  %v10024_v3 = vadd.f32 %v7153_v22, %v4435_v18 }
 0x25d   : > { %v4438_v15 = vadd.f32 %v7044_v56, %v9786_v20  ;;  %v7157_v4 = vpop.f32.mrf.mxu1 }
 0x25f   : > { %v7045_v57 = vpop.f32.mrf.mxu0  ;;  %v7158_v14 = vpop.f32.mrf.mxu1  ;;  %v10027_v50 = vadd.f32 %v7156_v49, %v4438_v15 }
 0x260   : > { %v7159_v36 = vadd.f32 %v7158_v14, %v7157_v4 }
 0x261   : > { %v7046_v38 = vpop.f32.mrf.mxu0  ;;  %v7160_v23 = vpop.f32.mrf.mxu1 }
 0x262   : > { %v7047_v41 = vadd.f32 %v7046_v38, %v7045_v57 }
 0x263   : > { %v7048_v21 = vpop.f32.mrf.mxu0  ;;  %v7161_v17 = vpop.f32.mrf.mxu1 }
 0x264   : > { %v4443_v47 = vadd.f32 %v7047_v41, %v9809_v19  ;;  %v7162_v60 = vadd.f32 %v7161_v17, %v7160_v23 }
 0x265   : > { %v7049_v8 = vpop.f32.mrf.mxu0 }
 0x266   : > { %v7050_v13 = vadd.f32 %v7049_v8, %v7048_v21  ;;  %v10030_v54 = vadd.f32 %v7159_v36, %v4443_v47 }
 0x268   : > { %v4446_v20 = vadd.f32 %v7050_v13, %v9816_v16 }
 0x269   : > { %v7163_v34 = vpop.f32.mrf.mxu1 }
 0x26a   : > { %v10033_v0 = vadd.f32 %v7162_v60, %v4446_v20 }
 0x26b   : > { %v7051_v63 = vpop.f32.mrf.mxu0  ;;  %v7164_v52 = vpop.f32.mrf.mxu1 }
 0x26c   : > { %v7165_v59 = vadd.f32 %v7164_v52, %v7163_v34 }
 0x26d   : > { %v7052_v7 = vpop.f32.mrf.mxu0  ;;  %v7166_v48 = vpop.f32.mrf.mxu1 }
 0x26e   : > { %v7053_v22 = vadd.f32 %v7052_v7, %v7051_v63 }
 0x26f   : > { %v7054_v42 = vpop.f32.mrf.mxu0  ;;  %v7167_v19 = vpop.f32.mrf.mxu1 }
 0x270   : > { %v4451_v62 = vadd.f32 %v7053_v22, %v9837_v51  ;;  %v7168_v32 = vadd.f32 %v7167_v19, %v7166_v48 }
 0x271   : > { %v7055_v24 = vpop.f32.mrf.mxu0 }
 0x272   : > { %v7056_v18 = vadd.f32 %v7055_v24, %v7054_v42  ;;  %v10036_v49 = vadd.f32 %v7165_v59, %v4451_v62 }
 0x274   : > { %v4454_v16 = vadd.f32 %v7056_v18, %v9839_v53 }
 0x275   : > { %v7169_v45 = vpop.f32.mrf.mxu1 }
 0x276   : > { %v10039_v56 = vadd.f32 %v7168_v32, %v4454_v16 }
 0x277   : > { %v7057_v15 = vpop.f32.mrf.mxu0  ;;  %v7170_v4 = vpop.f32.mrf.mxu1 }
 0x278   : > { %v7171_v57 = vadd.f32 %v7170_v4, %v7169_v45 }
 0x279   : > { %v7058_v14 = vpop.f32.mrf.mxu0  ;;  %v7172_v36 = vpop.f32.mrf.mxu1 }
 0x27a   : > { %v7059_v38 = vadd.f32 %v7058_v14, %v7057_v15 }
 0x27b   : > { %v7060_v23 = vpop.f32.mrf.mxu0  ;;  %v7173_v41 = vpop.f32.mrf.mxu1 }
 0x27c   : > { %v4459_v51 = vadd.f32 %v7059_v38, %v9863_v44  ;;  %v7174_v21 = vadd.f32 %v7173_v41, %v7172_v36 }
 0x27d   : > { %v7061_v17 = vpop.f32.mrf.mxu0 }
 0x27e   : > { %v7062_v47 = vadd.f32 %v7061_v17, %v7060_v23  ;;  %v10042_v60 = vadd.f32 %v7171_v57, %v4459_v51 }
 0x27f   : > { %v7063_v8 = vpop.f32.mrf.mxu0 }
 0x280   : > { %v4462_v53 = vadd.f32 %v7062_v47, %v9865_v58 }
 0x281   : > { %v7064_v20 = vpop.f32.mrf.mxu0 }
 0x282   : > { %v7175_v13 = vpop.f32.mrf.mxu1  ;;  %v7065_v34 = vadd.f32 %v7064_v20, %v7063_v8  ;;  %v10045_v63 = vadd.f32 %v7174_v21, %v4462_v53 }
 0x283   : > { %v7066_v7 = vpop.f32.mrf.mxu0 }
 0x284   : > { %v7176_v52 = vpop.f32.mrf.mxu1  ;;  %v4467_v59 = vadd.f32 %v7065_v34, %v9880_v29 }
 0x285   : > { %v7177_v22 = vadd.f32 %v7176_v52, %v7175_v13  ;;  %v7067_v44 = vpop.f32.mrf.mxu0 }
 0x286   : > { %v7178_v48 = vpop.f32.mrf.mxu1  ;;  %v7068_v42 = vadd.f32 %v7067_v44, %v7066_v7 }
 0x287   : > { %v10048_v62 = vadd.f32 %v7177_v22, %v4467_v59 }
 0x288   : > { %v7179_v19 = vpop.f32.mrf.mxu1  ;;  %v4470_v24 = vadd.f32 %v7068_v42, %v9887_v39 }
 0x289   : > { %v7180_v32 = vadd.f32 %v7179_v19, %v7178_v48  ;;  %v7069_v58 = vpop.f32.mrf.mxu0 }
 0x28b   : > { %v10051_v18 = vadd.f32 %v7180_v32, %v4470_v24  ;;  %v7181_v16 = vpop.f32.mrf.mxu1  ;;  %v7070_v45 = vpop.f32.mrf.mxu0 }
 0x28c   : > { %v7071_v15 = vadd.f32 %v7070_v45, %v7069_v58 }
 0x28d   : > { %v7182_v4 = vpop.f32.mrf.mxu1  ;;  %v7072_v57 = vpop.f32.mrf.mxu0 }
 0x28e   : > { %v4475_v29 = vadd.f32 %v7071_v15, %v9897_v43  ;;  %v7183_v14 = vadd.f32 %v7182_v4, %v7181_v16 }
 0x28f   : > { %v7073_v36 = vpop.f32.mrf.mxu0  ;;  %v10056_v51 = vpop.f32.mrf.mxu1 }
 0x290   : > { %v7074_v38 = vadd.f32 %v7073_v36, %v7072_v57  ;;  %v10054_v23 = vadd.f32 %v7183_v14, %v4475_v29 }
 0x291   : > { %v7075_v41 = vpop.f32.mrf.mxu0  ;;  %v10061_v8 = vpop.f32.mrf.mxu1 }
 0x292   : > { %v10059_v39 = vadd.f32 %v7074_v38, %v9902_v10  ;;  %v10094_v38 = vld [vmem:[%s10881_s4] ss:$0 sm:$0xff] }
 0x293   : > { %v7076_v21 = vpop.f32.mrf.mxu0 }
 0x294   : > { %v7077_v17 = vadd.f32 %v7076_v21, %v7075_v41 }
 0x295   : > { %v7078_v47 = vpop.f32.mrf.mxu0 }
 0x296   : > { %v4483_v53 = vadd.f32 %v7077_v17, %v9925_v2 }
 0x297   : > { %v7079_v13 = vpop.f32.mrf.mxu0 }
 0x298   : > { %v7080_v43 = vadd.f32 %v7079_v13, %v7078_v47 }
 0x29a   : > { %v4486_v34 = vadd.f32 %v7080_v43, %v9928_v6 }
 0x29c   : > { %v7187_v20 = vpop.f32.mrf.mxu1 }
 0x29d   : > { %v10065_v59 = vpop.f32.mrf.mxu0 }
 0x29e   : > { %v7188_v52 = vpop.f32.mrf.mxu1 }
 0x29f   : > { %v7189_v7 = vadd.f32 %v7188_v52, %v7187_v20  ;;  %v10067_v48 = vpop.f32.mrf.mxu0 }
 0x2a0   : > { %v7190_v22 = vpop.f32.mrf.mxu1 }
 0x2a1   : > { %v10069_v10 = vadd.f32 %v7189_v7, %v4483_v53  ;;  %v10071_v19 = vpop.f32.mrf.mxu0 }
 0x2a2   : > { %v7191_v44 = vpop.f32.mrf.mxu1 }
 0x2a3   : > { %v7192_v42 = vadd.f32 %v7191_v44, %v7190_v22  ;;  %v10075_v2 = vpop.f32.mrf.mxu0 }
 0x2a4   : > { %v10073_v24 = vpop.f32.mrf.mxu1 }
 0x2a5   : > { %v10077_v32 = vadd.f32 %v7192_v42, %v4486_v34  ;;  %v7265_v58 = vpop.f32.mrf.mxu0 }
 0x2a6   : > { %v10079_v6 = vpop.f32.mrf.mxu1  ;;  %v10086_v57 = vadd.f32 %v7265_v58, %v9982_v9 }
 0x2a7   : > { %v4692_v45 = vpop.f32.mrf.mxu0 }
 0x2a8   : > { %v10081_v16 = vpop.f32.mrf.mxu1  ;;  %v10097_v41 = vadd.f32 %v4692_v45, %v9968_v26 }
 0x2a9   : > { %v7266_v4 = vpop.f32.mrf.mxu0 }
 0x2aa   : > { %v10083_v15 = vpop.f32.mrf.mxu1  ;;  %v10089_v14 = vadd.f32 %v7266_v4, %v9985_v33 }
 0x2ab   : > { %v4695_v36 = vpop.f32.mrf.mxu0 }
 0x2ac   : > { %v7313_v29 = vpop.f32.mrf.mxu1  ;;  %v6569_v17 = vpack.c.bf16 %v10089_v14, %v10086_v57  ;;  %v10102_v9 = vadd.f32 %v4695_v36, %v9975_v30 }
 0x2ad   : > { %v7269_v47 = vpop.f32.mrf.mxu0  ;;  %v10113_v13 = vadd.f32 %v7313_v29, %v10094_v38 }
 0x2ae   : > { %v5353_v21 = vpop.f32.mrf.mxu1  ;;  %6721 = vst [vmem:[%s10105_s27 + $0x8] sm:$0xff] %v6569_v17   ;;  %v6564_v53 = vpack.c.bf16 %v10102_v9, %v10097_v41  ;;  %v4979_v26 = vadd.f32 %v10102_v9, %v10097_v41  ;;  %v10129_v42 = vadd.f32 %v7269_v47, %v9994_v1 }
 0x2af   : > { %v4708_v43 = vpop.f32.mrf.mxu0  ;;  %v10121_v52 = vadd.f32 %v10094_v38, %v5353_v21 }
 0x2b0   : > { %v7314_v33 = vpop.f32.mrf.mxu1  ;;  %6565 = vst [vmem:[%s10105_s27] sm:$0xff] %v6564_v53   ;;  %v4980_v20 = vadd.f32 %v4979_v26, %v10086_v57  ;;  %v10132_v45 = vadd.f32 %v4708_v43, %v9988_v35 }
 0x2b1   : > { %v10116_v30 = vadd.f32 %v7314_v33, %v10094_v38  ;;  %v7270_v44 = vpop.f32.mrf.mxu0 }
 0x2b2   : > { %v5356_v34 = vpop.f32.mrf.mxu1  ;;  %v4981_v4 = vadd.f32 %v4980_v20, %v10089_v14  ;;  %v10136_v29 = vadd.f32 %v7270_v44, %v9997_v55 }
 0x2b3   : > { %11149 = vst [vmem:[#allocation53_spill] sm:$0xff] %v10116_v30  ;;  %v6649_v7 = vpack.c.bf16 %v10116_v30, %v10113_v13  ;;  %v10126_v22 = vadd.f32 %v10094_v38, %v5356_v34  ;;  %v4711_v21 = vpop.f32.mrf.mxu0 }
 0x2b4   : > { %v7317_v58 = vpop.f32.mrf.mxu1  ;;  %v4982_v35 = vadd.f32 %v4981_v4, %v10132_v45  ;;  %v6579_v55 = vpack.c.bf16 %v10136_v29, %v10129_v42  ;;  %v10150_v47 = vadd.f32 %v4711_v21, %v9991_v25 }
 0x2b5   : > { %6736 = vst [vmem:[%s10139_s12 + $0x8] sm:$0xff] %v6649_v7   ;;  %v6644_v36 = vpack.c.bf16 %v10126_v22, %v10121_v52  ;;  %v5640_v1 = vadd.f32 %v10126_v22, %v10121_v52  ;;  %v7273_v53 = vpop.f32.mrf.mxu0  ;;  %v10159_v34 = vadd.f32 %v7317_v58, %v10094_v38 }
 0x2b6   : > { %v5369_v17 = vpop.f32.mrf.mxu1  ;;  %6723 = vst [vmem:[%s10105_s27 + $0x18] sm:$0xff] %v6579_v55   ;;  %v6574_v43 = vpack.c.bf16 %v10150_v47, %v10132_v45  ;;  %v4983_v20 = vadd.f32 %v4982_v35, %v10150_v47  ;;  %v10177_v55 = vadd.f32 %v7273_v53, %v10006_v27 }
 0x2b7   : > { %6645 = vst [vmem:[%s10139_s12] sm:$0xff] %v6644_v36   ;;  %v5641_v33 = vadd.f32 %v5640_v1, %v10113_v13  ;;  %11150 = vst [vmem:[#allocation26_spill] sm:$0xff] %v10159_v34  ;;  %v10162_v7 = vadd.f32 %v10094_v38, %v5369_v17  ;;  %v4724_v4 = vpop.f32.mrf.mxu0 }
 0x2b8   : > { %v7318_v26 = vpop.f32.mrf.mxu1  ;;  %6722 = vst [vmem:[%s10105_s27 + $0x10] sm:$0xff] %v6574_v43   ;;  %v4984_v36 = vadd.f32 %v4983_v20, %v10129_v42 }
 0x2b9   : > { %11151 = vst [vmem:[#allocation54_spill] sm:$0xff] %v10162_v7  ;;  %v5642_v25 = vadd.f32 %v5641_v33, %v10116_v30  ;;  %v10166_v44 = vadd.f32 %v7318_v26, %v10094_v38  ;;  %v7274_v17 = vpop.f32.mrf.mxu0  ;;  %v10180_v26 = vadd.f32 %v4724_v4, %v10000_v61 }
 0x2ba   : > { %v5372_v1 = vpop.f32.mrf.mxu1  ;;  %v4985_v43 = vadd.f32 %v4984_v36, %v10136_v29  ;;  %v10184_v20 = vadd.f32 %v7274_v17, %v10009_v5 }
 0x2bb   : > { %11152 = vst [vmem:[#allocation55_spill] sm:$0xff] %v10166_v44  ;;  %v5643_v21 = vadd.f32 %v5642_v25, %v10162_v7  ;;  %v6659_v58 = vpack.c.bf16 %v10166_v44, %v10159_v34  ;;  %v10174_v35 = vadd.f32 %v10094_v38, %v5372_v1  ;;  %v4727_v30 = vpop.f32.mrf.mxu0 }
 0x2bc   : > { %v7321_v33 = vpop.f32.mrf.mxu1  ;;  %v4986_v27 = vadd.f32 %v4985_v43, %v10180_v26  ;;  %v6589_v61 = vpack.c.bf16 %v10184_v20, %v10177_v55  ;;  %v10194_v4 = vadd.f32 %v4727_v30, %v10003_v28 }
 0x2bd   : > { %11153 = vst [vmem:[#allocation56_spill] sm:$0xff] %v10174_v35  ;;  %6738 = vst [vmem:[%s10139_s12 + $0x18] sm:$0xff] %v6659_v58   ;;  %v6654_v25 = vpack.c.bf16 %v10174_v35, %v10162_v7  ;;  %v5644_v1 = vadd.f32 %v5643_v21, %v10174_v35  ;;  %v7277_v36 = vpop.f32.mrf.mxu0  ;;  %v10203_v43 = vadd.f32 %v7321_v33, %v10094_v38 }
 0x2be   : > { %v5385_v53 = vpop.f32.mrf.mxu1  ;;  %6725 = vst [vmem:[%s10105_s27 + $0x28] sm:$0xff] %v6589_v61   ;;  %v6584_v21 = vpack.c.bf16 %v10194_v4, %v10180_v26  ;;  %v4987_v17 = vadd.f32 %v4986_v27, %v10194_v4 }
 0x2bf   : > { %6737 = vst [vmem:[%s10139_s12 + $0x10] sm:$0xff] %v6654_v25   ;;  %v5645_v5 = vadd.f32 %v5644_v1, %v10159_v34  ;;  %11154 = vst [vmem:[#allocation58_spill] sm:$0xff] %v10203_v43  ;;  %v10206_v35 = vadd.f32 %v10094_v38, %v5385_v53  ;;  %v4740_v25 = vpop.f32.mrf.mxu0 }
 0x2c0   : > { %v7322_v58 = vpop.f32.mrf.mxu1  ;;  %6724 = vst [vmem:[%s10105_s27 + $0x20] sm:$0xff] %v6584_v21   ;;  %v4988_v1 = vadd.f32 %v4987_v17, %v10177_v55  ;;  %v10224_v21 = vadd.f32 %v4740_v25, %v10012_v11 }
 0x2c1   : > { %11155 = vst [vmem:[#allocation46_spill] sm:$0xff] %v10206_v35  ;;  %v5646_v28 = vadd.f32 %v5645_v5, %v10166_v44  ;;  %v10210_v30 = vadd.f32 %v7322_v58, %v10094_v38  ;;  %v7278_v53 = vpop.f32.mrf.mxu0  ;;  %v10221_v5 = vadd.f32 %v7277_v36, %v10018_v46 }
 0x2c2   : > { %v5388_v61 = vpop.f32.mrf.mxu1  ;;  %v4989_v17 = vadd.f32 %v4988_v1, %v10184_v20 }
 0x2c3   : > { %11156 = vst [vmem:[#allocation57_spill] sm:$0xff] %v10210_v30  ;;  %v5647_v34 = vadd.f32 %v5646_v28, %v10206_v35  ;;  %v6669_v33 = vpack.c.bf16 %v10210_v30, %v10203_v43  ;;  %v10218_v27 = vadd.f32 %v10094_v38, %v5388_v61  ;;  %v10228_v28 = vadd.f32 %v7278_v53, %v10021_v12  ;;  %v4743_v7 = vpop.f32.mrf.mxu0 }
 0x2c4   : > { %v7325_v58 = vpop.f32.mrf.mxu1  ;;  %v4990_v46 = vadd.f32 %v4989_v17, %v10224_v21  ;;  %v10238_v25 = vadd.f32 %v4743_v7, %v10015_v31 }
 0x2c5   : > { %11157 = vst [vmem:[#allocation32_spill] sm:$0xff] %v10218_v27  ;;  %6740 = vst [vmem:[%s10139_s12 + $0x28] sm:$0xff] %v6669_v33   ;;  %v6664_v44 = vpack.c.bf16 %v10218_v27, %v10206_v35  ;;  %v5648_v61 = vadd.f32 %v5647_v34, %v10218_v27  ;;  %v6599_v11 = vpack.c.bf16 %v10228_v28, %v10221_v5  ;;  %v7281_v1 = vpop.f32.mrf.mxu0 }
 0x2c6   : > { %v5401_v36 = vpop.f32.mrf.mxu1  ;;  %v6594_v34 = vpack.c.bf16 %v10238_v25, %v10224_v21  ;;  %v4991_v53 = vadd.f32 %v4990_v46, %v10238_v25  ;;  %v10247_v17 = vadd.f32 %v7325_v58, %v10094_v38 }
 0x2c7   : > { %6739 = vst [vmem:[%s10139_s12 + $0x20] sm:$0xff] %v6664_v44   ;;  %v5649_v12 = vadd.f32 %v5648_v61, %v10203_v43  ;;  %6727 = vst [vmem:[%s10105_s27 + $0x38] sm:$0xff] %v6599_v11   ;;  %v10250_v27 = vadd.f32 %v10094_v38, %v5401_v36  ;;  %v4756_v44 = vpop.f32.mrf.mxu0 }
 0x2c8   : > { %v7326_v33 = vpop.f32.mrf.mxu1  ;;  %11158 = vst [vmem:[#allocation28_spill] sm:$0xff] %v10247_v17  ;;  %6726 = vst [vmem:[%s10105_s27 + $0x30] sm:$0xff] %v6594_v34   ;;  %v4992_v61 = vadd.f32 %v4991_v53, %v10221_v5  ;;  %v10268_v34 = vadd.f32 %v4756_v44, %v10024_v3 }
 0x2c9   : > { %11159 = vst [vmem:[#allocation27_spill] sm:$0xff] %v10250_v27  ;;  %v5650_v31 = vadd.f32 %v5649_v12, %v10210_v30  ;;  %v10254_v7 = vadd.f32 %v7326_v33, %v10094_v38  ;;  %v7282_v36 = vpop.f32.mrf.mxu0  ;;  %v10265_v12 = vadd.f32 %v7281_v1, %v10030_v54 }
 0x2ca   : > { %v5404_v11 = vpop.f32.mrf.mxu1  ;;  %v4993_v53 = vadd.f32 %v4992_v61, %v10228_v28 }
 0x2cb   : > { %11160 = vst [vmem:[#allocation49_spill] sm:$0xff] %v10254_v7  ;;  %v5651_v43 = vadd.f32 %v5650_v31, %v10250_v27  ;;  %v6679_v58 = vpack.c.bf16 %v10254_v7, %v10247_v17  ;;  %v10262_v46 = vadd.f32 %v10094_v38, %v5404_v11  ;;  %v10272_v31 = vadd.f32 %v7282_v36, %v10033_v0  ;;  %v4759_v35 = vpop.f32.mrf.mxu0 }
 0x2cc   : > { %v7329_v33 = vpop.f32.mrf.mxu1  ;;  %v4994_v54 = vadd.f32 %v4993_v53, %v10268_v34  ;;  %v10282_v44 = vadd.f32 %v4759_v35, %v10027_v50 }
 0x2cd   : > { %11161 = vst [vmem:[#allocation35_spill] sm:$0xff] %v10262_v46  ;;  %6742 = vst [vmem:[%s10139_s12 + $0x38] sm:$0xff] %v6679_v58   ;;  %v6674_v30 = vpack.c.bf16 %v10262_v46, %v10250_v27  ;;  %v5652_v11 = vadd.f32 %v5651_v43, %v10262_v46  ;;  %v6609_v3 = vpack.c.bf16 %v10272_v31, %v10265_v12  ;;  %v7285_v61 = vpop.f32.mrf.mxu0 }
 0x2ce   : > { %v5417_v1 = vpop.f32.mrf.mxu1  ;;  %v6604_v43 = vpack.c.bf16 %v10282_v44, %v10268_v34  ;;  %v4995_v36 = vadd.f32 %v4994_v54, %v10282_v44  ;;  %v10291_v53 = vadd.f32 %v7329_v33, %v10094_v38 }
 0x2cf   : > { %6741 = vst [vmem:[%s10139_s12 + $0x30] sm:$0xff] %v6674_v30   ;;  %v5653_v0 = vadd.f32 %v5652_v11, %v10247_v17  ;;  %6729 = vst [vmem:[%s10105_s27 + $0x48] sm:$0xff] %v6609_v3   ;;  %v10294_v46 = vadd.f32 %v10094_v38, %v5417_v1  ;;  %v4772_v30 = vpop.f32.mrf.mxu0 }
 0x2d0   : > { %v7330_v58 = vpop.f32.mrf.mxu1  ;;  %6728 = vst [vmem:[%s10105_s27 + $0x40] sm:$0xff] %v6604_v43   ;;  %v4996_v11 = vadd.f32 %v4995_v36, %v10265_v12 }
 0x2d1   : > { %v5654_v50 = vadd.f32 %v5653_v0, %v10254_v7  ;;  %v10298_v35 = vadd.f32 %v7330_v58, %v10094_v38  ;;  %v7286_v1 = vpop.f32.mrf.mxu0  ;;  %v10309_v0 = vadd.f32 %v7285_v61, %v10042_v60  ;;  %v10312_v7 = vadd.f32 %v4772_v30, %v10036_v49 }
 0x2d2   : > { %v5420_v3 = vpop.f32.mrf.mxu1  ;;  %v4997_v43 = vadd.f32 %v4996_v11, %v10272_v31  ;;  %v10316_v36 = vadd.f32 %v7286_v1, %v10045_v63 }
 0x2d3   : > { %v5655_v17 = vadd.f32 %v5654_v50, %v10294_v46  ;;  %v6689_v33 = vpack.c.bf16 %v10298_v35, %v10291_v53  ;;  %v10306_v54 = vadd.f32 %v10094_v38, %v5420_v3  ;;  %v4775_v27 = vpop.f32.mrf.mxu0 }
 0x2d4   : > { %v7333_v58 = vpop.f32.mrf.mxu1  ;;  %v4998_v60 = vadd.f32 %v4997_v43, %v10312_v7  ;;  %v6619_v49 = vpack.c.bf16 %v10316_v36, %v10309_v0  ;;  %v10326_v30 = vadd.f32 %v4775_v27, %v10039_v56 }
 0x2d5   : > { %11162 = vst [vmem:[#allocation34_spill] sm:$0xff] %v10306_v54  ;;  %6744 = vst [vmem:[%s10139_s12 + $0x48] sm:$0xff] %v6689_v33   ;;  %v6684_v50 = vpack.c.bf16 %v10306_v54, %v10294_v46  ;;  %v5656_v3 = vadd.f32 %v5655_v17, %v10306_v54  ;;  %v7289_v11 = vpop.f32.mrf.mxu0  ;;  %v7186_v33 = vadd.f32 %v10061_v8, %v10056_v51 }
 0x2d6   : > { %v5433_v61 = vpop.f32.mrf.mxu1  ;;  %v7083_v17 = vadd.f32 %v10067_v48, %v10065_v59  ;;  %6731 = vst [vmem:[%s10105_s27 + $0x58] sm:$0xff] %v6619_v49   ;;  %v6614_v43 = vpack.c.bf16 %v10326_v30, %v10312_v7  ;;  %v4999_v54 = vadd.f32 %v4998_v60, %v10326_v30  ;;  %v10339_v56 = vadd.f32 %v7333_v58, %v10094_v38 }
 0x2d7   : > { %6743 = vst [vmem:[%s10139_s12 + $0x40] sm:$0xff] %v6684_v50   ;;  %v5657_v63 = vadd.f32 %v5656_v3, %v10291_v53  ;;  %v10342_v27 = vadd.f32 %v10094_v38, %v5433_v61  ;;  %v4788_v8 = vpop.f32.mrf.mxu0  ;;  %v7086_v59 = vadd.f32 %v10075_v2, %v10071_v19  ;;  %v4639_v58 = vadd.f32 %v7186_v33, %v10059_v39 }
 0x2d8   : > { %v7334_v1 = vpop.f32.mrf.mxu1  ;;  %6730 = vst [vmem:[%s10105_s27 + $0x50] sm:$0xff] %v6614_v43   ;;  %v5000_v48 = vadd.f32 %v4999_v54, %v10309_v0  ;;  %v10363_v2 = vadd.f32 %v4788_v8, %v10048_v62  ;;  %v4491_v33 = vadd.f32 %v7083_v17, %v9955_v40 }
 0x2d9   : > { %v5658_v50 = vadd.f32 %v5657_v63, %v10298_v35  ;;  %v10346_v51 = vadd.f32 %v7334_v1, %v10094_v38  ;;  %v7290_v63 = vpop.f32.mrf.mxu0  ;;  %v10360_v1 = vadd.f32 %v7289_v11, %v10054_v23  ;;  %v4494_v23 = vadd.f32 %v7086_v59, %v9964_v37 }
 0x2da   : > { %v5436_v3 = vpop.f32.mrf.mxu1  ;;  %v5001_v54 = vadd.f32 %v5000_v48, %v10316_v36  ;;  %v10366_v39 = vadd.f32 %v7290_v63, %v4639_v58  ;;  %v7195_v58 = vadd.f32 %v10079_v6, %v10073_v24  ;;  %v7198_v37 = vadd.f32 %v10083_v15, %v10081_v16 }
 0x2db   : > { %v5659_v60 = vadd.f32 %v5658_v50, %v10342_v27  ;;  %v6699_v61 = vpack.c.bf16 %v10346_v51, %v10339_v56  ;;  %v10357_v49 = vadd.f32 %v10094_v38, %v5436_v3  ;;  %v4791_v3 = vpop.f32.mrf.mxu0 }
 0x2dc   : > { %v7337_v19 = vpop.f32.mrf.mxu1  ;;  %v5002_v11 = vadd.f32 %v5001_v54, %v10363_v2  ;;  %v6629_v8 = vpack.c.bf16 %v10366_v39, %v10360_v1  ;;  %v10378_v48 = vadd.f32 %v4791_v3, %v10051_v18 }
 0x2dd   : > { %6746 = vst [vmem:[%s10139_s12 + $0x58] sm:$0xff] %v6699_v61   ;;  %v6694_v43 = vpack.c.bf16 %v10357_v49, %v10342_v27  ;;  %v5660_v50 = vadd.f32 %v5659_v60, %v10357_v49  ;;  %v7293_v17 = vpop.f32.mrf.mxu0  ;;  %v10391_v18 = vadd.f32 %v7337_v19, %v10094_v38 }
 0x2de   : > { %v5449_v62 = vpop.f32.mrf.mxu1  ;;  %6733 = vst [vmem:[%s10105_s27 + $0x68] sm:$0xff] %v6629_v8   ;;  %v6624_v60 = vpack.c.bf16 %v10378_v48, %v10363_v2  ;;  %v5003_v61 = vadd.f32 %v5002_v11, %v10378_v48 }
 0x2df   : > { %6745 = vst [vmem:[%s10139_s12 + $0x50] sm:$0xff] %v6694_v43   ;;  %v5661_v40 = vadd.f32 %v5660_v50, %v10339_v56  ;;  %v10394_v63 = vadd.f32 %v10094_v38, %v5449_v62  ;;  %v4804_v6 = vpop.f32.mrf.mxu0  ;;  %v4652_v43 = vadd.f32 %v7195_v58, %v4491_v33  ;;  %v4655_v50 = vadd.f32 %v7198_v37, %v4494_v23 }
 0x2e0   : > { %v7338_v59 = vpop.f32.mrf.mxu1  ;;  %6732 = vst [vmem:[%s10105_s27 + $0x60] sm:$0xff] %v6624_v60   ;;  %v5004_v16 = vadd.f32 %v5003_v61, %v10360_v1 }
 0x2e1   : > { %v5662_v54 = vadd.f32 %v5661_v40, %v10346_v51  ;;  %v10398_v24 = vadd.f32 %v7338_v59, %v10094_v38  ;;  %v7294_v62 = vpop.f32.mrf.mxu0  ;;  %v10408_v8 = vadd.f32 %v7293_v17, %v4652_v43  ;;  %v10411_v59 = vadd.f32 %v4804_v6, %v10069_v10 }
 0x2e2   : > { %v5452_v15 = vpop.f32.mrf.mxu1  ;;  %v5005_v33 = vadd.f32 %v5004_v16, %v10366_v39  ;;  %v10414_v23 = vadd.f32 %v7294_v62, %v4655_v50 }
 0x2e3   : > { %v5663_v3 = vadd.f32 %v5662_v54, %v10394_v63  ;;  %v6709_v19 = vpack.c.bf16 %v10398_v24, %v10391_v18  ;;  %v10406_v11 = vadd.f32 %v10094_v38, %v5452_v15  ;;  %v4807_v60 = vpop.f32.mrf.mxu0 }
 0x2e4   : > { %v7341_v40 = vpop.f32.mrf.mxu1  ;;  %v5006_v17 = vadd.f32 %v5005_v33, %v10411_v59  ;;  %v6639_v10 = vpack.c.bf16 %v10414_v23, %v10408_v8  ;;  %v10424_v54 = vadd.f32 %v4807_v60, %v10077_v32 }
 0x2e5   : > { %6748 = vst [vmem:[%s10139_s12 + $0x68] sm:$0xff] %v6709_v19   ;;  %v6704_v58 = vpack.c.bf16 %v10406_v11, %v10394_v63  ;;  %v5664_v37 = vadd.f32 %v5663_v3, %v10406_v11  ;;  %v10435_v50 = vadd.f32 %v7341_v40, %v10094_v38 }
 0x2e6   : > { %v5465_v61 = vpop.f32.mrf.mxu1  ;;  %6735 = vst [vmem:[%s10105_s27 + $0x78] sm:$0xff] %v6639_v10   ;;  %v6634_v15 = vpack.c.bf16 %v10424_v54, %v10411_v59  ;;  %v5007_v43 = vadd.f32 %v5006_v17, %v10424_v54 }
 0x2e7   : > { %6747 = vst [vmem:[%s10139_s12 + $0x60] sm:$0xff] %v6704_v58   ;;  %v5665_v6 = vadd.f32 %v5664_v37, %v10391_v18  ;;  %v10438_v32 = vadd.f32 %v10094_v38, %v5465_v61 }
 0x2e8   : > { %v7342_v16 = vpop.f32.mrf.mxu1  ;;  %6734 = vst [vmem:[%s10105_s27 + $0x70] sm:$0xff] %v6634_v15   ;;  %v5008_v62 = vadd.f32 %v5007_v43, %v10408_v8 }
 0x2e9   : > { %v5666_v3 = vadd.f32 %v5665_v6, %v10398_v24  ;;  %v10442_v19 = vadd.f32 %v7342_v16, %v10094_v38 }
 0x2ea   : > { %v5468_v40 = vpop.f32.mrf.mxu1  ;;  %v5009_v60 = vadd.f32 %v5008_v62, %v10414_v23 }
 0x2eb   : > { %11163 = vst [vmem:[#allocation36_spill] sm:$0xff] %v10442_v19  ;;  %v5667_v33 = vadd.f32 %v5666_v3, %v10438_v32  ;;  %v6719_v58 = vpack.c.bf16 %v10442_v19, %v10435_v50  ;;  %v10459_v37 = vadd.f32 %v10094_v38, %v5468_v40 }
 0x2ec   : > { %7714 = shalt.err (!%p7711_p3)
}
 0x2ed   : > { %s7715_s27 = scalar_lea.hbm %s10449_s1, 2048  ;;  %s7719_s29 = scalar_lea.hbm %s10882_s5, 4096 }
 0x2ee   : > { %p7716_p11 = scmp.ne.s32.totalorder %s10449_s1, %s7715_s27  ;;  %p7720_p4 = scmp.lt.s32.totalorder %s10449_s1, %s10882_s5 }
 0x2ef   : > { %p7721_p6 = scmp.lt.s32.totalorder %s7719_s29, %s7715_s27 }
 0x2f0   : > { %p7717_p9 = pnand %p7716_p11, %p11164_p2 }
 0x2f1   : > { %p7722_p8 = por %p7721_p6, %p7720_p4 }
 0x2f2   : > { %p7718_p1 = pneg %p7717_p9 }
 0x2f4   : > { %p7723_p5 = pnand %p7722_p8, %p7718_p1 }
 0x2f6   : > { %7726 = shalt.err (!%p7723_p5)
}
 0x2f7   : > { %s7920_s28 = smov 64   ;;  %s7921_s24 = smov 4   ;;  %6750 = vst [vmem:[%s10139_s12 + $0x78] sm:$0xff] %v6719_v58   ;;  %v6714_v38 = vpack.c.bf16 %v10459_v37, %v10438_v32  ;;  %v5668_v17 = vadd.f32 %v5667_v33, %v10459_v37  ;;  %v5010_v61 = vrot.slane %v5009_v60, 4 }
 0x2f8   : > { %7353 = dma.vmem_to_hbm [thread:$0]  (%p11164_p2), %s10461_s19, 2048, %s10449_s1, %s5782_s21, %s7920_s28, %s7920_s28, %s7921_s24  }
 0x2f9   : > { %s10499_s25 = scalar_lea.hbm %s10883_s6, %s6559_s18  ;;  %s11165_s27 = sshll.u32 %s10139_s12, 4  ;;  %6749 = vst [vmem:[%s10139_s12 + $0x70] sm:$0xff] %v6714_v38   ;;  %v5669_v10 = vadd.f32 %v5668_v17, %v10435_v50  ;;  %v5011_v6 = vadd.f32 %v5010_v61, %v5009_v60  ;;  %s10503_s27 = int_to_ptr.vmem [resolvable:$true] %s11165_s27 }
 0x2fa   : > { %s11166_s1 = sand.u32 1, %s8003_s17   ;;  %s7727_s21 = scalar_lea.vmem %s10503_s27, 2048 }
 0x2fb   : > { %s10509_s19 = scalar_lea.sflag [#allocation11], %s11166_s1  ;;  %p7728_p7 = scmp.ne.s32.totalorder %s10503_s27, %s7727_s21 }
 0x2fc   : > { %s7922_s18 = smov [#allocation10]  }
 0x2fd   : > { %p7729_p12 = pnand %p7728_p7, %p11164_p2  ;;  %s7731_s26 = sshll.u32 %s7922_s18, 4  ;;  %s7732_s26 = int_to_ptr.vmem [resolvable:$false] %s7731_s26 }
 0x2fe   : > { %s7733_s15 = scalar_lea.vmem %s7732_s26, 4096  ;;  %p7734_p0 = scmp.lt.s32.totalorder %s10503_s27, %s7732_s26 }
 0x2ff   : > { %p7730_p13 = pneg %p7729_p12  ;;  %p7735_p10 = scmp.lt.s32.totalorder %s7733_s15, %s7727_s21 }
 0x301   : > { %p7736_p3 = por %p7735_p10, %p7734_p0 }
 0x303   : > { %p7737_p11 = pnand %p7736_p3, %p7730_p13 }
 0x305   : > { %7740 = shalt.err (!%p7737_p11)
}
 0x306   : > { %s7741_s12 = scalar_lea.hbm %s10499_s25, 2048  ;;  %s7745_s22 = scalar_lea.hbm %s10883_s6, 4096 }
 0x307   : > { %p7742_p9 = scmp.ne.s32.totalorder %s10499_s25, %s7741_s12  ;;  %p7746_p6 = scmp.lt.s32.totalorder %s10499_s25, %s10883_s6 }
 0x308   : > { %p7747_p8 = scmp.lt.s32.totalorder %s7745_s22, %s7741_s12 }
 0x309   : > { %p7743_p1 = pnand %p7742_p9, %p11164_p2 }
 0x30a   : > { %p7748_p5 = por %p7747_p8, %p7746_p6 }
 0x30b   : > { %p7744_p4 = pneg %p7743_p1 }
 0x30d   : > { %p7749_p7 = pnand %p7748_p5, %p7744_p4 }
 0x30f   : > { %7752 = shalt.err (!%p7749_p7)
}
 0x310   : > { %7354 = dma.vmem_to_hbm [thread:$0]  (%p11164_p2), %s10503_s27, 2048, %s10499_s25, %s10509_s19, %s7920_s28, %s7920_s28, %s7921_s24   ;;  %v5670_v16 = vadd.f32 %v5669_v10, %v10442_v19  ;;  %v5012_v15 = vrot.slane %v5011_v6, 2 }
 0x311   : > { %s10537_s21 = sshll.u32 %s8003_s17, 4  ;;  %s429_s26 = scalar_lea.vmem [#allocation12], %s8120_s11 }
 0x312   : > { %v5013_v43 = vadd.f32 %v5012_v15, %v5011_v6  ;;  %v5671_v3 = vrot.slane %v5670_v16, 4  ;;  %s5848_s15 = sshll.u32 %s429_s26, 4  ;;  %s10544_s3 = scalar_lea.hbm %s10884_s7, %s10537_s21  ;;  %s5849_s15 = int_to_ptr.vmem [resolvable:$true] %s5848_s15 }
 0x313   : > { %s7753_s28 = scalar_lea.vmem %s5849_s15, 16  ;;  %s7923_s24 = smov [#allocation12]  }
 0x314   : > { %v5014_v62 = vrot.slane %v5013_v43, 1  ;;  %v5672_v33 = vadd.f32 %v5671_v3, %v5670_v16  ;;  %p7754_p12 = scmp.ne.s32.totalorder %s5849_s15, %s7753_s28  ;;  %s7757_s25 = sshll.u32 %s7923_s24, 4  ;;  %s7758_s25 = int_to_ptr.vmem [resolvable:$false] %s7757_s25 }
 0x315   : > { %s7759_s27 = scalar_lea.vmem %s7758_s25, 32  ;;  %p7760_p10 = scmp.lt.s32.totalorder %s5849_s15, %s7758_s25 }
 0x316   : > { %v5015_v40 = vadd.f32 %v5014_v62, %v5013_v43  ;;  %p7755_p13 = pnand %p7754_p12, %p11164_p2  ;;  %p7761_p3 = scmp.lt.s32.totalorder %s7759_s27, %s7753_s28 }
 0x318   : > { %v10546_v58 = vmul.f32 0.00390625, %v5015_v40  ;;  %5118 = vst [vmem:[%s429_s26] sm:$0x1] %v5015_v40  ;;  %p7756_p0 = pneg %p7755_p13  ;;  %p7762_p11 = por %p7761_p3, %p7760_p10 }
 0x31a   : > { %p7763_p9 = pnand %p7762_p11, %p7756_p0 }
 0x31c   : > { %7766 = shalt.err (!%p7763_p9)
}
 0x31d   : > { %s7767_s22 = scalar_lea.hbm %s10544_s3, 16  ;;  %s7771_s26 = scalar_lea.hbm %s10884_s7, 32 }
 0x31e   : > { %p7768_p1 = scmp.ne.s32.totalorder %s10544_s3, %s7767_s22  ;;  %p7772_p8 = scmp.lt.s32.totalorder %s10544_s3, %s10884_s7 }
 0x31f   : > { %p7773_p5 = scmp.lt.s32.totalorder %s7771_s26, %s7767_s22 }
 0x320   : > { %p7769_p4 = pnand %p7768_p1, %p11164_p2 }
 0x321   : > { %p7774_p7 = por %p7773_p5, %p7772_p8 }
 0x322   : > { %p7770_p6 = pneg %p7769_p4 }
 0x324   : > { %p7775_p12 = pnand %p7774_p7, %p7770_p6 }
 0x326   : > { %7778 = shalt.err (!%p7775_p12)
}
 0x327   : > { %7355 = dma.vmem_to_hbm [thread:$0]  (%p11164_p2), %s5849_s15, 16, %s10544_s3, %s10509_s19   ;;  %v5673_v60 = vrot.slane %v5672_v33, 2  ;;  %v5025_v38 = vsub.f32 %v10180_v26, %v10546_v58  ;;  %v5026_v17 = vsub.f32 %v10194_v4, %v10546_v58  ;;  %v5027_v61 = vsub.f32 %v10177_v55, %v10546_v58 }
 0x328   : > { %v5028_v10 = vsub.f32 %v10184_v20, %v10546_v58  ;;  %v5029_v6 = vsub.f32 %v10224_v21, %v10546_v58  ;;  %v10577_v16 = vsub.f32 %v10238_v25, %v10546_v58  ;;  %v10581_v15 = vsub.f32 %v10221_v5, %v10546_v58  ;;  %s441_s19 = scalar_lea.vmem [#allocation15], %s8120_s11  ;;  %s435_s15 = scalar_lea.vmem [#allocation13], %s8120_s11 }
 0x329   : > { %v10585_v26 = vsub.f32 %v10228_v28, %v10546_v58  ;;  %v10589_v55 = vsub.f32 %v10268_v34, %v10546_v58  ;;  %v10593_v20 = vsub.f32 %v10282_v44, %v10546_v58  ;;  %v10597_v4 = vsub.f32 %v10265_v12, %v10546_v58  ;;  %s5861_s3 = sshll.u32 %s435_s15, 4  ;;  %s5874_s28 = sshll.u32 %s441_s19, 4  ;;  %s10779_s3 = int_to_ptr.vmem [resolvable:$true] %s5861_s3  ;;  %s10787_s28 = int_to_ptr.vmem [resolvable:$true] %s5874_s28 }
 0x32a   : > { %v10601_v5 = vsub.f32 %v10272_v31, %v10546_v58  ;;  %v10605_v21 = vsub.f32 %v10312_v7, %v10546_v58  ;;  %v10609_v28 = vsub.f32 %v10326_v30, %v10546_v58  ;;  %v10613_v25 = vsub.f32 %v10309_v0, %v10546_v58  ;;  %s10777_s27 = scalar_lea.hbm %s10885_s8, %s10537_s21  ;;  %s10785_s18 = scalar_lea.hbm %s10886_s9, %s10537_s21 }
 0x32b   : > { %v10617_v12 = vsub.f32 %v10316_v36, %v10546_v58  ;;  %v10621_v34 = vsub.f32 %v10363_v2, %v10546_v58  ;;  %v10625_v7 = vsub.f32 %v10378_v48, %v10546_v58  ;;  %v10629_v31 = vsub.f32 %v10360_v1, %v10546_v58  ;;  %s11181_s26 = sand.u32 1, %s8003_s17   ;;  %s7779_s29 = scalar_lea.vmem %s10779_s3, 16 }
 0x32c   : > { %v10633_v44 = vsub.f32 %v10366_v39, %v10546_v58  ;;  %v10637_v0 = vsub.f32 %v10411_v59, %v10546_v58  ;;  %v10641_v36 = vsub.f32 %v10424_v54, %v10546_v58  ;;  %v10645_v30 = vsub.f32 %v10408_v8, %v10546_v58  ;;  %s10793_s12 = scalar_lea.sflag [#allocation14], %s11181_s26  ;;  %p7780_p13 = scmp.ne.s32.totalorder %s10779_s3, %s7779_s29 }
 0x32d   : > { %v10649_v1 = vsub.f32 %v10414_v23, %v10546_v58  ;;  %v5017_v2 = vsub.f32 %v10097_v41, %v10546_v58  ;;  %v5018_v39 = vsub.f32 %v10102_v9, %v10546_v58  ;;  %v5674_v48 = vadd.f32 %v5673_v60, %v5672_v33 }
 0x32e   : > { %v5019_v59 = vsub.f32 %v10086_v57, %v10546_v58  ;;  %v5020_v3 = vsub.f32 %v10089_v14, %v10546_v58  ;;  %v5021_v23 = vsub.f32 %v10132_v45, %v10546_v58  ;;  %v5022_v19 = vsub.f32 %v10150_v47, %v10546_v58  ;;  %p7781_p0 = pnand %p7780_p13, %p11164_p2 }
 0x32f   : > { %v5049_v54 = vmul.f32 %v5017_v2, %v5017_v2  ;;  %v5050_v43 = vmul.f32 %v5018_v39, %v5018_v39  ;;  %v5675_v8 = vrot.slane %v5674_v48, 1  ;;  %v5023_v57 = vsub.f32 %v10129_v42, %v10546_v58 }
 0x330   : > { %v5051_v62 = vmul.f32 %v5019_v59, %v5019_v59  ;;  %v5052_v9 = vmul.f32 %v5020_v3, %v5020_v3  ;;  %v5053_v60 = vmul.f32 %v5021_v23, %v5021_v23  ;;  %v5024_v14 = vsub.f32 %v10136_v29, %v10546_v58  ;;  %p7782_p10 = pneg %p7781_p0 }
 0x331   : > { %v5081_v40 = vadd.f32 %v5050_v43, %v5049_v54  ;;  %v5676_v41 = vadd.f32 %v5675_v8, %v5674_v48  ;;  %v5054_v45 = vmul.f32 %v5022_v19, %v5022_v19  ;;  %v5055_v59 = vmul.f32 %v5023_v57, %v5023_v57 }
 0x332   : > { %v5056_v54 = vmul.f32 %v5024_v14, %v5024_v14  ;;  %v5057_v8 = vmul.f32 %v5025_v38, %v5025_v38  ;;  %v5060_v19 = vmul.f32 %v5028_v10, %v5028_v10 }
 0x333   : > { %v5082_v33 = vadd.f32 %v5081_v40, %v5051_v62  ;;  %5779 = vst [vmem:[%s441_s19] sm:$0x1] %v5676_v41  ;;  %v10670_v47 = vmul.f32 0.00390625, %v5676_v41  ;;  %v5058_v62 = vmul.f32 %v5026_v17, %v5026_v17  ;;  %v11167_v17 = vld [vmem:[#allocation53_spill] sm:$0xff]  ;;  %s7924_s19 = smov [#allocation13]  }
 0x334   : > { %s7783_s24 = sshll.u32 %s7924_s19, 4  ;;  %s7784_s24 = int_to_ptr.vmem [resolvable:$false] %s7783_s24 }
 0x335   : > { %v5083_v2 = vadd.f32 %v5082_v33, %v5052_v9  ;;  %v5678_v42 = vsub.f32 %v10121_v52, %v10670_v47  ;;  %v5679_v23 = vsub.f32 %v10126_v22, %v10670_v47  ;;  %v5059_v9 = vmul.f32 %v5027_v61, %v5027_v61  ;;  %v11168_v22 = vld [vmem:[#allocation54_spill] sm:$0xff]  ;;  %s7785_s25 = scalar_lea.vmem %s7784_s24, 32  ;;  %p7786_p3 = scmp.lt.s32.totalorder %s10779_s3, %s7784_s24 }
 0x336   : > { %v5680_v33 = vsub.f32 %v10113_v13, %v10670_v47  ;;  %v5062_v52 = vmul.f32 %v10577_v16, %v10577_v16  ;;  %v5682_v61 = vsub.f32 %v11168_v22, %v10670_v47  ;;  %v11170_v16 = vld [vmem:[#allocation26_spill] sm:$0xff]  ;;  %v5068_v22 = vmul.f32 %v10601_v5, %v10601_v5  ;;  %v11176_v5 = vld [vmem:[#allocation27_spill] sm:$0xff]  ;;  %p7787_p11 = scmp.lt.s32.totalorder %s7785_s25, %s7779_s29 }
 0x337   : > { %v5084_v39 = vadd.f32 %v5083_v2, %v5053_v60  ;;  %v5710_v57 = vmul.f32 %v5678_v42, %v5678_v42  ;;  %v5711_v41 = vmul.f32 %v5679_v23, %v5679_v23  ;;  %v5061_v60 = vmul.f32 %v5029_v6, %v5029_v6 }
 0x338   : > { %v5681_v2 = vsub.f32 %v11167_v17, %v10670_v47  ;;  %v5065_v42 = vmul.f32 %v10589_v55, %v10589_v55  ;;  %v11173_v55 = vld [vmem:[#allocation32_spill] sm:$0xff]  ;;  %p7788_p9 = por %p7787_p11, %p7786_p3 }
 0x339   : > { %v5085_v48 = vadd.f32 %v5084_v39, %v5054_v45  ;;  %v5712_v45 = vmul.f32 %v5680_v33, %v5680_v33  ;;  %v5742_v10 = vadd.f32 %v5711_v41, %v5710_v57  ;;  %v5063_v39 = vmul.f32 %v10581_v15, %v10581_v15  ;;  %v11171_v15 = vld [vmem:[#allocation55_spill] sm:$0xff] }
 0x33a   : > { %p7789_p1 = pnand %p7788_p9, %p7782_p10 }
 0x33b   : > { %v5086_v43 = vadd.f32 %v5085_v48, %v5055_v59  ;;  %v11169_v59 = vld [vmem:[#allocation56_spill] sm:$0xff]  ;;  %v5713_v48 = vmul.f32 %v5681_v2, %v5681_v2  ;;  %v5687_v2 = vsub.f32 %v11173_v55, %v10670_v47  ;;  %v5074_v55 = vmul.f32 %v10625_v7, %v10625_v7 }
 0x33c   : > { %v5683_v6 = vsub.f32 %v11169_v59, %v10670_v47  ;;  %v5696_v7 = vsub.f32 %v10291_v53, %v10670_v47 }
 0x33d   : > { %v5087_v3 = vadd.f32 %v5086_v43, %v5056_v54  ;;  %v5743_v54 = vadd.f32 %v5742_v10, %v5712_v45  ;;  %v5064_v43 = vmul.f32 %v10585_v26, %v10585_v26  ;;  %v11172_v26 = vld [vmem:[#allocation46_spill] sm:$0xff] }
 0x33e   : > { %v5686_v57 = vsub.f32 %v11172_v26, %v10670_v47 }
 0x33f   : > { %v5088_v40 = vadd.f32 %v5087_v3, %v5057_v8  ;;  %v5684_v3 = vsub.f32 %v11170_v16, %v10670_v47  ;;  %v5690_v16 = vsub.f32 %v11176_v5, %v10670_v47  ;;  %v5728_v5 = vmul.f32 %v5696_v7, %v5696_v7 }
 0x340   : > { %v5718_v10 = vmul.f32 %v5686_v57, %v5686_v57  ;;  %v5073_v57 = vmul.f32 %v10621_v34, %v10621_v34  ;;  %v11180_v34 = vld [vmem:[#allocation34_spill] sm:$0xff] }
 0x341   : > { %v5089_v29 = vadd.f32 %v5088_v40, %v5058_v62  ;;  %v5714_v62 = vmul.f32 %v5682_v61, %v5682_v61  ;;  %v5744_v40 = vadd.f32 %v5743_v54, %v5713_v48  ;;  %v5716_v41 = vmul.f32 %v5684_v3, %v5684_v3 }
 0x342   : > { %v5719_v48 = vmul.f32 %v5687_v2, %v5687_v2 }
 0x343   : > { %v5090_v58 = vadd.f32 %v5089_v29, %v5059_v9  ;;  %v5685_v9 = vsub.f32 %v11171_v15, %v10670_v47  ;;  %v5715_v29 = vmul.f32 %v5683_v6, %v5683_v6 }
 0x345   : > { %v5091_v38 = vadd.f32 %v5090_v58, %v5060_v19  ;;  %v5745_v19 = vadd.f32 %v5744_v40, %v5714_v62  ;;  %v5066_v58 = vmul.f32 %v10593_v20, %v10593_v20  ;;  %v11174_v20 = vld [vmem:[#allocation58_spill] sm:$0xff]  ;;  %v5071_v40 = vmul.f32 %v10613_v25, %v10613_v25  ;;  %v11179_v25 = vld [vmem:[#allocation49_spill] sm:$0xff] }
 0x346   : > { %v5688_v45 = vsub.f32 %v11174_v20, %v10670_v47  ;;  %v5695_v20 = vsub.f32 %v11180_v34, %v10670_v47 }
 0x347   : > { %v5092_v14 = vadd.f32 %v5091_v38, %v5061_v60  ;;  %v5746_v60 = vadd.f32 %v5745_v19, %v5715_v29  ;;  %v5067_v38 = vmul.f32 %v10597_v4, %v10597_v4  ;;  %v11175_v4 = vld [vmem:[#allocation57_spill] sm:$0xff]  ;;  %v5072_v29 = vmul.f32 %v10617_v12, %v10617_v12 }
 0x348   : > { %v5689_v6 = vsub.f32 %v11175_v4, %v10670_v47  ;;  %v5720_v3 = vmul.f32 %v5688_v45, %v5688_v45  ;;  %v5694_v12 = vsub.f32 %v10294_v46, %v10670_v47  ;;  %v5077_v4 = vmul.f32 %v10637_v0, %v10637_v0 }
 0x349   : > { %v5093_v13 = vadd.f32 %v5092_v14, %v5062_v52  ;;  %v5717_v52 = vmul.f32 %v5685_v9, %v5685_v9  ;;  %v5747_v14 = vadd.f32 %v5746_v60, %v5716_v41  ;;  %v5693_v60 = vsub.f32 %v11179_v25, %v10670_v47 }
 0x34a   : > { %v5721_v15 = vmul.f32 %v5689_v6, %v5689_v6  ;;  %v5699_v0 = vsub.f32 %v10357_v49, %v10670_v47  ;;  %v5702_v49 = vsub.f32 %v10394_v63, %v10670_v47  ;;  %v5705_v25 = vsub.f32 %v10398_v24, %v10670_v47 }
 0x34b   : > { %v5094_v8 = vadd.f32 %v5093_v13, %v5063_v39  ;;  %v5748_v39 = vadd.f32 %v5747_v14, %v5717_v52  ;;  %v5069_v13 = vmul.f32 %v10605_v21, %v10605_v21  ;;  %v11177_v21 = vld [vmem:[#allocation35_spill] sm:$0xff]  ;;  %v5725_v45 = vmul.f32 %v5693_v60, %v5693_v60 }
 0x34c   : > { %v5737_v24 = vmul.f32 %v5705_v25, %v5705_v25 }
 0x34d   : > { %v5095_v23 = vadd.f32 %v5094_v8, %v5064_v43  ;;  %v5749_v54 = vadd.f32 %v5748_v39, %v5718_v10  ;;  %v5070_v43 = vmul.f32 %v10609_v28, %v10609_v28  ;;  %v11178_v28 = vld [vmem:[#allocation28_spill] sm:$0xff]  ;;  %v5076_v39 = vmul.f32 %v10633_v44, %v10633_v44 }
 0x34e   : > { %v5698_v44 = vsub.f32 %v10342_v27, %v10670_v47 }
 0x34f   : > { %v5096_v33 = vadd.f32 %v5095_v23, %v5065_v42  ;;  %v5750_v62 = vadd.f32 %v5749_v54, %v5719_v48  ;;  %v5691_v23 = vsub.f32 %v11177_v21, %v10670_v47  ;;  %v5727_v48 = vmul.f32 %v5695_v20, %v5695_v20 }
 0x350   : > { %v5730_v21 = vmul.f32 %v5698_v44, %v5698_v44 }
 0x351   : > { %v5097_v17 = vadd.f32 %v5096_v33, %v5066_v58  ;;  %v5751_v9 = vadd.f32 %v5750_v62, %v5720_v3  ;;  %v5692_v58 = vsub.f32 %v11178_v28, %v10670_v47  ;;  %v5722_v33 = vmul.f32 %v5690_v16, %v5690_v16 }
 0x352   : > { %v5079_v16 = vmul.f32 %v10645_v30, %v10645_v30  ;;  %v5731_v30 = vmul.f32 %v5699_v0, %v5699_v0 }
 0x353   : > { %v5098_v61 = vadd.f32 %v5097_v17, %v5067_v38  ;;  %v5752_v26 = vadd.f32 %v5751_v9, %v5721_v15  ;;  %v5723_v38 = vmul.f32 %v5691_v23, %v5691_v23  ;;  %v5724_v52 = vmul.f32 %v5692_v58, %v5692_v58 }
 0x354   : > { %v5701_v15 = vsub.f32 %v10346_v51, %v10670_v47  ;;  %v5703_v58 = vsub.f32 %v10406_v11, %v10670_v47  ;;  %v5734_v51 = vmul.f32 %v5702_v49, %v5702_v49  ;;  %v5706_v11 = vsub.f32 %v10438_v32, %v10670_v47 }
 0x355   : > { %v5099_v59 = vadd.f32 %v5098_v61, %v5068_v22  ;;  %v5753_v17 = vadd.f32 %v5752_v26, %v5722_v33  ;;  %v5075_v22 = vmul.f32 %v10629_v31, %v10629_v31  ;;  %v5697_v31 = vsub.f32 %v10298_v35, %v10670_v47 }
 0x356   : > { %v5704_v26 = vsub.f32 %v10391_v18, %v10670_v47  ;;  %v5735_v63 = vmul.f32 %v5703_v58, %v5703_v58  ;;  %v5708_v32 = vsub.f32 %v10435_v50, %v10670_v47 }
 0x357   : > { %v5100_v8 = vadd.f32 %v5099_v59, %v5069_v13  ;;  %v5754_v14 = vadd.f32 %v5753_v17, %v5723_v38  ;;  %v5726_v59 = vmul.f32 %v5694_v12, %v5694_v12  ;;  %v5729_v62 = vmul.f32 %v5697_v31, %v5697_v31 }
 0x358   : > { %v5736_v17 = vmul.f32 %v5704_v26, %v5704_v26 }
 0x359   : > { %v5101_v42 = vadd.f32 %v5100_v8, %v5070_v43  ;;  %v5755_v10 = vadd.f32 %v5754_v14, %v5724_v52  ;;  %v5078_v43 = vmul.f32 %v10641_v36, %v10641_v36  ;;  %v5700_v36 = vsub.f32 %v10339_v56, %v10670_v47 }
 0x35a   : > { %v5733_v56 = vmul.f32 %v5701_v15, %v5701_v15 }
 0x35b   : > { %v5102_v19 = vadd.f32 %v5101_v42, %v5071_v40  ;;  %v5756_v46 = vadd.f32 %v5755_v10, %v5725_v45  ;;  %v5080_v40 = vmul.f32 %v10649_v1, %v10649_v1 }
 0x35d   : > { %v5103_v41 = vadd.f32 %v5102_v19, %v5072_v29  ;;  %v5757_v54 = vadd.f32 %v5756_v46, %v5726_v59  ;;  %v5732_v19 = vmul.f32 %v5700_v36, %v5700_v36 }
 0x35f   : > { %v5104_v2 = vadd.f32 %v5103_v41, %v5073_v57  ;;  %v5758_v53 = vadd.f32 %v5757_v54, %v5727_v48 }
 0x361   : > { %v5105_v61 = vadd.f32 %v5104_v2, %v5074_v55  ;;  %v5759_v35 = vadd.f32 %v5758_v53, %v5728_v5  ;;  %v5707_v2 = vsub.f32 %v10459_v37, %v10670_v47  ;;  %v5738_v37 = vmul.f32 %v5706_v11, %v5706_v11 }
 0x363   : > { %v5106_v13 = vadd.f32 %v5105_v61, %v5075_v22  ;;  %v5760_v27 = vadd.f32 %v5759_v35, %v5729_v62 }
 0x365   : > { %v5107_v6 = vadd.f32 %v5106_v13, %v5076_v39  ;;  %v5761_v9 = vadd.f32 %v5760_v27, %v5730_v21 }
 0x367   : > { %v5108_v8 = vadd.f32 %v5107_v6, %v5077_v4  ;;  %v5762_v28 = vadd.f32 %v5761_v9, %v5731_v30 }
 0x369   : > { %v5109_v3 = vadd.f32 %v5108_v8, %v5078_v43  ;;  %v5763_v33 = vadd.f32 %v5762_v28, %v5732_v19 }
 0x36b   : > { %v5110_v42 = vadd.f32 %v5109_v3, %v5079_v16  ;;  %v5764_v57 = vadd.f32 %v5763_v33, %v5733_v56 }
 0x36d   : > { %v5111_v23 = vadd.f32 %v5110_v42, %v5080_v40  ;;  %v5765_v60 = vadd.f32 %v5764_v57, %v5734_v51 }
 0x36f   : > { %v5112_v29 = vrot.slane %v5111_v23, 4  ;;  %v5766_v55 = vadd.f32 %v5765_v60, %v5735_v63 }
 0x371   : > { %v5113_v1 = vadd.f32 %v5112_v29, %v5111_v23  ;;  %v5767_v12 = vadd.f32 %v5766_v55, %v5736_v17 }
 0x373   : > { %v5114_v41 = vrot.slane %v5113_v1, 2  ;;  %v5768_v14 = vadd.f32 %v5767_v12, %v5737_v24 }
 0x375   : > { %v5115_v38 = vadd.f32 %v5114_v41, %v5113_v1 }
 0x377   : > { %v5116_v18 = vrot.slane %v5115_v38, 1 }
 0x379   : > { %v5117_v52 = vadd.f32 %v5116_v18, %v5115_v38 }
 0x37b   : > { %5119 = vst [vmem:[%s435_s15] sm:$0x1] %v5117_v52 }
 0x37c   : > { %7792 = shalt.err (!%p7789_p1)
}
 0x37d   : > { %s7793_s17 = scalar_lea.hbm %s10777_s27, 16  ;;  %s7797_s1 = scalar_lea.hbm %s10885_s8, 32 }
 0x37e   : > { %p7794_p4 = scmp.ne.s32.totalorder %s10777_s27, %s7793_s17  ;;  %p7798_p5 = scmp.lt.s32.totalorder %s10777_s27, %s10885_s8 }
 0x37f   : > { %p7799_p7 = scmp.lt.s32.totalorder %s7797_s1, %s7793_s17 }
 0x380   : > { %p7795_p6 = pnand %p7794_p4, %p11164_p2 }
 0x381   : > { %p7800_p12 = por %p7799_p7, %p7798_p5 }
 0x382   : > { %p7796_p8 = pneg %p7795_p6 }
 0x384   : > { %p7801_p13 = pnand %p7800_p12, %p7796_p8 }
 0x386   : > { %7804 = shalt.err (!%p7801_p13)
}
 0x387   : > { %7356 = dma.vmem_to_hbm [thread:$0]  (%p11164_p2), %s10779_s3, 16, %s10777_s27, %s10793_s12   ;;  %v11182_v50 = vld [vmem:[#allocation36_spill] sm:$0xff]  ;;  %v5739_v61 = vmul.f32 %v5707_v2, %v5707_v2  ;;  %v5769_v34 = vadd.f32 %v5768_v14, %v5738_v37 }
 0x388   : > { %v5709_v22 = vsub.f32 %v11182_v50, %v10670_v47  ;;  %s7805_s29 = scalar_lea.vmem %s10787_s28, 16  ;;  %s7925_s24 = smov [#allocation15]  }
 0x389   : > { %p7806_p0 = scmp.ne.s32.totalorder %s10787_s28, %s7805_s29  ;;  %s7809_s25 = sshll.u32 %s7925_s24, 4  ;;  %s7810_s25 = int_to_ptr.vmem [resolvable:$false] %s7809_s25 }
 0x38a   : > { %s7811_s17 = scalar_lea.vmem %s7810_s25, 32  ;;  %p7812_p11 = scmp.lt.s32.totalorder %s10787_s28, %s7810_s25 }
 0x38b   : > { %p7807_p10 = pnand %p7806_p0, %p11164_p2  ;;  %p7813_p9 = scmp.lt.s32.totalorder %s7811_s17, %s7805_s29 }
 0x38d   : > { %p7808_p3 = pneg %p7807_p10  ;;  %p7814_p1 = por %p7813_p9, %p7812_p11 }
 0x38f   : > { %p7815_p4 = pnand %p7814_p1, %p7808_p3 }
 0x391   : > { %7818 = shalt.err (!%p7815_p4)
}
 0x392   : > { %s7819_s3 = scalar_lea.hbm %s10785_s18, 16  ;;  %s7823_s22 = scalar_lea.hbm %s10886_s9, 32 }
 0x393   : > { %p7820_p6 = scmp.ne.s32.totalorder %s10785_s18, %s7819_s3  ;;  %p7824_p7 = scmp.lt.s32.totalorder %s10785_s18, %s10886_s9 }
 0x394   : > { %p7825_p12 = scmp.lt.s32.totalorder %s7823_s22, %s7819_s3 }
 0x395   : > { %p7821_p8 = pnand %p7820_p6, %p11164_p2 }
 0x396   : > { %p7826_p13 = por %p7825_p12, %p7824_p7 }
 0x397   : > { %p7822_p5 = pneg %p7821_p8 }
 0x399   : > { %p7827_p0 = pnand %p7826_p13, %p7822_p5 }
 0x39b   : > { %7830 = shalt.err (!%p7827_p0)
}
 0x39c   : > { %7357 = dma.vmem_to_hbm [thread:$0]  (%p11164_p2), %s10787_s28, 16, %s10785_s18, %s10793_s12   ;;  %v5740_v47 = vmul.f32 %v5708_v32, %v5708_v32  ;;  %v5770_v20 = vadd.f32 %v5769_v34, %v5739_v61  ;;  %v5741_v45 = vmul.f32 %v5709_v22, %v5709_v22 }
 0x39d   : > { %s447_s19 = scalar_lea.vmem [#allocation16], %s8120_s11  ;;  %s5885_s17 = scalar_lea.hbm %s10887_s10, %s10537_s21 }
 0x39e   : > { %v5771_v10 = vadd.f32 %v5770_v20, %v5740_v47  ;;  %s5887_s29 = sshll.u32 %s447_s19, 4  ;;  %s5804_s28 = scalar_lea.sflag [#allocation17], %s8120_s11  ;;  %s5888_s29 = int_to_ptr.vmem [resolvable:$true] %s5887_s29 }
 0x39f   : > { %s7831_s18 = scalar_lea.vmem %s5888_s29, 16  ;;  %s7926_s12 = smov [#allocation16]  }
 0x3a0   : > { %v5772_v39 = vadd.f32 %v5771_v10, %v5741_v45  ;;  %p7832_p10 = scmp.ne.s32.totalorder %s5888_s29, %s7831_s18  ;;  %s7835_s3 = sshll.u32 %s7926_s12, 4  ;;  %s7836_s3 = int_to_ptr.vmem [resolvable:$false] %s7835_s3 }
 0x3a1   : > { %s7837_s27 = scalar_lea.vmem %s7836_s3, 32  ;;  %p7838_p9 = scmp.lt.s32.totalorder %s5888_s29, %s7836_s3 }
 0x3a2   : > { %v5773_v13 = vrot.slane %v5772_v39, 4  ;;  %p7833_p3 = pnand %p7832_p10, %p11164_p2  ;;  %p7839_p1 = scmp.lt.s32.totalorder %s7837_s27, %s7831_s18 }
 0x3a4   : > { %v5774_v7 = vadd.f32 %v5773_v13, %v5772_v39  ;;  %p7834_p11 = pneg %p7833_p3  ;;  %p7840_p4 = por %p7839_p1, %p7838_p9 }
 0x3a6   : > { %v5775_v59 = vrot.slane %v5774_v7, 2  ;;  %p7841_p6 = pnand %p7840_p4, %p7834_p11 }
 0x3a8   : > { %v5776_v46 = vadd.f32 %v5775_v59, %v5774_v7 }
 0x3aa   : > { %v5777_v4 = vrot.slane %v5776_v46, 1 }
 0x3ac   : > { %v5778_v6 = vadd.f32 %v5777_v4, %v5776_v46 }
 0x3ae   : > { %5780 = vst [vmem:[%s447_s19] sm:$0x1] %v5778_v6 }
 0x3af   : > { %7844 = shalt.err (!%p7841_p6)
}
 0x3b0   : > { %s7845_s15 = scalar_lea.hbm %s5885_s17, 16  ;;  %s7849_s22 = scalar_lea.hbm %s10887_s10, 32 }
 0x3b1   : > { %p7846_p8 = scmp.ne.s32.totalorder %s5885_s17, %s7845_s15  ;;  %p7850_p12 = scmp.lt.s32.totalorder %s5885_s17, %s10887_s10 }
 0x3b2   : > { %p7851_p13 = scmp.lt.s32.totalorder %s7849_s22, %s7845_s15 }
 0x3b3   : > { %p7847_p5 = pnand %p7846_p8, %p11164_p2 }
 0x3b4   : > { %p7852_p0 = por %p7851_p13, %p7850_p12 }
 0x3b5   : > { %p7848_p7 = pneg %p7847_p5 }
 0x3b7   : > { %p7853_p10 = pnand %p7852_p0, %p7848_p7 }
 0x3b9   : > { %7856 = shalt.err (!%p7853_p10)
}
 0x3ba   : > { %7358 = dma.vmem_to_hbm [thread:$0]  (%p11164_p2), %s5888_s29, 16, %s5885_s17, %s5804_s28  }
 0x3bb PF: > { %s5899_s19 = sand.u32 1, %s7899_s13   ;;  %p11183_p3 = scmp.ne.s32.totalorder %s10945_s20, 0 }
 0x3bc   : > { %p11184_p11 = scmp.ge.s32.totalorder %s7911_s16, 2  ;;  %s5900_s24 = scalar_lea.sflag [#allocation5], %s5899_s19 }
 0x3be   : > { %p7377_p9 = pnand %p11184_p11, %p11183_p3 }
 0x3c0   : > { %p7378_p1 = pneg %p7377_p9 }
 0x3c2   : > { %7882 = dma.done.wait (%p7378_p1), %s5900_s24, 2048  }
 0x3c3   : > { %7884 = vsyncadd (%p7378_p1), %s5900_s24, 4294965248  ;;  %s11185_s25 = sadd.s32 4294967294, %s7911_s16  }
 0x3c4   : > { %s5908_s18 = sand.u32 1, %s11185_s25  }
 0x3c5   : > { %s5909_s12 = scalar_lea.sflag [#allocation11], %s5908_s18 }
 0x3c6   : > { %7886 = dma.done.wait (%p7378_p1), %s5909_s12, 2064  }
 0x3c7   : > { %7888 = vsyncadd (%p7378_p1), %s5909_s12, 4294965232  ;;  %s5926_s30 = scalar_lea.sflag [#allocation14], %s5908_s18 }
 0x3c8   : > { %7890 = dma.done.wait (%p7378_p1), %s5926_s30, 32  }
 0x3c9   : > { %7892 = vsyncadd (%p7378_p1), %s5926_s30, 4294967264  ;;  %s5942_s29 = scalar_lea.sflag [#allocation17], %s5899_s19 }
 0x3ca   : > { %7894 = dma.done.wait (%p7378_p1), %s5942_s29, 16  }
 0x3cb   : > { %7896 = vsyncadd (%p7378_p1), %s5942_s29, 4294967280  ;;  %s11186_s20 = sld [smem:[#allocation24_spill]]  ;;  %p34_p2 = scmp.ge.s32.totalorder %s8062_s23, 4  }
 0x3cc   : > { %s11187_s15 = sld [smem:[#allocation25_spill]]  ;;  %s11188_s13 = smov %s7903_s14 }
 0x3cd   : > { %s11190_s16 = smov %s8062_s23  ;;  %36 = sbr.rel (!%p34_p2) target bundleno = 15 (0xf), region = 176 }
 0x3d1   : > { %s11189_s14 = smov %s11186_s20 }
 0x3d2   :  { %5946 = vsyncpa [#allocation4], 1 }
 0x3d3   :  { %5948 = vsyncpa [#allocation4 + $0x1], 1 }
 0x3d4   :  { %5949 = vsyncpa [#allocation7], 1 }
 0x3d5   :  { %5950 = vsyncpa [#allocation5], 1 }
 0x3d6   :  { %5952 = vsyncpa [#allocation5 + $0x1], 1 }
 0x3d7   :  { %5953 = vsyncpa [#allocation11], 1 }
 0x3d8   :  { %5955 = vsyncpa [#allocation11 + $0x1], 1 }
 0x3d9   :  { %5956 = vsyncpa [#allocation14], 1 }
 0x3da   :  { %5958 = vsyncpa [#allocation14 + $0x1], 1 }
 0x3db   :  { %5959 = vsyncpa [#allocation17], 1 }
 0x3dc   :  { %5961 = vsyncpa [#allocation17 + $0x1], 1 }

</bundles_post_ra>
